<compile_context>
chip_gen: v5e
topology: v5e:2x2
jax: 0.10.0
libtpu: 0.0.40
codegen_flags: <defaults>
</compile_context>

<pallas_src>
import functools
import math

import jax
import jax.numpy as jnp
import numpy as np
from jax import lax
from jax.experimental import pallas as pl
from jax.experimental.pallas import tpu as pltpu


def _transformer_block_kernel(x_ref, mask_ref, wqkv_ref, wot_ref,
                              ln1_g_ref, ln1_b_ref, w1t_ref, b1_ref,
                              w2t_ref, b2_ref, ln2_g_ref, ln2_b_ref,
                              o_ref, ctx_ref, *,
                              num_heads, batch_block, mxu_dtype, fused_flatten):
    R, D = x_ref.shape                       # R = batch_block * T rows
    H = num_heads
    dk = D // H
    T = R // batch_block
    th = T // H

    x = x_ref[...]                           # (R, D) float32
    mask = mask_ref[...]                     # (T, T) additive mask (broadcast)

    # Fused Q|K|V projection (1/sqrt(dk) already folded into the Wq columns).
    qkv = jnp.dot(x.astype(mxu_dtype), wqkv_ref[...],
                  preferred_element_type=jnp.float32)        # (R, 3D) f32

    # Per-(batch, head) scores -> softmax row-sum -> scaled context.
    # NB: the reference einsum 'bhtl,bthd->bhtd' indexes v by the *query*
    # position, so softmax(A) is contracted only against its own row-sum
    # (~1.0): ctx_h = rowsum_h * v_h.  Reproduced faithfully, not "fixed".
    # (For H >> 8 convert this static loop to lax.fori_loop(..., unroll=k) to
    # bound vreg live ranges; at H=4 it is neutral.)
    for b in range(batch_block):
        r0 = b * T
        q = qkv[r0:r0 + T, 0:D]
        k = qkv[r0:r0 + T, D:2 * D]
        v = qkv[r0:r0 + T, 2 * D:3 * D]
        for h in range(H):
            c0 = h * dk
            a = lax.dot_general(q[:, c0:c0 + dk].astype(mxu_dtype),
                                k[:, c0:c0 + dk].astype(mxu_dtype),
                                (((1,), (1,)), ((), ())),
                                preferred_element_type=jnp.float32) + mask
            e = jnp.exp(a - jnp.max(a, axis=-1, keepdims=True))
            s = jnp.sum(e, axis=-1, keepdims=True)
            row_sum = s * (1.0 / s)           # == sum(softmax(a), -1), ~1.0
            ctx_h = row_sum * v[:, c0:c0 + dk]                # (T, dk) f32
            if fused_flatten:
                # torch's ctx.reshape(B, T, D) head-major flatten: per head it
                # is exactly the row-major (T, dk) -> (T//H, D) reshape written
                # to contiguous rows of the flattened buffer.
                ctx_ref[r0 + h * th:r0 + (h + 1) * th, :] = ctx_h.reshape(th, D)
            else:
                # Fallback layout: ctx_h stored contiguously in a (R*H, dk)
                # scratch; the flatten is realized by strided loads at the Wo
                # matmul below (no H^2 masked stores, no value reshape).
                ctx_ref[pl.ds((r0 + h * th) * H, T), :] = ctx_h

    # Output projection over all R rows.
    if fused_flatten:
        attn = jnp.dot(ctx_ref[...].astype(mxu_dtype), wot_ref[...],
                       preferred_element_type=jnp.float32)    # (R, D)
    else:
        attn = jnp.zeros((R, D), jnp.float32)
        for j in range(H):
            attn = attn + jnp.dot(
                ctx_ref[pl.ds(j, R, stride=H), :].astype(mxu_dtype),
                wot_ref[j * dk:(j + 1) * dk, :],
                preferred_element_type=jnp.float32)

    # TODO(synk): dropout treated as p=0 (identity / eval mode); p>0 would
    # need pltpu.prng_seed / prng_random_bits masks.

    # residual + LayerNorm (mha) -- f32 math.
    y = x + attn
    mu = jnp.mean(y, axis=-1, keepdims=True)
    var = jnp.mean((y - mu) * (y - mu), axis=-1, keepdims=True)
    y = (y - mu) * lax.rsqrt(var + 1e-5) * ln1_g_ref[...] + ln1_b_ref[...]

    # FeedForward: two kernel-size-1 Conv1d == per-token matmuls.
    hidden = jnp.dot(y.astype(mxu_dtype), w1t_ref[...],
                     preferred_element_type=jnp.float32) + b1_ref[...]
    hidden = jnp.maximum(hidden, 0.0)
    f = jnp.dot(hidden.astype(mxu_dtype), w2t_ref[...],
                preferred_element_type=jnp.float32) + b2_ref[...]

    # residual + LayerNorm (ffn).
    z = y + f
    mu2 = jnp.mean(z, axis=-1, keepdims=True)
    var2 = jnp.mean((z - mu2) * (z - mu2), axis=-1, keepdims=True)
    z = (z - mu2) * lax.rsqrt(var2 + 1e-5) * ln2_g_ref[...] + ln2_b_ref[...]

    o_ref[...] = z.astype(o_ref.dtype)


def _pick_batch_block(batch, seq, target_rows=256):
    """Largest divisor of `batch` keeping B_blk*seq near the MXU-friendly
    target row count; small seq gets several batches per grid step."""
    best = 1
    for d in range(1, batch + 1):
        if batch % d == 0 and d * seq <= max(target_rows, seq):
            best = d
    # Prefer >=2 grid steps (v7x has 2 TensorCores) if that still gives
    # >=128 MXU rows per step.
    if batch // best < 2:
        for d in range(best - 1, 0, -1):
            if batch % d == 0 and d * seq >= 128:
                best = d
                break
    return best


def transformer_block(x, mask, params, num_heads, *, mxu_dtype=jnp.bfloat16):
    """x: (B, T, D) float32; mask: (T, T) additive mask (batch-broadcast)."""
    B, T, D = x.shape
    H = num_heads
    assert D % H == 0 and T % H == 0
    assert mask.shape == (T, T)
    dk = D // H

    # Host-side weight prep: fused QKV (query scale folded in), transposed
    # projection / FFN weights; MXU operands in mxu_dtype (bf16 on v6e/v7x,
    # f32 accumulation in kernel); LayerNorm / bias params stay f32.
    scale = 1.0 / math.sqrt(dk)
    wqkv = jnp.concatenate([params["Wq"] * scale, params["Wk"], params["Wv"]],
                           axis=1).astype(mxu_dtype)
    wot = params["Wo"].T.astype(mxu_dtype)
    w1t = params["W1"].T.astype(mxu_dtype)
    w2t = params["W2"].T.astype(mxu_dtype)
    b1 = params["b1"].reshape(1, -1).astype(jnp.float32)
    b2 = params["b2"].reshape(1, -1).astype(jnp.float32)
    ln1_g = params["ln1_g"].reshape(1, -1).astype(jnp.float32)
    ln1_b = params["ln1_b"].reshape(1, -1).astype(jnp.float32)
    ln2_g = params["ln2_g"].reshape(1, -1).astype(jnp.float32)
    ln2_b = params["ln2_b"].reshape(1, -1).astype(jnp.float32)
    mask = mask.astype(jnp.float32)

    b_blk = _pick_batch_block(B, T)
    r_blk = b_blk * T
    grid = (B // b_blk,)
    x2 = x.astype(jnp.float32).reshape(B * T, D)     # lane-dense 2-D slab

    w_itemsize = np.dtype(mxu_dtype).itemsize
    weight_bytes = w_itemsize * 8 * D * D            # wqkv + wo^T + w1^T + w2^T
    small_bytes = 4 * 7 * D                          # biases + LN params
    act_bytes = 4 * r_blk * D
    score_bytes = 4 * T * T

    cost = pl.CostEstimate(
        flops=int(16 * B * T * D * D + 2 * B * T * T * D),
        transcendentals=int(B * H * T * T),
        bytes_accessed=int(weight_bytes + small_bytes + 2 * 4 * B * T * D
                           + 4 * T * T))

    def build(fused_flatten, single_buffer):
        def const_spec(a):
            nd = a.ndim
            if single_buffer:
                # Constant index map -> fetched once; single-buffer so it only
                # occupies 1x VMEM (v7x has 64 MiB per TensorCore).
                return pl.BlockSpec(a.shape, lambda i, _n=nd: (0,) * _n,
                                    pipeline_mode=pl.Buffered(1))
            return pl.BlockSpec(a.shape, lambda i, _n=nd: (0,) * _n)

        in_specs = [
            pl.BlockSpec((r_blk, D), lambda i: (i, 0)),   # x rows for this step
            const_spec(mask),                             # shared across batch
            const_spec(wqkv), const_spec(wot),
            const_spec(ln1_g), const_spec(ln1_b),
            const_spec(w1t), const_spec(b1), const_spec(w2t), const_spec(b2),
            const_spec(ln2_g), const_spec(ln2_b),
        ]
        out_spec = pl.BlockSpec((r_blk, D), lambda i: (i, 0))
        scratch = [pltpu.VMEM((r_blk, D), jnp.float32) if fused_flatten
                   else pltpu.VMEM((r_blk * H, dk), jnp.float32)]

        wfac = 1 if single_buffer else 2
        need = (wfac * (weight_bytes + small_bytes + 4 * T * T)
                + 2 * 2 * act_bytes      # x / out blocks, double-buffered
                + act_bytes              # ctx scratch
                + 3 * act_bytes          # qkv value
                + score_bytes)
        vmem_limit = int(min(40 << 20, max(16 << 20, 2 * need)))  # v7x: 64 MiB phys

        kernel = functools.partial(
            _transformer_block_kernel, num_heads=H, batch_block=b_blk,
            mxu_dtype=mxu_dtype, fused_flatten=fused_flatten)
        return pl.pallas_call(
            kernel,
            grid=grid,
            in_specs=in_specs,
            out_specs=out_spec,
            out_shape=jax.ShapeDtypeStruct((B * T, D), jnp.float32),
            scratch_shapes=scratch,
            compiler_params=pltpu.CompilerParams(
                dimension_semantics=("parallel",),
                vmem_limit_bytes=vmem_limit),
            cost_estimate=cost,
        )

    args = (x2, mask, wqkv, wot, ln1_g, ln1_b, w1t, b1, w2t, b2, ln2_g, ln2_b)
    last_err = None
    # Preferred config first; fall back only if the installed Pallas/Mosaic
    # rejects single-buffering (pipeline_mode) or the in-register head-flatten
    # reshape.  This is a capability probe, not error hiding: the result is
    # still validated against the reference by the caller.
    for fused_flatten, single_buffer in ((True, True), (True, False),
                                         (False, True), (False, False)):
        try:
            out = build(fused_flatten, single_buffer)(*args)
            out = jax.block_until_ready(out)
            return out.reshape(B, T, D)
        except Exception as err:
            last_err = err
    raise last_err


def init_params(key, D):
    ks = jax.random.split(key, 8)
    xav = math.sqrt(6.0 / (D + D))
    lin = 1.0 / math.sqrt(D)
    lin2 = 1.0 / math.sqrt(2 * D)
    return {
        "Wq": jax.random.uniform(ks[0], (D, D), jnp.float32, -xav, xav),
        "Wk": jax.random.uniform(ks[1], (D, D), jnp.float32, -xav, xav),
        "Wv": jax.random.uniform(ks[2], (D, D), jnp.float32, -xav, xav),
        "Wo": jax.random.uniform(ks[3], (D, D), jnp.float32, -lin, lin),
        "W1": jax.random.uniform(ks[4], (2 * D, D), jnp.float32, -lin, lin),
        "b1": jax.random.uniform(ks[5], (2 * D,), jnp.float32, -lin, lin),
        "W2": jax.random.uniform(ks[6], (D, 2 * D), jnp.float32, -lin2, lin2),
        "b2": jax.random.uniform(ks[7], (D,), jnp.float32, -lin2, lin2),
        "ln1_g": jnp.ones((D,), jnp.float32),
        "ln1_b": jnp.zeros((D,), jnp.float32),
        "ln2_g": jnp.ones((D,), jnp.float32),
        "ln2_b": jnp.zeros((D,), jnp.float32),
    }


def _layernorm_ref(x, g, b, eps=1e-5):
    mu = jnp.mean(x, -1, keepdims=True)
    var = jnp.mean((x - mu) ** 2, -1, keepdims=True)
    return (x - mu) / jnp.sqrt(var + eps) * g + b


def reference_forward(x, mask, p, H):
    """Pure-JAX mirror of the PyTorch module (same einsum strings / reshape)."""
    B, T, D = x.shape
    dk = D // H
    q = (x @ p["Wq"]).reshape(B, T, H, dk) / math.sqrt(dk)
    k = (x @ p["Wk"]).reshape(B, T, H, dk)
    v = (x @ p["Wv"]).reshape(B, T, H, dk)
    A = jnp.einsum("bthd,blhd->bhtl", q, k) + mask[None, None, :, :]
    A = jax.nn.softmax(A, axis=-1)
    ctx = jnp.einsum("bhtl,bthd->bhtd", A, v)
    attn = ctx.reshape(B, T, D) @ p["Wo"].T
    y = _layernorm_ref(x + attn, p["ln1_g"], p["ln1_b"])
    h = jnp.maximum(y @ p["W1"].T + p["b1"], 0.0)
    f = h @ p["W2"].T + p["b2"]
    return _layernorm_ref(y + f, p["ln2_g"], p["ln2_b"])


if __name__ == "__main__":
    B, T, D, H = 2, 8, 32, 4
    key = jax.random.PRNGKey(0)
    kx, kp = jax.random.split(key)
    x = jax.random.normal(kx, (B, T, D), jnp.float32)
    mask = jnp.where(jnp.tril(jnp.ones((T, T), dtype=bool)),
                     0.0, -1e9).astype(jnp.float32)          # (T, T), broadcast
    params = init_params(kp, D)

    ref = reference_forward(x, mask, params, H)

    # Strict check: f32-MXU path must match the reference tightly.
    out_f32 = jax.block_until_ready(
        transformer_block(x, mask, params, H, mxu_dtype=jnp.float32))
    err_f32 = float(jnp.max(jnp.abs(out_f32 - ref)))
    if not np.isfinite(err_f32) or err_f32 > 5e-4:
        raise AssertionError(f"f32 mismatch vs reference: max abs err = {err_f32}")

    # Production path (v6e/v7x): bf16 MXU operands, f32 accumulation.
    out_bf16 = jax.block_until_ready(
        transformer_block(x, mask, params, H, mxu_dtype=jnp.bfloat16))
    err_bf16 = float(jnp.max(jnp.abs(out_bf16 - ref)))
    if not np.isfinite(err_bf16) or err_bf16 > 1e-1:
        raise AssertionError(f"bf16 mismatch vs reference: max abs err = {err_bf16}")

    print("KERNEL_OK")
</pallas_src>

<mosaic_0001>
module attributes {stable_mosaic.version = 11 : i64} {
  func.func @_transformer_block_kernel(%arg0: i32, %arg1: memref<16x32xf32, #tpu.memory_space<vmem>>, %arg2: memref<8x8xf32, #tpu.memory_space<vmem>>, %arg3: memref<32x96xf32, #tpu.memory_space<vmem>>, %arg4: memref<32x32xf32, #tpu.memory_space<vmem>>, %arg5: memref<1x32xf32, #tpu.memory_space<vmem>>, %arg6: memref<1x32xf32, #tpu.memory_space<vmem>>, %arg7: memref<32x64xf32, #tpu.memory_space<vmem>>, %arg8: memref<1x64xf32, #tpu.memory_space<vmem>>, %arg9: memref<64x32xf32, #tpu.memory_space<vmem>>, %arg10: memref<1x32xf32, #tpu.memory_space<vmem>>, %arg11: memref<1x32xf32, #tpu.memory_space<vmem>>, %arg12: memref<1x32xf32, #tpu.memory_space<vmem>>, %arg13: memref<16x32xf32, #tpu.memory_space<vmem>>, %arg14: memref<16x32xf32, #tpu.memory_space<vmem>>) attributes {dimension_semantics = [#tpu.dimension_semantics<parallel>], iteration_bounds = array<i64: 1>, scalar_prefetch = 0 : i64, scratch_operands = 1 : i64, tpu.core_type = #tpu.core_type<tc>, window_params = [{transform_indices = @transform_0, window_bounds = array<i64: 16, 32>}, {pipeline_mode = #tpu.pipeline_mode<synchronous>, transform_indices = @transform_1, window_bounds = array<i64: 8, 8>}, {pipeline_mode = #tpu.pipeline_mode<synchronous>, transform_indices = @transform_2, window_bounds = array<i64: 32, 96>}, {pipeline_mode = #tpu.pipeline_mode<synchronous>, transform_indices = @transform_3, window_bounds = array<i64: 32, 32>}, {pipeline_mode = #tpu.pipeline_mode<synchronous>, transform_indices = @transform_4, window_bounds = array<i64: 1, 32>}, {pipeline_mode = #tpu.pipeline_mode<synchronous>, transform_indices = @transform_5, window_bounds = array<i64: 1, 32>}, {pipeline_mode = #tpu.pipeline_mode<synchronous>, transform_indices = @transform_6, window_bounds = array<i64: 32, 64>}, {pipeline_mode = #tpu.pipeline_mode<synchronous>, transform_indices = @transform_7, window_bounds = array<i64: 1, 64>}, {pipeline_mode = #tpu.pipeline_mode<synchronous>, transform_indices = @transform_8, window_bounds = array<i64: 64, 32>}, {pipeline_mode = #tpu.pipeline_mode<synchronous>, transform_indices = @transform_9, window_bounds = array<i64: 1, 32>}, {pipeline_mode = #tpu.pipeline_mode<synchronous>, transform_indices = @transform_10, window_bounds = array<i64: 1, 32>}, {pipeline_mode = #tpu.pipeline_mode<synchronous>, transform_indices = @transform_11, window_bounds = array<i64: 1, 32>}, {transform_indices = @transform_12, window_bounds = array<i64: 16, 32>}]} {
    %c0 = arith.constant 0 : index
    %c0_0 = arith.constant 0 : index
    %0 = vector.load %arg1[%c0, %c0_0] : memref<16x32xf32, #tpu.memory_space<vmem>>, vector<16x32xf32>
    %c0_1 = arith.constant 0 : index
    %c0_2 = arith.constant 0 : index
    %1 = vector.load %arg2[%c0_1, %c0_2] : memref<8x8xf32, #tpu.memory_space<vmem>>, vector<8x8xf32>
    %c0_3 = arith.constant 0 : index
    %c0_4 = arith.constant 0 : index
    %2 = vector.load %arg3[%c0_3, %c0_4] : memref<32x96xf32, #tpu.memory_space<vmem>>, vector<32x96xf32>
    %cst = arith.constant dense<0.000000e+00> : vector<16x96xf32>
    %3 = tpu.matmul %0, %2, %cst {dimension_numbers = #tpu.dot_dimension_numbers<[1], [0], [0], [1], [0, 0, 1, 1], [], []>} : vector<16x32xf32>, vector<32x96xf32>, vector<16x96xf32> -> vector<16x96xf32>
    %4 = vector.extract_strided_slice %3 {offsets = [0, 0], sizes = [8, 32], strides = [1, 1]} : vector<16x96xf32> to vector<8x32xf32>
    %5 = vector.extract_strided_slice %3 {offsets = [0, 32], sizes = [8, 32], strides = [1, 1]} : vector<16x96xf32> to vector<8x32xf32>
    %6 = vector.extract_strided_slice %3 {offsets = [0, 64], sizes = [8, 32], strides = [1, 1]} : vector<16x96xf32> to vector<8x32xf32>
    %7 = vector.extract_strided_slice %4 {offsets = [0, 0], sizes = [8, 8], strides = [1, 1]} : vector<8x32xf32> to vector<8x8xf32>
    %8 = vector.extract_strided_slice %5 {offsets = [0, 0], sizes = [8, 8], strides = [1, 1]} : vector<8x32xf32> to vector<8x8xf32>
    %cst_5 = arith.constant dense<0.000000e+00> : vector<8x8xf32>
    %9 = tpu.matmul %7, %8, %cst_5 {dimension_numbers = #tpu.dot_dimension_numbers<[1], [1], [0], [0], [0, 0, 1, 0], [], []>} : vector<8x8xf32>, vector<8x8xf32>, vector<8x8xf32> -> vector<8x8xf32>
    %10 = arith.addf %9, %1 : vector<8x8xf32>
    %cst_6 = arith.constant dense<0xFF800000> : vector<8xf32>
    %11 = vector.multi_reduction <maximumf>, %10, %cst_6 [1] : vector<8x8xf32> to vector<8xf32>
    %12 = vector.shape_cast %11 : vector<8xf32> to vector<8x1xf32>
    %13 = vector.broadcast %12 : vector<8x1xf32> to vector<8x8xf32>
    %14 = arith.subf %10, %13 : vector<8x8xf32>
    %15 = math.exp %14 : vector<8x8xf32>
    %cst_7 = arith.constant dense<0.000000e+00> : vector<8xf32>
    %16 = vector.multi_reduction <add>, %15, %cst_7 [1] : vector<8x8xf32> to vector<8xf32>
    %17 = vector.shape_cast %16 : vector<8xf32> to vector<8x1xf32>
    %cst_8 = arith.constant 1.000000e+00 : f32
    %18 = vector.broadcast %cst_8 : f32 to vector<8x1xf32>
    %19 = arith.divf %18, %17 : vector<8x1xf32>
    %20 = arith.mulf %17, %19 : vector<8x1xf32>
    %21 = vector.extract_strided_slice %6 {offsets = [0, 0], sizes = [8, 8], strides = [1, 1]} : vector<8x32xf32> to vector<8x8xf32>
    %22 = vector.broadcast %20 : vector<8x1xf32> to vector<8x8xf32>
    %23 = arith.mulf %22, %21 : vector<8x8xf32>
    %24 = vector.shape_cast %23 : vector<8x8xf32> to vector<2x32xf32>
    %c0_9 = arith.constant 0 : index
    %c0_10 = arith.constant 0 : index
    %25 = vector.load %arg14[%c0_9, %c0_10] : memref<16x32xf32, #tpu.memory_space<vmem>>, vector<2x32xf32>
    tpu.vector_store %arg14[%c0_9, %c0_10], %24 {strides = array<i32>} : memref<16x32xf32, #tpu.memory_space<vmem>>, vector<2x32xf32>,
    %26 = vector.extract_strided_slice %4 {offsets = [0, 8], sizes = [8, 8], strides = [1, 1]} : vector<8x32xf32> to vector<8x8xf32>
    %27 = vector.extract_strided_slice %5 {offsets = [0, 8], sizes = [8, 8], strides = [1, 1]} : vector<8x32xf32> to vector<8x8xf32>
    %cst_11 = arith.constant dense<0.000000e+00> : vector<8x8xf32>
    %28 = tpu.matmul %26, %27, %cst_11 {dimension_numbers = #tpu.dot_dimension_numbers<[1], [1], [0], [0], [0, 0, 1, 0], [], []>} : vector<8x8xf32>, vector<8x8xf32>, vector<8x8xf32> -> vector<8x8xf32>
    %29 = arith.addf %28, %1 : vector<8x8xf32>
    %cst_12 = arith.constant dense<0xFF800000> : vector<8xf32>
    %30 = vector.multi_reduction <maximumf>, %29, %cst_12 [1] : vector<8x8xf32> to vector<8xf32>
    %31 = vector.shape_cast %30 : vector<8xf32> to vector<8x1xf32>
    %32 = vector.broadcast %31 : vector<8x1xf32> to vector<8x8xf32>
    %33 = arith.subf %29, %32 : vector<8x8xf32>
    %34 = math.exp %33 : vector<8x8xf32>
    %cst_13 = arith.constant dense<0.000000e+00> : vector<8xf32>
    %35 = vector.multi_reduction <add>, %34, %cst_13 [1] : vector<8x8xf32> to vector<8xf32>
    %36 = vector.shape_cast %35 : vector<8xf32> to vector<8x1xf32>
    %cst_14 = arith.constant 1.000000e+00 : f32
    %37 = vector.broadcast %cst_14 : f32 to vector<8x1xf32>
    %38 = arith.divf %37, %36 : vector<8x1xf32>
    %39 = arith.mulf %36, %38 : vector<8x1xf32>
    %40 = vector.extract_strided_slice %6 {offsets = [0, 8], sizes = [8, 8], strides = [1, 1]} : vector<8x32xf32> to vector<8x8xf32>
    %41 = vector.broadcast %39 : vector<8x1xf32> to vector<8x8xf32>
    %42 = arith.mulf %41, %40 : vector<8x8xf32>
    %43 = vector.shape_cast %42 : vector<8x8xf32> to vector<2x32xf32>
    %c2 = arith.constant 2 : index
    %c0_15 = arith.constant 0 : index
    %44 = vector.load %arg14[%c2, %c0_15] : memref<16x32xf32, #tpu.memory_space<vmem>>, vector<2x32xf32>
    tpu.vector_store %arg14[%c2, %c0_15], %43 {strides = array<i32>} : memref<16x32xf32, #tpu.memory_space<vmem>>, vector<2x32xf32>,
    %45 = vector.extract_strided_slice %4 {offsets = [0, 16], sizes = [8, 8], strides = [1, 1]} : vector<8x32xf32> to vector<8x8xf32>
    %46 = vector.extract_strided_slice %5 {offsets = [0, 16], sizes = [8, 8], strides = [1, 1]} : vector<8x32xf32> to vector<8x8xf32>
    %cst_16 = arith.constant dense<0.000000e+00> : vector<8x8xf32>
    %47 = tpu.matmul %45, %46, %cst_16 {dimension_numbers = #tpu.dot_dimension_numbers<[1], [1], [0], [0], [0, 0, 1, 0], [], []>} : vector<8x8xf32>, vector<8x8xf32>, vector<8x8xf32> -> vector<8x8xf32>
    %48 = arith.addf %47, %1 : vector<8x8xf32>
    %cst_17 = arith.constant dense<0xFF800000> : vector<8xf32>
    %49 = vector.multi_reduction <maximumf>, %48, %cst_17 [1] : vector<8x8xf32> to vector<8xf32>
    %50 = vector.shape_cast %49 : vector<8xf32> to vector<8x1xf32>
    %51 = vector.broadcast %50 : vector<8x1xf32> to vector<8x8xf32>
    %52 = arith.subf %48, %51 : vector<8x8xf32>
    %53 = math.exp %52 : vector<8x8xf32>
    %cst_18 = arith.constant dense<0.000000e+00> : vector<8xf32>
    %54 = vector.multi_reduction <add>, %53, %cst_18 [1] : vector<8x8xf32> to vector<8xf32>
    %55 = vector.shape_cast %54 : vector<8xf32> to vector<8x1xf32>
    %cst_19 = arith.constant 1.000000e+00 : f32
    %56 = vector.broadcast %cst_19 : f32 to vector<8x1xf32>
    %57 = arith.divf %56, %55 : vector<8x1xf32>
    %58 = arith.mulf %55, %57 : vector<8x1xf32>
    %59 = vector.extract_strided_slice %6 {offsets = [0, 16], sizes = [8, 8], strides = [1, 1]} : vector<8x32xf32> to vector<8x8xf32>
    %60 = vector.broadcast %58 : vector<8x1xf32> to vector<8x8xf32>
    %61 = arith.mulf %60, %59 : vector<8x8xf32>
    %62 = vector.shape_cast %61 : vector<8x8xf32> to vector<2x32xf32>
    %c4 = arith.constant 4 : index
    %c0_20 = arith.constant 0 : index
    %63 = vector.load %arg14[%c4, %c0_20] : memref<16x32xf32, #tpu.memory_space<vmem>>, vector<2x32xf32>
    tpu.vector_store %arg14[%c4, %c0_20], %62 {strides = array<i32>} : memref<16x32xf32, #tpu.memory_space<vmem>>, vector<2x32xf32>,
    %64 = vector.extract_strided_slice %4 {offsets = [0, 24], sizes = [8, 8], strides = [1, 1]} : vector<8x32xf32> to vector<8x8xf32>
    %65 = vector.extract_strided_slice %5 {offsets = [0, 24], sizes = [8, 8], strides = [1, 1]} : vector<8x32xf32> to vector<8x8xf32>
    %cst_21 = arith.constant dense<0.000000e+00> : vector<8x8xf32>
    %66 = tpu.matmul %64, %65, %cst_21 {dimension_numbers = #tpu.dot_dimension_numbers<[1], [1], [0], [0], [0, 0, 1, 0], [], []>} : vector<8x8xf32>, vector<8x8xf32>, vector<8x8xf32> -> vector<8x8xf32>
    %67 = arith.addf %66, %1 : vector<8x8xf32>
    %cst_22 = arith.constant dense<0xFF800000> : vector<8xf32>
    %68 = vector.multi_reduction <maximumf>, %67, %cst_22 [1] : vector<8x8xf32> to vector<8xf32>
    %69 = vector.shape_cast %68 : vector<8xf32> to vector<8x1xf32>
    %70 = vector.broadcast %69 : vector<8x1xf32> to vector<8x8xf32>
    %71 = arith.subf %67, %70 : vector<8x8xf32>
    %72 = math.exp %71 : vector<8x8xf32>
    %cst_23 = arith.constant dense<0.000000e+00> : vector<8xf32>
    %73 = vector.multi_reduction <add>, %72, %cst_23 [1] : vector<8x8xf32> to vector<8xf32>
    %74 = vector.shape_cast %73 : vector<8xf32> to vector<8x1xf32>
    %cst_24 = arith.constant 1.000000e+00 : f32
    %75 = vector.broadcast %cst_24 : f32 to vector<8x1xf32>
    %76 = arith.divf %75, %74 : vector<8x1xf32>
    %77 = arith.mulf %74, %76 : vector<8x1xf32>
    %78 = vector.extract_strided_slice %6 {offsets = [0, 24], sizes = [8, 8], strides = [1, 1]} : vector<8x32xf32> to vector<8x8xf32>
    %79 = vector.broadcast %77 : vector<8x1xf32> to vector<8x8xf32>
    %80 = arith.mulf %79, %78 : vector<8x8xf32>
    %81 = vector.shape_cast %80 : vector<8x8xf32> to vector<2x32xf32>
    %c6 = arith.constant 6 : index
    %c0_25 = arith.constant 0 : index
    %82 = vector.load %arg14[%c6, %c0_25] : memref<16x32xf32, #tpu.memory_space<vmem>>, vector<2x32xf32>
    tpu.vector_store %arg14[%c6, %c0_25], %81 {strides = array<i32>} : memref<16x32xf32, #tpu.memory_space<vmem>>, vector<2x32xf32>,
    %83 = vector.extract_strided_slice %3 {offsets = [8, 0], sizes = [8, 32], strides = [1, 1]} : vector<16x96xf32> to vector<8x32xf32>
    %84 = vector.extract_strided_slice %3 {offsets = [8, 32], sizes = [8, 32], strides = [1, 1]} : vector<16x96xf32> to vector<8x32xf32>
    %85 = vector.extract_strided_slice %3 {offsets = [8, 64], sizes = [8, 32], strides = [1, 1]} : vector<16x96xf32> to vector<8x32xf32>
    %86 = vector.extract_strided_slice %83 {offsets = [0, 0], sizes = [8, 8], strides = [1, 1]} : vector<8x32xf32> to vector<8x8xf32>
    %87 = vector.extract_strided_slice %84 {offsets = [0, 0], sizes = [8, 8], strides = [1, 1]} : vector<8x32xf32> to vector<8x8xf32>
    %cst_26 = arith.constant dense<0.000000e+00> : vector<8x8xf32>
    %88 = tpu.matmul %86, %87, %cst_26 {dimension_numbers = #tpu.dot_dimension_numbers<[1], [1], [0], [0], [0, 0, 1, 0], [], []>} : vector<8x8xf32>, vector<8x8xf32>, vector<8x8xf32> -> vector<8x8xf32>
    %89 = arith.addf %88, %1 : vector<8x8xf32>
    %cst_27 = arith.constant dense<0xFF800000> : vector<8xf32>
    %90 = vector.multi_reduction <maximumf>, %89, %cst_27 [1] : vector<8x8xf32> to vector<8xf32>
    %91 = vector.shape_cast %90 : vector<8xf32> to vector<8x1xf32>
    %92 = vector.broadcast %91 : vector<8x1xf32> to vector<8x8xf32>
    %93 = arith.subf %89, %92 : vector<8x8xf32>
    %94 = math.exp %93 : vector<8x8xf32>
    %cst_28 = arith.constant dense<0.000000e+00> : vector<8xf32>
    %95 = vector.multi_reduction <add>, %94, %cst_28 [1] : vector<8x8xf32> to vector<8xf32>
    %96 = vector.shape_cast %95 : vector<8xf32> to vector<8x1xf32>
    %cst_29 = arith.constant 1.000000e+00 : f32
    %97 = vector.broadcast %cst_29 : f32 to vector<8x1xf32>
    %98 = arith.divf %97, %96 : vector<8x1xf32>
    %99 = arith.mulf %96, %98 : vector<8x1xf32>
    %100 = vector.extract_strided_slice %85 {offsets = [0, 0], sizes = [8, 8], strides = [1, 1]} : vector<8x32xf32> to vector<8x8xf32>
    %101 = vector.broadcast %99 : vector<8x1xf32> to vector<8x8xf32>
    %102 = arith.mulf %101, %100 : vector<8x8xf32>
    %103 = vector.shape_cast %102 : vector<8x8xf32> to vector<2x32xf32>
    %c8 = arith.constant 8 : index
    %c0_30 = arith.constant 0 : index
    %104 = vector.load %arg14[%c8, %c0_30] : memref<16x32xf32, #tpu.memory_space<vmem>>, vector<2x32xf32>
    tpu.vector_store %arg14[%c8, %c0_30], %103 {strides = array<i32>} : memref<16x32xf32, #tpu.memory_space<vmem>>, vector<2x32xf32>,
    %105 = vector.extract_strided_slice %83 {offsets = [0, 8], sizes = [8, 8], strides = [1, 1]} : vector<8x32xf32> to vector<8x8xf32>
    %106 = vector.extract_strided_slice %84 {offsets = [0, 8], sizes = [8, 8], strides = [1, 1]} : vector<8x32xf32> to vector<8x8xf32>
    %cst_31 = arith.constant dense<0.000000e+00> : vector<8x8xf32>
    %107 = tpu.matmul %105, %106, %cst_31 {dimension_numbers = #tpu.dot_dimension_numbers<[1], [1], [0], [0], [0, 0, 1, 0], [], []>} : vector<8x8xf32>, vector<8x8xf32>, vector<8x8xf32> -> vector<8x8xf32>
    %108 = arith.addf %107, %1 : vector<8x8xf32>
    %cst_32 = arith.constant dense<0xFF800000> : vector<8xf32>
    %109 = vector.multi_reduction <maximumf>, %108, %cst_32 [1] : vector<8x8xf32> to vector<8xf32>
    %110 = vector.shape_cast %109 : vector<8xf32> to vector<8x1xf32>
    %111 = vector.broadcast %110 : vector<8x1xf32> to vector<8x8xf32>
    %112 = arith.subf %108, %111 : vector<8x8xf32>
    %113 = math.exp %112 : vector<8x8xf32>
    %cst_33 = arith.constant dense<0.000000e+00> : vector<8xf32>
    %114 = vector.multi_reduction <add>, %113, %cst_33 [1] : vector<8x8xf32> to vector<8xf32>
    %115 = vector.shape_cast %114 : vector<8xf32> to vector<8x1xf32>
    %cst_34 = arith.constant 1.000000e+00 : f32
    %116 = vector.broadcast %cst_34 : f32 to vector<8x1xf32>
    %117 = arith.divf %116, %115 : vector<8x1xf32>
    %118 = arith.mulf %115, %117 : vector<8x1xf32>
    %119 = vector.extract_strided_slice %85 {offsets = [0, 8], sizes = [8, 8], strides = [1, 1]} : vector<8x32xf32> to vector<8x8xf32>
    %120 = vector.broadcast %118 : vector<8x1xf32> to vector<8x8xf32>
    %121 = arith.mulf %120, %119 : vector<8x8xf32>
    %122 = vector.shape_cast %121 : vector<8x8xf32> to vector<2x32xf32>
    %c10 = arith.constant 10 : index
    %c0_35 = arith.constant 0 : index
    %123 = vector.load %arg14[%c10, %c0_35] : memref<16x32xf32, #tpu.memory_space<vmem>>, vector<2x32xf32>
    tpu.vector_store %arg14[%c10, %c0_35], %122 {strides = array<i32>} : memref<16x32xf32, #tpu.memory_space<vmem>>, vector<2x32xf32>,
    %124 = vector.extract_strided_slice %83 {offsets = [0, 16], sizes = [8, 8], strides = [1, 1]} : vector<8x32xf32> to vector<8x8xf32>
    %125 = vector.extract_strided_slice %84 {offsets = [0, 16], sizes = [8, 8], strides = [1, 1]} : vector<8x32xf32> to vector<8x8xf32>
    %cst_36 = arith.constant dense<0.000000e+00> : vector<8x8xf32>
    %126 = tpu.matmul %124, %125, %cst_36 {dimension_numbers = #tpu.dot_dimension_numbers<[1], [1], [0], [0], [0, 0, 1, 0], [], []>} : vector<8x8xf32>, vector<8x8xf32>, vector<8x8xf32> -> vector<8x8xf32>
    %127 = arith.addf %126, %1 : vector<8x8xf32>
    %cst_37 = arith.constant dense<0xFF800000> : vector<8xf32>
    %128 = vector.multi_reduction <maximumf>, %127, %cst_37 [1] : vector<8x8xf32> to vector<8xf32>
    %129 = vector.shape_cast %128 : vector<8xf32> to vector<8x1xf32>
    %130 = vector.broadcast %129 : vector<8x1xf32> to vector<8x8xf32>
    %131 = arith.subf %127, %130 : vector<8x8xf32>
    %132 = math.exp %131 : vector<8x8xf32>
    %cst_38 = arith.constant dense<0.000000e+00> : vector<8xf32>
    %133 = vector.multi_reduction <add>, %132, %cst_38 [1] : vector<8x8xf32> to vector<8xf32>
    %134 = vector.shape_cast %133 : vector<8xf32> to vector<8x1xf32>
    %cst_39 = arith.constant 1.000000e+00 : f32
    %135 = vector.broadcast %cst_39 : f32 to vector<8x1xf32>
    %136 = arith.divf %135, %134 : vector<8x1xf32>
    %137 = arith.mulf %134, %136 : vector<8x1xf32>
    %138 = vector.extract_strided_slice %85 {offsets = [0, 16], sizes = [8, 8], strides = [1, 1]} : vector<8x32xf32> to vector<8x8xf32>
    %139 = vector.broadcast %137 : vector<8x1xf32> to vector<8x8xf32>
    %140 = arith.mulf %139, %138 : vector<8x8xf32>
    %141 = vector.shape_cast %140 : vector<8x8xf32> to vector<2x32xf32>
    %c12 = arith.constant 12 : index
    %c0_40 = arith.constant 0 : index
    %142 = vector.load %arg14[%c12, %c0_40] : memref<16x32xf32, #tpu.memory_space<vmem>>, vector<2x32xf32>
    tpu.vector_store %arg14[%c12, %c0_40], %141 {strides = array<i32>} : memref<16x32xf32, #tpu.memory_space<vmem>>, vector<2x32xf32>,
    %143 = vector.extract_strided_slice %83 {offsets = [0, 24], sizes = [8, 8], strides = [1, 1]} : vector<8x32xf32> to vector<8x8xf32>
    %144 = vector.extract_strided_slice %84 {offsets = [0, 24], sizes = [8, 8], strides = [1, 1]} : vector<8x32xf32> to vector<8x8xf32>
    %cst_41 = arith.constant dense<0.000000e+00> : vector<8x8xf32>
    %145 = tpu.matmul %143, %144, %cst_41 {dimension_numbers = #tpu.dot_dimension_numbers<[1], [1], [0], [0], [0, 0, 1, 0], [], []>} : vector<8x8xf32>, vector<8x8xf32>, vector<8x8xf32> -> vector<8x8xf32>
    %146 = arith.addf %145, %1 : vector<8x8xf32>
    %cst_42 = arith.constant dense<0xFF800000> : vector<8xf32>
    %147 = vector.multi_reduction <maximumf>, %146, %cst_42 [1] : vector<8x8xf32> to vector<8xf32>
    %148 = vector.shape_cast %147 : vector<8xf32> to vector<8x1xf32>
    %149 = vector.broadcast %148 : vector<8x1xf32> to vector<8x8xf32>
    %150 = arith.subf %146, %149 : vector<8x8xf32>
    %151 = math.exp %150 : vector<8x8xf32>
    %cst_43 = arith.constant dense<0.000000e+00> : vector<8xf32>
    %152 = vector.multi_reduction <add>, %151, %cst_43 [1] : vector<8x8xf32> to vector<8xf32>
    %153 = vector.shape_cast %152 : vector<8xf32> to vector<8x1xf32>
    %cst_44 = arith.constant 1.000000e+00 : f32
    %154 = vector.broadcast %cst_44 : f32 to vector<8x1xf32>
    %155 = arith.divf %154, %153 : vector<8x1xf32>
    %156 = arith.mulf %153, %155 : vector<8x1xf32>
    %157 = vector.extract_strided_slice %85 {offsets = [0, 24], sizes = [8, 8], strides = [1, 1]} : vector<8x32xf32> to vector<8x8xf32>
    %158 = vector.broadcast %156 : vector<8x1xf32> to vector<8x8xf32>
    %159 = arith.mulf %158, %157 : vector<8x8xf32>
    %160 = vector.shape_cast %159 : vector<8x8xf32> to vector<2x32xf32>
    %c14 = arith.constant 14 : index
    %c0_45 = arith.constant 0 : index
    %161 = vector.load %arg14[%c14, %c0_45] : memref<16x32xf32, #tpu.memory_space<vmem>>, vector<2x32xf32>
    tpu.vector_store %arg14[%c14, %c0_45], %160 {strides = array<i32>} : memref<16x32xf32, #tpu.memory_space<vmem>>, vector<2x32xf32>,
    %c0_46 = arith.constant 0 : index
    %c0_47 = arith.constant 0 : index
    %162 = vector.load %arg14[%c0_46, %c0_47] : memref<16x32xf32, #tpu.memory_space<vmem>>, vector<16x32xf32>
    %c0_48 = arith.constant 0 : index
    %c0_49 = arith.constant 0 : index
    %163 = vector.load %arg4[%c0_48, %c0_49] : memref<32x32xf32, #tpu.memory_space<vmem>>, vector<32x32xf32>
    %cst_50 = arith.constant dense<0.000000e+00> : vector<16x32xf32>
    %164 = tpu.matmul %162, %163, %cst_50 {dimension_numbers = #tpu.dot_dimension_numbers<[1], [0], [0], [1], [0, 0, 1, 1], [], []>} : vector<16x32xf32>, vector<32x32xf32>, vector<16x32xf32> -> vector<16x32xf32>
    %165 = arith.addf %0, %164 : vector<16x32xf32>
    %cst_51 = arith.constant dense<0.000000e+00> : vector<16xf32>
    %166 = vector.multi_reduction <add>, %165, %cst_51 [1] : vector<16x32xf32> to vector<16xf32>
    %167 = vector.shape_cast %166 : vector<16xf32> to vector<16x1xf32>
    %cst_52 = arith.constant 3.200000e+01 : f32
    %168 = vector.broadcast %cst_52 : f32 to vector<16x1xf32>
    %169 = arith.divf %167, %168 : vector<16x1xf32>
    %170 = vector.broadcast %169 : vector<16x1xf32> to vector<16x32xf32>
    %171 = arith.subf %165, %170 : vector<16x32xf32>
    %172 = vector.broadcast %169 : vector<16x1xf32> to vector<16x32xf32>
    %173 = arith.subf %165, %172 : vector<16x32xf32>
    %174 = arith.mulf %171, %173 : vector<16x32xf32>
    %cst_53 = arith.constant dense<0.000000e+00> : vector<16xf32>
    %175 = vector.multi_reduction <add>, %174, %cst_53 [1] : vector<16x32xf32> to vector<16xf32>
    %176 = vector.shape_cast %175 : vector<16xf32> to vector<16x1xf32>
    %cst_54 = arith.constant 3.200000e+01 : f32
    %177 = vector.broadcast %cst_54 : f32 to vector<16x1xf32>
    %178 = arith.divf %176, %177 : vector<16x1xf32>
    %179 = vector.broadcast %169 : vector<16x1xf32> to vector<16x32xf32>
    %180 = arith.subf %165, %179 : vector<16x32xf32>
    %cst_55 = arith.constant 9.99999974E-6 : f32
    %181 = vector.broadcast %cst_55 : f32 to vector<16x1xf32>
    %182 = arith.addf %178, %181 : vector<16x1xf32>
    %183 = math.rsqrt %182 : vector<16x1xf32>
    %184 = vector.broadcast %183 : vector<16x1xf32> to vector<16x32xf32>
    %185 = arith.mulf %180, %184 : vector<16x32xf32>
    %c0_56 = arith.constant 0 : index
    %c0_57 = arith.constant 0 : index
    %186 = vector.load %arg5[%c0_56, %c0_57] : memref<1x32xf32, #tpu.memory_space<vmem>>, vector<1x32xf32>
    %187 = vector.broadcast %186 : vector<1x32xf32> to vector<16x32xf32>
    %188 = arith.mulf %185, %187 : vector<16x32xf32>
    %c0_58 = arith.constant 0 : index
    %c0_59 = arith.constant 0 : index
    %189 = vector.load %arg6[%c0_58, %c0_59] : memref<1x32xf32, #tpu.memory_space<vmem>>, vector<1x32xf32>
    %190 = vector.broadcast %189 : vector<1x32xf32> to vector<16x32xf32>
    %191 = arith.addf %188, %190 : vector<16x32xf32>
    %c0_60 = arith.constant 0 : index
    %c0_61 = arith.constant 0 : index
    %192 = vector.load %arg7[%c0_60, %c0_61] : memref<32x64xf32, #tpu.memory_space<vmem>>, vector<32x64xf32>
    %cst_62 = arith.constant dense<0.000000e+00> : vector<16x64xf32>
    %193 = tpu.matmul %191, %192, %cst_62 {dimension_numbers = #tpu.dot_dimension_numbers<[1], [0], [0], [1], [0, 0, 1, 1], [], []>} : vector<16x32xf32>, vector<32x64xf32>, vector<16x64xf32> -> vector<16x64xf32>
    %c0_63 = arith.constant 0 : index
    %c0_64 = arith.constant 0 : index
    %194 = vector.load %arg8[%c0_63, %c0_64] : memref<1x64xf32, #tpu.memory_space<vmem>>, vector<1x64xf32>
    %195 = vector.broadcast %194 : vector<1x64xf32> to vector<16x64xf32>
    %196 = arith.addf %193, %195 : vector<16x64xf32>
    %cst_65 = arith.constant 0.000000e+00 : f32
    %197 = vector.broadcast %cst_65 : f32 to vector<16x64xf32>
    %198 = arith.maximumf %196, %197 : vector<16x64xf32>
    %c0_66 = arith.constant 0 : index
    %c0_67 = arith.constant 0 : index
    %199 = vector.load %arg9[%c0_66, %c0_67] : memref<64x32xf32, #tpu.memory_space<vmem>>, vector<64x32xf32>
    %cst_68 = arith.constant dense<0.000000e+00> : vector<16x32xf32>
    %200 = tpu.matmul %198, %199, %cst_68 {dimension_numbers = #tpu.dot_dimension_numbers<[1], [0], [0], [1], [0, 0, 1, 1], [], []>} : vector<16x64xf32>, vector<64x32xf32>, vector<16x32xf32> -> vector<16x32xf32>
    %c0_69 = arith.constant 0 : index
    %c0_70 = arith.constant 0 : index
    %201 = vector.load %arg10[%c0_69, %c0_70] : memref<1x32xf32, #tpu.memory_space<vmem>>, vector<1x32xf32>
    %202 = vector.broadcast %201 : vector<1x32xf32> to vector<16x32xf32>
    %203 = arith.addf %200, %202 : vector<16x32xf32>
    %204 = arith.addf %191, %203 : vector<16x32xf32>
    %cst_71 = arith.constant dense<0.000000e+00> : vector<16xf32>
    %205 = vector.multi_reduction <add>, %204, %cst_71 [1] : vector<16x32xf32> to vector<16xf32>
    %206 = vector.shape_cast %205 : vector<16xf32> to vector<16x1xf32>
    %cst_72 = arith.constant 3.200000e+01 : f32
    %207 = vector.broadcast %cst_72 : f32 to vector<16x1xf32>
    %208 = arith.divf %206, %207 : vector<16x1xf32>
    %209 = vector.broadcast %208 : vector<16x1xf32> to vector<16x32xf32>
    %210 = arith.subf %204, %209 : vector<16x32xf32>
    %211 = vector.broadcast %208 : vector<16x1xf32> to vector<16x32xf32>
    %212 = arith.subf %204, %211 : vector<16x32xf32>
    %213 = arith.mulf %210, %212 : vector<16x32xf32>
    %cst_73 = arith.constant dense<0.000000e+00> : vector<16xf32>
    %214 = vector.multi_reduction <add>, %213, %cst_73 [1] : vector<16x32xf32> to vector<16xf32>
    %215 = vector.shape_cast %214 : vector<16xf32> to vector<16x1xf32>
    %cst_74 = arith.constant 3.200000e+01 : f32
    %216 = vector.broadcast %cst_74 : f32 to vector<16x1xf32>
    %217 = arith.divf %215, %216 : vector<16x1xf32>
    %218 = vector.broadcast %208 : vector<16x1xf32> to vector<16x32xf32>
    %219 = arith.subf %204, %218 : vector<16x32xf32>
    %cst_75 = arith.constant 9.99999974E-6 : f32
    %220 = vector.broadcast %cst_75 : f32 to vector<16x1xf32>
    %221 = arith.addf %217, %220 : vector<16x1xf32>
    %222 = math.rsqrt %221 : vector<16x1xf32>
    %223 = vector.broadcast %222 : vector<16x1xf32> to vector<16x32xf32>
    %224 = arith.mulf %219, %223 : vector<16x32xf32>
    %c0_76 = arith.constant 0 : index
    %c0_77 = arith.constant 0 : index
    %225 = vector.load %arg11[%c0_76, %c0_77] : memref<1x32xf32, #tpu.memory_space<vmem>>, vector<1x32xf32>
    %226 = vector.broadcast %225 : vector<1x32xf32> to vector<16x32xf32>
    %227 = arith.mulf %224, %226 : vector<16x32xf32>
    %c0_78 = arith.constant 0 : index
    %c0_79 = arith.constant 0 : index
    %228 = vector.load %arg12[%c0_78, %c0_79] : memref<1x32xf32, #tpu.memory_space<vmem>>, vector<1x32xf32>
    %229 = vector.broadcast %228 : vector<1x32xf32> to vector<16x32xf32>
    %230 = arith.addf %227, %229 : vector<16x32xf32>
    %c0_80 = arith.constant 0 : index
    %c0_81 = arith.constant 0 : index
    %231 = vector.load %arg13[%c0_80, %c0_81] : memref<16x32xf32, #tpu.memory_space<vmem>>, vector<16x32xf32>
    tpu.vector_store %arg13[%c0_80, %c0_81], %230 {strides = array<i32>} : memref<16x32xf32, #tpu.memory_space<vmem>>, vector<16x32xf32>,
    return
  }
  func.func @transform_0(%arg0: i32) -> (i32, i32) {
    %c0_i32 = arith.constant 0 : i32
    %c0_i32_0 = arith.constant 0 : i32
    return %arg0, %c0_i32 : i32, i32
  }
  func.func @transform_1(%arg0: i32) -> (i32, i32) {
    %c0_i32 = arith.constant 0 : i32
    %c0_i32_0 = arith.constant 0 : i32
    %c0_i32_1 = arith.constant 0 : i32
    return %c0_i32, %c0_i32_0 : i32, i32
  }
  func.func @transform_2(%arg0: i32) -> (i32, i32) {
    %c0_i32 = arith.constant 0 : i32
    %c0_i32_0 = arith.constant 0 : i32
    %c0_i32_1 = arith.constant 0 : i32
    return %c0_i32, %c0_i32_0 : i32, i32
  }
  func.func @transform_3(%arg0: i32) -> (i32, i32) {
    %c0_i32 = arith.constant 0 : i32
    %c0_i32_0 = arith.constant 0 : i32
    %c0_i32_1 = arith.constant 0 : i32
    return %c0_i32, %c0_i32_0 : i32, i32
  }
  func.func @transform_4(%arg0: i32) -> (i32, i32) {
    %c0_i32 = arith.constant 0 : i32
    %c0_i32_0 = arith.constant 0 : i32
    %c0_i32_1 = arith.constant 0 : i32
    return %c0_i32, %c0_i32_0 : i32, i32
  }
  func.func @transform_5(%arg0: i32) -> (i32, i32) {
    %c0_i32 = arith.constant 0 : i32
    %c0_i32_0 = arith.constant 0 : i32
    %c0_i32_1 = arith.constant 0 : i32
    return %c0_i32, %c0_i32_0 : i32, i32
  }
  func.func @transform_6(%arg0: i32) -> (i32, i32) {
    %c0_i32 = arith.constant 0 : i32
    %c0_i32_0 = arith.constant 0 : i32
    %c0_i32_1 = arith.constant 0 : i32
    return %c0_i32, %c0_i32_0 : i32, i32
  }
  func.func @transform_7(%arg0: i32) -> (i32, i32) {
    %c0_i32 = arith.constant 0 : i32
    %c0_i32_0 = arith.constant 0 : i32
    %c0_i32_1 = arith.constant 0 : i32
    return %c0_i32, %c0_i32_0 : i32, i32
  }
  func.func @transform_8(%arg0: i32) -> (i32, i32) {
    %c0_i32 = arith.constant 0 : i32
    %c0_i32_0 = arith.constant 0 : i32
    %c0_i32_1 = arith.constant 0 : i32
    return %c0_i32, %c0_i32_0 : i32, i32
  }
  func.func @transform_9(%arg0: i32) -> (i32, i32) {
    %c0_i32 = arith.constant 0 : i32
    %c0_i32_0 = arith.constant 0 : i32
    %c0_i32_1 = arith.constant 0 : i32
    return %c0_i32, %c0_i32_0 : i32, i32
  }
  func.func @transform_10(%arg0: i32) -> (i32, i32) {
    %c0_i32 = arith.constant 0 : i32
    %c0_i32_0 = arith.constant 0 : i32
    %c0_i32_1 = arith.constant 0 : i32
    return %c0_i32, %c0_i32_0 : i32, i32
  }
  func.func @transform_11(%arg0: i32) -> (i32, i32) {
    %c0_i32 = arith.constant 0 : i32
    %c0_i32_0 = arith.constant 0 : i32
    %c0_i32_1 = arith.constant 0 : i32
    return %c0_i32, %c0_i32_0 : i32, i32
  }
  func.func @transform_12(%arg0: i32) -> (i32, i32) {
    %c0_i32 = arith.constant 0 : i32
    %c0_i32_0 = arith.constant 0 : i32
    return %arg0, %c0_i32 : i32, i32
  }
}

module attributes {stable_mosaic.version = 11 : i64} {
  func.func @_transformer_block_kernel(%arg0: i32, %arg1: memref<16x32xf32, #tpu.memory_space<vmem>>, %arg2: memref<8x8xf32, #tpu.memory_space<vmem>>, %arg3: memref<32x96xf32, #tpu.memory_space<vmem>>, %arg4: memref<32x32xf32, #tpu.memory_space<vmem>>, %arg5: memref<1x32xf32, #tpu.memory_space<vmem>>, %arg6: memref<1x32xf32, #tpu.memory_space<vmem>>, %arg7: memref<32x64xf32, #tpu.memory_space<vmem>>, %arg8: memref<1x64xf32, #tpu.memory_space<vmem>>, %arg9: memref<64x32xf32, #tpu.memory_space<vmem>>, %arg10: memref<1x32xf32, #tpu.memory_space<vmem>>, %arg11: memref<1x32xf32, #tpu.memory_space<vmem>>, %arg12: memref<1x32xf32, #tpu.memory_space<vmem>>, %arg13: memref<16x32xf32, #tpu.memory_space<vmem>>, %arg14: memref<16x32xf32, #tpu.memory_space<vmem>>) attributes {dimension_semantics = [#tpu.dimension_semantics<parallel>], iteration_bounds = array<i64: 1>, scalar_prefetch = 0 : i64, scratch_operands = 1 : i64, tpu.core_type = #tpu.core_type<tc>, window_params = [{transform_indices = @transform_0, window_bounds = array<i64: 16, 32>}, {pipeline_mode = #tpu.pipeline_mode<synchronous>, transform_indices = @transform_1, window_bounds = array<i64: 8, 8>}, {pipeline_mode = #tpu.pipeline_mode<synchronous>, transform_indices = @transform_2, window_bounds = array<i64: 32, 96>}, {pipeline_mode = #tpu.pipeline_mode<synchronous>, transform_indices = @transform_3, window_bounds = array<i64: 32, 32>}, {pipeline_mode = #tpu.pipeline_mode<synchronous>, transform_indices = @transform_4, window_bounds = array<i64: 1, 32>}, {pipeline_mode = #tpu.pipeline_mode<synchronous>, transform_indices = @transform_5, window_bounds = array<i64: 1, 32>}, {pipeline_mode = #tpu.pipeline_mode<synchronous>, transform_indices = @transform_6, window_bounds = array<i64: 32, 64>}, {pipeline_mode = #tpu.pipeline_mode<synchronous>, transform_indices = @transform_7, window_bounds = array<i64: 1, 64>}, {pipeline_mode = #tpu.pipeline_mode<synchronous>, transform_indices = @transform_8, window_bounds = array<i64: 64, 32>}, {pipeline_mode = #tpu.pipeline_mode<synchronous>, transform_indices = @transform_9, window_bounds = array<i64: 1, 32>}, {pipeline_mode = #tpu.pipeline_mode<synchronous>, transform_indices = @transform_10, window_bounds = array<i64: 1, 32>}, {pipeline_mode = #tpu.pipeline_mode<synchronous>, transform_indices = @transform_11, window_bounds = array<i64: 1, 32>}, {transform_indices = @transform_12, window_bounds = array<i64: 16, 32>}]} {
    %c0 = arith.constant 0 : index
    %c0_0 = arith.constant 0 : index
    %0 = vector.load %arg1[%c0, %c0_0] : memref<16x32xf32, #tpu.memory_space<vmem>>, vector<16x32xf32>
    %c0_1 = arith.constant 0 : index
    %c0_2 = arith.constant 0 : index
    %1 = vector.load %arg2[%c0_1, %c0_2] : memref<8x8xf32, #tpu.memory_space<vmem>>, vector<8x8xf32>
    %c0_3 = arith.constant 0 : index
    %c0_4 = arith.constant 0 : index
    %2 = vector.load %arg3[%c0_3, %c0_4] : memref<32x96xf32, #tpu.memory_space<vmem>>, vector<32x96xf32>
    %cst = arith.constant dense<0.000000e+00> : vector<16x96xf32>
    %3 = tpu.matmul %0, %2, %cst {dimension_numbers = #tpu.dot_dimension_numbers<[1], [0], [0], [1], [0, 0, 1, 1], [], []>} : vector<16x32xf32>, vector<32x96xf32>, vector<16x96xf32> -> vector<16x96xf32>
    %4 = vector.extract_strided_slice %3 {offsets = [0, 0], sizes = [8, 32], strides = [1, 1]} : vector<16x96xf32> to vector<8x32xf32>
    %5 = vector.extract_strided_slice %3 {offsets = [0, 32], sizes = [8, 32], strides = [1, 1]} : vector<16x96xf32> to vector<8x32xf32>
    %6 = vector.extract_strided_slice %3 {offsets = [0, 64], sizes = [8, 32], strides = [1, 1]} : vector<16x96xf32> to vector<8x32xf32>
    %7 = vector.extract_strided_slice %4 {offsets = [0, 0], sizes = [8, 8], strides = [1, 1]} : vector<8x32xf32> to vector<8x8xf32>
    %8 = vector.extract_strided_slice %5 {offsets = [0, 0], sizes = [8, 8], strides = [1, 1]} : vector<8x32xf32> to vector<8x8xf32>
    %cst_5 = arith.constant dense<0.000000e+00> : vector<8x8xf32>
    %9 = tpu.matmul %7, %8, %cst_5 {dimension_numbers = #tpu.dot_dimension_numbers<[1], [1], [0], [0], [0, 0, 1, 0], [], []>} : vector<8x8xf32>, vector<8x8xf32>, vector<8x8xf32> -> vector<8x8xf32>
    %10 = arith.addf %9, %1 : vector<8x8xf32>
    %cst_6 = arith.constant dense<0xFF800000> : vector<8xf32>
    %11 = vector.multi_reduction <maximumf>, %10, %cst_6 [1] : vector<8x8xf32> to vector<8xf32>
    %12 = vector.shape_cast %11 : vector<8xf32> to vector<8x1xf32>
    %13 = vector.broadcast %12 : vector<8x1xf32> to vector<8x8xf32>
    %14 = arith.subf %10, %13 : vector<8x8xf32>
    %15 = math.exp %14 : vector<8x8xf32>
    %cst_7 = arith.constant dense<0.000000e+00> : vector<8xf32>
    %16 = vector.multi_reduction <add>, %15, %cst_7 [1] : vector<8x8xf32> to vector<8xf32>
    %17 = vector.shape_cast %16 : vector<8xf32> to vector<8x1xf32>
    %cst_8 = arith.constant 1.000000e+00 : f32
    %18 = vector.broadcast %cst_8 : f32 to vector<8x1xf32>
    %19 = arith.divf %18, %17 : vector<8x1xf32>
    %20 = arith.mulf %17, %19 : vector<8x1xf32>
    %21 = vector.extract_strided_slice %6 {offsets = [0, 0], sizes = [8, 8], strides = [1, 1]} : vector<8x32xf32> to vector<8x8xf32>
    %22 = vector.broadcast %20 : vector<8x1xf32> to vector<8x8xf32>
    %23 = arith.mulf %22, %21 : vector<8x8xf32>
    %24 = vector.shape_cast %23 : vector<8x8xf32> to vector<2x32xf32>
    %c0_9 = arith.constant 0 : index
    %c0_10 = arith.constant 0 : index
    %25 = vector.load %arg14[%c0_9, %c0_10] : memref<16x32xf32, #tpu.memory_space<vmem>>, vector<2x32xf32>
    tpu.vector_store %arg14[%c0_9, %c0_10], %24 {strides = array<i32>} : memref<16x32xf32, #tpu.memory_space<vmem>>, vector<2x32xf32>,
    %26 = vector.extract_strided_slice %4 {offsets = [0, 8], sizes = [8, 8], strides = [1, 1]} : vector<8x32xf32> to vector<8x8xf32>
    %27 = vector.extract_strided_slice %5 {offsets = [0, 8], sizes = [8, 8], strides = [1, 1]} : vector<8x32xf32> to vector<8x8xf32>
    %cst_11 = arith.constant dense<0.000000e+00> : vector<8x8xf32>
    %28 = tpu.matmul %26, %27, %cst_11 {dimension_numbers = #tpu.dot_dimension_numbers<[1], [1], [0], [0], [0, 0, 1, 0], [], []>} : vector<8x8xf32>, vector<8x8xf32>, vector<8x8xf32> -> vector<8x8xf32>
    %29 = arith.addf %28, %1 : vector<8x8xf32>
    %cst_12 = arith.constant dense<0xFF800000> : vector<8xf32>
    %30 = vector.multi_reduction <maximumf>, %29, %cst_12 [1] : vector<8x8xf32> to vector<8xf32>
    %31 = vector.shape_cast %30 : vector<8xf32> to vector<8x1xf32>
    %32 = vector.broadcast %31 : vector<8x1xf32> to vector<8x8xf32>
    %33 = arith.subf %29, %32 : vector<8x8xf32>
    %34 = math.exp %33 : vector<8x8xf32>
    %cst_13 = arith.constant dense<0.000000e+00> : vector<8xf32>
    %35 = vector.multi_reduction <add>, %34, %cst_13 [1] : vector<8x8xf32> to vector<8xf32>
    %36 = vector.shape_cast %35 : vector<8xf32> to vector<8x1xf32>
    %cst_14 = arith.constant 1.000000e+00 : f32
    %37 = vector.broadcast %cst_14 : f32 to vector<8x1xf32>
    %38 = arith.divf %37, %36 : vector<8x1xf32>
    %39 = arith.mulf %36, %38 : vector<8x1xf32>
    %40 = vector.extract_strided_slice %6 {offsets = [0, 8], sizes = [8, 8], strides = [1, 1]} : vector<8x32xf32> to vector<8x8xf32>
    %41 = vector.broadcast %39 : vector<8x1xf32> to vector<8x8xf32>
    %42 = arith.mulf %41, %40 : vector<8x8xf32>
    %43 = vector.shape_cast %42 : vector<8x8xf32> to vector<2x32xf32>
    %c2 = arith.constant 2 : index
    %c0_15 = arith.constant 0 : index
    %44 = vector.load %arg14[%c2, %c0_15] : memref<16x32xf32, #tpu.memory_space<vmem>>, vector<2x32xf32>
    tpu.vector_store %arg14[%c2, %c0_15], %43 {strides = array<i32>} : memref<16x32xf32, #tpu.memory_space<vmem>>, vector<2x32xf32>,
    %45 = vector.extract_strided_slice %4 {offsets = [0, 16], sizes = [8, 8], strides = [1, 1]} : vector<8x32xf32> to vector<8x8xf32>
    %46 = vector.extract_strided_slice %5 {offsets = [0, 16], sizes = [8, 8], strides = [1, 1]} : vector<8x32xf32> to vector<8x8xf32>
    %cst_16 = arith.constant dense<0.000000e+00> : vector<8x8xf32>
    %47 = tpu.matmul %45, %46, %cst_16 {dimension_numbers = #tpu.dot_dimension_numbers<[1], [1], [0], [0], [0, 0, 1, 0], [], []>} : vector<8x8xf32>, vector<8x8xf32>, vector<8x8xf32> -> vector<8x8xf32>
    %48 = arith.addf %47, %1 : vector<8x8xf32>
    %cst_17 = arith.constant dense<0xFF800000> : vector<8xf32>
    %49 = vector.multi_reduction <maximumf>, %48, %cst_17 [1] : vector<8x8xf32> to vector<8xf32>
    %50 = vector.shape_cast %49 : vector<8xf32> to vector<8x1xf32>
    %51 = vector.broadcast %50 : vector<8x1xf32> to vector<8x8xf32>
    %52 = arith.subf %48, %51 : vector<8x8xf32>
    %53 = math.exp %52 : vector<8x8xf32>
    %cst_18 = arith.constant dense<0.000000e+00> : vector<8xf32>
    %54 = vector.multi_reduction <add>, %53, %cst_18 [1] : vector<8x8xf32> to vector<8xf32>
    %55 = vector.shape_cast %54 : vector<8xf32> to vector<8x1xf32>
    %cst_19 = arith.constant 1.000000e+00 : f32
    %56 = vector.broadcast %cst_19 : f32 to vector<8x1xf32>
    %57 = arith.divf %56, %55 : vector<8x1xf32>
    %58 = arith.mulf %55, %57 : vector<8x1xf32>
    %59 = vector.extract_strided_slice %6 {offsets = [0, 16], sizes = [8, 8], strides = [1, 1]} : vector<8x32xf32> to vector<8x8xf32>
    %60 = vector.broadcast %58 : vector<8x1xf32> to vector<8x8xf32>
    %61 = arith.mulf %60, %59 : vector<8x8xf32>
    %62 = vector.shape_cast %61 : vector<8x8xf32> to vector<2x32xf32>
    %c4 = arith.constant 4 : index
    %c0_20 = arith.constant 0 : index
    %63 = vector.load %arg14[%c4, %c0_20] : memref<16x32xf32, #tpu.memory_space<vmem>>, vector<2x32xf32>
    tpu.vector_store %arg14[%c4, %c0_20], %62 {strides = array<i32>} : memref<16x32xf32, #tpu.memory_space<vmem>>, vector<2x32xf32>,
    %64 = vector.extract_strided_slice %4 {offsets = [0, 24], sizes = [8, 8], strides = [1, 1]} : vector<8x32xf32> to vector<8x8xf32>
    %65 = vector.extract_strided_slice %5 {offsets = [0, 24], sizes = [8, 8], strides = [1, 1]} : vector<8x32xf32> to vector<8x8xf32>
    %cst_21 = arith.constant dense<0.000000e+00> : vector<8x8xf32>
    %66 = tpu.matmul %64, %65, %cst_21 {dimension_numbers = #tpu.dot_dimension_numbers<[1], [1], [0], [0], [0, 0, 1, 0], [], []>} : vector<8x8xf32>, vector<8x8xf32>, vector<8x8xf32> -> vector<8x8xf32>
    %67 = arith.addf %66, %1 : vector<8x8xf32>
    %cst_22 = arith.constant dense<0xFF800000> : vector<8xf32>
    %68 = vector.multi_reduction <maximumf>, %67, %cst_22 [1] : vector<8x8xf32> to vector<8xf32>
    %69 = vector.shape_cast %68 : vector<8xf32> to vector<8x1xf32>
    %70 = vector.broadcast %69 : vector<8x1xf32> to vector<8x8xf32>
    %71 = arith.subf %67, %70 : vector<8x8xf32>
    %72 = math.exp %71 : vector<8x8xf32>
    %cst_23 = arith.constant dense<0.000000e+00> : vector<8xf32>
    %73 = vector.multi_reduction <add>, %72, %cst_23 [1] : vector<8x8xf32> to vector<8xf32>
    %74 = vector.shape_cast %73 : vector<8xf32> to vector<8x1xf32>
    %cst_24 = arith.constant 1.000000e+00 : f32
    %75 = vector.broadcast %cst_24 : f32 to vector<8x1xf32>
    %76 = arith.divf %75, %74 : vector<8x1xf32>
    %77 = arith.mulf %74, %76 : vector<8x1xf32>
    %78 = vector.extract_strided_slice %6 {offsets = [0, 24], sizes = [8, 8], strides = [1, 1]} : vector<8x32xf32> to vector<8x8xf32>
    %79 = vector.broadcast %77 : vector<8x1xf32> to vector<8x8xf32>
    %80 = arith.mulf %79, %78 : vector<8x8xf32>
    %81 = vector.shape_cast %80 : vector<8x8xf32> to vector<2x32xf32>
    %c6 = arith.constant 6 : index
    %c0_25 = arith.constant 0 : index
    %82 = vector.load %arg14[%c6, %c0_25] : memref<16x32xf32, #tpu.memory_space<vmem>>, vector<2x32xf32>
    tpu.vector_store %arg14[%c6, %c0_25], %81 {strides = array<i32>} : memref<16x32xf32, #tpu.memory_space<vmem>>, vector<2x32xf32>,
    %83 = vector.extract_strided_slice %3 {offsets = [8, 0], sizes = [8, 32], strides = [1, 1]} : vector<16x96xf32> to vector<8x32xf32>
    %84 = vector.extract_strided_slice %3 {offsets = [8, 32], sizes = [8, 32], strides = [1, 1]} : vector<16x96xf32> to vector<8x32xf32>
    %85 = vector.extract_strided_slice %3 {offsets = [8, 64], sizes = [8, 32], strides = [1, 1]} : vector<16x96xf32> to vector<8x32xf32>
    %86 = vector.extract_strided_slice %83 {offsets = [0, 0], sizes = [8, 8], strides = [1, 1]} : vector<8x32xf32> to vector<8x8xf32>
    %87 = vector.extract_strided_slice %84 {offsets = [0, 0], sizes = [8, 8], strides = [1, 1]} : vector<8x32xf32> to vector<8x8xf32>
    %cst_26 = arith.constant dense<0.000000e+00> : vector<8x8xf32>
    %88 = tpu.matmul %86, %87, %cst_26 {dimension_numbers = #tpu.dot_dimension_numbers<[1], [1], [0], [0], [0, 0, 1, 0], [], []>} : vector<8x8xf32>, vector<8x8xf32>, vector<8x8xf32> -> vector<8x8xf32>
    %89 = arith.addf %88, %1 : vector<8x8xf32>
    %cst_27 = arith.constant dense<0xFF800000> : vector<8xf32>
    %90 = vector.multi_reduction <maximumf>, %89, %cst_27 [1] : vector<8x8xf32> to vector<8xf32>
    %91 = vector.shape_cast %90 : vector<8xf32> to vector<8x1xf32>
    %92 = vector.broadcast %91 : vector<8x1xf32> to vector<8x8xf32>
    %93 = arith.subf %89, %92 : vector<8x8xf32>
    %94 = math.exp %93 : vector<8x8xf32>
    %cst_28 = arith.constant dense<0.000000e+00> : vector<8xf32>
    %95 = vector.multi_reduction <add>, %94, %cst_28 [1] : vector<8x8xf32> to vector<8xf32>
    %96 = vector.shape_cast %95 : vector<8xf32> to vector<8x1xf32>
    %cst_29 = arith.constant 1.000000e+00 : f32
    %97 = vector.broadcast %cst_29 : f32 to vector<8x1xf32>
    %98 = arith.divf %97, %96 : vector<8x1xf32>
    %99 = arith.mulf %96, %98 : vector<8x1xf32>
    %100 = vector.extract_strided_slice %85 {offsets = [0, 0], sizes = [8, 8], strides = [1, 1]} : vector<8x32xf32> to vector<8x8xf32>
    %101 = vector.broadcast %99 : vector<8x1xf32> to vector<8x8xf32>
    %102 = arith.mulf %101, %100 : vector<8x8xf32>
    %103 = vector.shape_cast %102 : vector<8x8xf32> to vector<2x32xf32>
    %c8 = arith.constant 8 : index
    %c0_30 = arith.constant 0 : index
    %104 = vector.load %arg14[%c8, %c0_30] : memref<16x32xf32, #tpu.memory_space<vmem>>, vector<2x32xf32>
    tpu.vector_store %arg14[%c8, %c0_30], %103 {strides = array<i32>} : memref<16x32xf32, #tpu.memory_space<vmem>>, vector<2x32xf32>,
    %105 = vector.extract_strided_slice %83 {offsets = [0, 8], sizes = [8, 8], strides = [1, 1]} : vector<8x32xf32> to vector<8x8xf32>
    %106 = vector.extract_strided_slice %84 {offsets = [0, 8], sizes = [8, 8], strides = [1, 1]} : vector<8x32xf32> to vector<8x8xf32>
    %cst_31 = arith.constant dense<0.000000e+00> : vector<8x8xf32>
    %107 = tpu.matmul %105, %106, %cst_31 {dimension_numbers = #tpu.dot_dimension_numbers<[1], [1], [0], [0], [0, 0, 1, 0], [], []>} : vector<8x8xf32>, vector<8x8xf32>, vector<8x8xf32> -> vector<8x8xf32>
    %108 = arith.addf %107, %1 : vector<8x8xf32>
    %cst_32 = arith.constant dense<0xFF800000> : vector<8xf32>
    %109 = vector.multi_reduction <maximumf>, %108, %cst_32 [1] : vector<8x8xf32> to vector<8xf32>
    %110 = vector.shape_cast %109 : vector<8xf32> to vector<8x1xf32>
    %111 = vector.broadcast %110 : vector<8x1xf32> to vector<8x8xf32>
    %112 = arith.subf %108, %111 : vector<8x8xf32>
    %113 = math.exp %112 : vector<8x8xf32>
    %cst_33 = arith.constant dense<0.000000e+00> : vector<8xf32>
    %114 = vector.multi_reduction <add>, %113, %cst_33 [1] : vector<8x8xf32> to vector<8xf32>
    %115 = vector.shape_cast %114 : vector<8xf32> to vector<8x1xf32>
    %cst_34 = arith.constant 1.000000e+00 : f32
    %116 = vector.broadcast %cst_34 : f32 to vector<8x1xf32>
    %117 = arith.divf %116, %115 : vector<8x1xf32>
    %118 = arith.mulf %115, %117 : vector<8x1xf32>
    %119 = vector.extract_strided_slice %85 {offsets = [0, 8], sizes = [8, 8], strides = [1, 1]} : vector<8x32xf32> to vector<8x8xf32>
    %120 = vector.broadcast %118 : vector<8x1xf32> to vector<8x8xf32>
    %121 = arith.mulf %120, %119 : vector<8x8xf32>
    %122 = vector.shape_cast %121 : vector<8x8xf32> to vector<2x32xf32>
    %c10 = arith.constant 10 : index
    %c0_35 = arith.constant 0 : index
    %123 = vector.load %arg14[%c10, %c0_35] : memref<16x32xf32, #tpu.memory_space<vmem>>, vector<2x32xf32>
    tpu.vector_store %arg14[%c10, %c0_35], %122 {strides = array<i32>} : memref<16x32xf32, #tpu.memory_space<vmem>>, vector<2x32xf32>,
    %124 = vector.extract_strided_slice %83 {offsets = [0, 16], sizes = [8, 8], strides = [1, 1]} : vector<8x32xf32> to vector<8x8xf32>
    %125 = vector.extract_strided_slice %84 {offsets = [0, 16], sizes = [8, 8], strides = [1, 1]} : vector<8x32xf32> to vector<8x8xf32>
    %cst_36 = arith.constant dense<0.000000e+00> : vector<8x8xf32>
    %126 = tpu.matmul %124, %125, %cst_36 {dimension_numbers = #tpu.dot_dimension_numbers<[1], [1], [0], [0], [0, 0, 1, 0], [], []>} : vector<8x8xf32>, vector<8x8xf32>, vector<8x8xf32> -> vector<8x8xf32>
    %127 = arith.addf %126, %1 : vector<8x8xf32>
    %cst_37 = arith.constant dense<0xFF800000> : vector<8xf32>
    %128 = vector.multi_reduction <maximumf>, %127, %cst_37 [1] : vector<8x8xf32> to vector<8xf32>
    %129 = vector.shape_cast %128 : vector<8xf32> to vector<8x1xf32>
    %130 = vector.broadcast %129 : vector<8x1xf32> to vector<8x8xf32>
    %131 = arith.subf %127, %130 : vector<8x8xf32>
    %132 = math.exp %131 : vector<8x8xf32>
    %cst_38 = arith.constant dense<0.000000e+00> : vector<8xf32>
    %133 = vector.multi_reduction <add>, %132, %cst_38 [1] : vector<8x8xf32> to vector<8xf32>
    %134 = vector.shape_cast %133 : vector<8xf32> to vector<8x1xf32>
    %cst_39 = arith.constant 1.000000e+00 : f32
    %135 = vector.broadcast %cst_39 : f32 to vector<8x1xf32>
    %136 = arith.divf %135, %134 : vector<8x1xf32>
    %137 = arith.mulf %134, %136 : vector<8x1xf32>
    %138 = vector.extract_strided_slice %85 {offsets = [0, 16], sizes = [8, 8], strides = [1, 1]} : vector<8x32xf32> to vector<8x8xf32>
    %139 = vector.broadcast %137 : vector<8x1xf32> to vector<8x8xf32>
    %140 = arith.mulf %139, %138 : vector<8x8xf32>
    %141 = vector.shape_cast %140 : vector<8x8xf32> to vector<2x32xf32>
    %c12 = arith.constant 12 : index
    %c0_40 = arith.constant 0 : index
    %142 = vector.load %arg14[%c12, %c0_40] : memref<16x32xf32, #tpu.memory_space<vmem>>, vector<2x32xf32>
    tpu.vector_store %arg14[%c12, %c0_40], %141 {strides = array<i32>} : memref<16x32xf32, #tpu.memory_space<vmem>>, vector<2x32xf32>,
    %143 = vector.extract_strided_slice %83 {offsets = [0, 24], sizes = [8, 8], strides = [1, 1]} : vector<8x32xf32> to vector<8x8xf32>
    %144 = vector.extract_strided_slice %84 {offsets = [0, 24], sizes = [8, 8], strides = [1, 1]} : vector<8x32xf32> to vector<8x8xf32>
    %cst_41 = arith.constant dense<0.000000e+00> : vector<8x8xf32>
    %145 = tpu.matmul %143, %144, %cst_41 {dimension_numbers = #tpu.dot_dimension_numbers<[1], [1], [0], [0], [0, 0, 1, 0], [], []>} : vector<8x8xf32>, vector<8x8xf32>, vector<8x8xf32> -> vector<8x8xf32>
    %146 = arith.addf %145, %1 : vector<8x8xf32>
    %cst_42 = arith.constant dense<0xFF800000> : vector<8xf32>
    %147 = vector.multi_reduction <maximumf>, %146, %cst_42 [1] : vector<8x8xf32> to vector<8xf32>
    %148 = vector.shape_cast %147 : vector<8xf32> to vector<8x1xf32>
    %149 = vector.broadcast %148 : vector<8x1xf32> to vector<8x8xf32>
    %150 = arith.subf %146, %149 : vector<8x8xf32>
    %151 = math.exp %150 : vector<8x8xf32>
    %cst_43 = arith.constant dense<0.000000e+00> : vector<8xf32>
    %152 = vector.multi_reduction <add>, %151, %cst_43 [1] : vector<8x8xf32> to vector<8xf32>
    %153 = vector.shape_cast %152 : vector<8xf32> to vector<8x1xf32>
    %cst_44 = arith.constant 1.000000e+00 : f32
    %154 = vector.broadcast %cst_44 : f32 to vector<8x1xf32>
    %155 = arith.divf %154, %153 : vector<8x1xf32>
    %156 = arith.mulf %153, %155 : vector<8x1xf32>
    %157 = vector.extract_strided_slice %85 {offsets = [0, 24], sizes = [8, 8], strides = [1, 1]} : vector<8x32xf32> to vector<8x8xf32>
    %158 = vector.broadcast %156 : vector<8x1xf32> to vector<8x8xf32>
    %159 = arith.mulf %158, %157 : vector<8x8xf32>
    %160 = vector.shape_cast %159 : vector<8x8xf32> to vector<2x32xf32>
    %c14 = arith.constant 14 : index
    %c0_45 = arith.constant 0 : index
    %161 = vector.load %arg14[%c14, %c0_45] : memref<16x32xf32, #tpu.memory_space<vmem>>, vector<2x32xf32>
    tpu.vector_store %arg14[%c14, %c0_45], %160 {strides = array<i32>} : memref<16x32xf32, #tpu.memory_space<vmem>>, vector<2x32xf32>,
    %c0_46 = arith.constant 0 : index
    %c0_47 = arith.constant 0 : index
    %162 = vector.load %arg14[%c0_46, %c0_47] : memref<16x32xf32, #tpu.memory_space<vmem>>, vector<16x32xf32>
    %c0_48 = arith.constant 0 : index
    %c0_49 = arith.constant 0 : index
    %163 = vector.load %arg4[%c0_48, %c0_49] : memref<32x32xf32, #tpu.memory_space<vmem>>, vector<32x32xf32>
    %cst_50 = arith.constant dense<0.000000e+00> : vector<16x32xf32>
    %164 = tpu.matmul %162, %163, %cst_50 {dimension_numbers = #tpu.dot_dimension_numbers<[1], [0], [0], [1], [0, 0, 1, 1], [], []>} : vector<16x32xf32>, vector<32x32xf32>, vector<16x32xf32> -> vector<16x32xf32>
    %165 = arith.addf %0, %164 : vector<16x32xf32>
    %cst_51 = arith.constant dense<0.000000e+00> : vector<16xf32>
    %166 = vector.multi_reduction <add>, %165, %cst_51 [1] : vector<16x32xf32> to vector<16xf32>
    %167 = vector.shape_cast %166 : vector<16xf32> to vector<16x1xf32>
    %cst_52 = arith.constant 3.200000e+01 : f32
    %168 = vector.broadcast %cst_52 : f32 to vector<16x1xf32>
    %169 = arith.divf %167, %168 : vector<16x1xf32>
    %170 = vector.broadcast %169 : vector<16x1xf32> to vector<16x32xf32>
    %171 = arith.subf %165, %170 : vector<16x32xf32>
    %172 = vector.broadcast %169 : vector<16x1xf32> to vector<16x32xf32>
    %173 = arith.subf %165, %172 : vector<16x32xf32>
    %174 = arith.mulf %171, %173 : vector<16x32xf32>
    %cst_53 = arith.constant dense<0.000000e+00> : vector<16xf32>
    %175 = vector.multi_reduction <add>, %174, %cst_53 [1] : vector<16x32xf32> to vector<16xf32>
    %176 = vector.shape_cast %175 : vector<16xf32> to vector<16x1xf32>
    %cst_54 = arith.constant 3.200000e+01 : f32
    %177 = vector.broadcast %cst_54 : f32 to vector<16x1xf32>
    %178 = arith.divf %176, %177 : vector<16x1xf32>
    %179 = vector.broadcast %169 : vector<16x1xf32> to vector<16x32xf32>
    %180 = arith.subf %165, %179 : vector<16x32xf32>
    %cst_55 = arith.constant 9.99999974E-6 : f32
    %181 = vector.broadcast %cst_55 : f32 to vector<16x1xf32>
    %182 = arith.addf %178, %181 : vector<16x1xf32>
    %183 = math.rsqrt %182 : vector<16x1xf32>
    %184 = vector.broadcast %183 : vector<16x1xf32> to vector<16x32xf32>
    %185 = arith.mulf %180, %184 : vector<16x32xf32>
    %c0_56 = arith.constant 0 : index
    %c0_57 = arith.constant 0 : index
    %186 = vector.load %arg5[%c0_56, %c0_57] : memref<1x32xf32, #tpu.memory_space<vmem>>, vector<1x32xf32>
    %187 = vector.broadcast %186 : vector<1x32xf32> to vector<16x32xf32>
    %188 = arith.mulf %185, %187 : vector<16x32xf32>
    %c0_58 = arith.constant 0 : index
    %c0_59 = arith.constant 0 : index
    %189 = vector.load %arg6[%c0_58, %c0_59] : memref<1x32xf32, #tpu.memory_space<vmem>>, vector<1x32xf32>
    %190 = vector.broadcast %189 : vector<1x32xf32> to vector<16x32xf32>
    %191 = arith.addf %188, %190 : vector<16x32xf32>
    %c0_60 = arith.constant 0 : index
    %c0_61 = arith.constant 0 : index
    %192 = vector.load %arg7[%c0_60, %c0_61] : memref<32x64xf32, #tpu.memory_space<vmem>>, vector<32x64xf32>
    %cst_62 = arith.constant dense<0.000000e+00> : vector<16x64xf32>
    %193 = tpu.matmul %191, %192, %cst_62 {dimension_numbers = #tpu.dot_dimension_numbers<[1], [0], [0], [1], [0, 0, 1, 1], [], []>} : vector<16x32xf32>, vector<32x64xf32>, vector<16x64xf32> -> vector<16x64xf32>
    %c0_63 = arith.constant 0 : index
    %c0_64 = arith.constant 0 : index
    %194 = vector.load %arg8[%c0_63, %c0_64] : memref<1x64xf32, #tpu.memory_space<vmem>>, vector<1x64xf32>
    %195 = vector.broadcast %194 : vector<1x64xf32> to vector<16x64xf32>
    %196 = arith.addf %193, %195 : vector<16x64xf32>
    %cst_65 = arith.constant 0.000000e+00 : f32
    %197 = vector.broadcast %cst_65 : f32 to vector<16x64xf32>
    %198 = arith.maximumf %196, %197 : vector<16x64xf32>
    %c0_66 = arith.constant 0 : index
    %c0_67 = arith.constant 0 : index
    %199 = vector.load %arg9[%c0_66, %c0_67] : memref<64x32xf32, #tpu.memory_space<vmem>>, vector<64x32xf32>
    %cst_68 = arith.constant dense<0.000000e+00> : vector<16x32xf32>
    %200 = tpu.matmul %198, %199, %cst_68 {dimension_numbers = #tpu.dot_dimension_numbers<[1], [0], [0], [1], [0, 0, 1, 1], [], []>} : vector<16x64xf32>, vector<64x32xf32>, vector<16x32xf32> -> vector<16x32xf32>
    %c0_69 = arith.constant 0 : index
    %c0_70 = arith.constant 0 : index
    %201 = vector.load %arg10[%c0_69, %c0_70] : memref<1x32xf32, #tpu.memory_space<vmem>>, vector<1x32xf32>
    %202 = vector.broadcast %201 : vector<1x32xf32> to vector<16x32xf32>
    %203 = arith.addf %200, %202 : vector<16x32xf32>
    %204 = arith.addf %191, %203 : vector<16x32xf32>
    %cst_71 = arith.constant dense<0.000000e+00> : vector<16xf32>
    %205 = vector.multi_reduction <add>, %204, %cst_71 [1] : vector<16x32xf32> to vector<16xf32>
    %206 = vector.shape_cast %205 : vector<16xf32> to vector<16x1xf32>
    %cst_72 = arith.constant 3.200000e+01 : f32
    %207 = vector.broadcast %cst_72 : f32 to vector<16x1xf32>
    %208 = arith.divf %206, %207 : vector<16x1xf32>
    %209 = vector.broadcast %208 : vector<16x1xf32> to vector<16x32xf32>
    %210 = arith.subf %204, %209 : vector<16x32xf32>
    %211 = vector.broadcast %208 : vector<16x1xf32> to vector<16x32xf32>
    %212 = arith.subf %204, %211 : vector<16x32xf32>
    %213 = arith.mulf %210, %212 : vector<16x32xf32>
    %cst_73 = arith.constant dense<0.000000e+00> : vector<16xf32>
    %214 = vector.multi_reduction <add>, %213, %cst_73 [1] : vector<16x32xf32> to vector<16xf32>
    %215 = vector.shape_cast %214 : vector<16xf32> to vector<16x1xf32>
    %cst_74 = arith.constant 3.200000e+01 : f32
    %216 = vector.broadcast %cst_74 : f32 to vector<16x1xf32>
    %217 = arith.divf %215, %216 : vector<16x1xf32>
    %218 = vector.broadcast %208 : vector<16x1xf32> to vector<16x32xf32>
    %219 = arith.subf %204, %218 : vector<16x32xf32>
    %cst_75 = arith.constant 9.99999974E-6 : f32
    %220 = vector.broadcast %cst_75 : f32 to vector<16x1xf32>
    %221 = arith.addf %217, %220 : vector<16x1xf32>
    %222 = math.rsqrt %221 : vector<16x1xf32>
    %223 = vector.broadcast %222 : vector<16x1xf32> to vector<16x32xf32>
    %224 = arith.mulf %219, %223 : vector<16x32xf32>
    %c0_76 = arith.constant 0 : index
    %c0_77 = arith.constant 0 : index
    %225 = vector.load %arg11[%c0_76, %c0_77] : memref<1x32xf32, #tpu.memory_space<vmem>>, vector<1x32xf32>
    %226 = vector.broadcast %225 : vector<1x32xf32> to vector<16x32xf32>
    %227 = arith.mulf %224, %226 : vector<16x32xf32>
    %c0_78 = arith.constant 0 : index
    %c0_79 = arith.constant 0 : index
    %228 = vector.load %arg12[%c0_78, %c0_79] : memref<1x32xf32, #tpu.memory_space<vmem>>, vector<1x32xf32>
    %229 = vector.broadcast %228 : vector<1x32xf32> to vector<16x32xf32>
    %230 = arith.addf %227, %229 : vector<16x32xf32>
    %c0_80 = arith.constant 0 : index
    %c0_81 = arith.constant 0 : index
    %231 = vector.load %arg13[%c0_80, %c0_81] : memref<16x32xf32, #tpu.memory_space<vmem>>, vector<16x32xf32>
    tpu.vector_store %arg13[%c0_80, %c0_81], %230 {strides = array<i32>} : memref<16x32xf32, #tpu.memory_space<vmem>>, vector<16x32xf32>,
    return
  }
  func.func @transform_0(%arg0: i32) -> (i32, i32) {
    %c0_i32 = arith.constant 0 : i32
    %c0_i32_0 = arith.constant 0 : i32
    return %arg0, %c0_i32 : i32, i32
  }
  func.func @transform_1(%arg0: i32) -> (i32, i32) {
    %c0_i32 = arith.constant 0 : i32
    %c0_i32_0 = arith.constant 0 : i32
    %c0_i32_1 = arith.constant 0 : i32
    return %c0_i32, %c0_i32_0 : i32, i32
  }
  func.func @transform_2(%arg0: i32) -> (i32, i32) {
    %c0_i32 = arith.constant 0 : i32
    %c0_i32_0 = arith.constant 0 : i32
    %c0_i32_1 = arith.constant 0 : i32
    return %c0_i32, %c0_i32_0 : i32, i32
  }
  func.func @transform_3(%arg0: i32) -> (i32, i32) {
    %c0_i32 = arith.constant 0 : i32
    %c0_i32_0 = arith.constant 0 : i32
    %c0_i32_1 = arith.constant 0 : i32
    return %c0_i32, %c0_i32_0 : i32, i32
  }
  func.func @transform_4(%arg0: i32) -> (i32, i32) {
    %c0_i32 = arith.constant 0 : i32
    %c0_i32_0 = arith.constant 0 : i32
    %c0_i32_1 = arith.constant 0 : i32
    return %c0_i32, %c0_i32_0 : i32, i32
  }
  func.func @transform_5(%arg0: i32) -> (i32, i32) {
    %c0_i32 = arith.constant 0 : i32
    %c0_i32_0 = arith.constant 0 : i32
    %c0_i32_1 = arith.constant 0 : i32
    return %c0_i32, %c0_i32_0 : i32, i32
  }
  func.func @transform_6(%arg0: i32) -> (i32, i32) {
    %c0_i32 = arith.constant 0 : i32
    %c0_i32_0 = arith.constant 0 : i32
    %c0_i32_1 = arith.constant 0 : i32
    return %c0_i32, %c0_i32_0 : i32, i32
  }
  func.func @transform_7(%arg0: i32) -> (i32, i32) {
    %c0_i32 = arith.constant 0 : i32
    %c0_i32_0 = arith.constant 0 : i32
    %c0_i32_1 = arith.constant 0 : i32
    return %c0_i32, %c0_i32_0 : i32, i32
  }
  func.func @transform_8(%arg0: i32) -> (i32, i32) {
    %c0_i32 = arith.constant 0 : i32
    %c0_i32_0 = arith.constant 0 : i32
    %c0_i32_1 = arith.constant 0 : i32
    return %c0_i32, %c0_i32_0 : i32, i32
  }
  func.func @transform_9(%arg0: i32) -> (i32, i32) {
    %c0_i32 = arith.constant 0 : i32
    %c0_i32_0 = arith.constant 0 : i32
    %c0_i32_1 = arith.constant 0 : i32
    return %c0_i32, %c0_i32_0 : i32, i32
  }
  func.func @transform_10(%arg0: i32) -> (i32, i32) {
    %c0_i32 = arith.constant 0 : i32
    %c0_i32_0 = arith.constant 0 : i32
    %c0_i32_1 = arith.constant 0 : i32
    return %c0_i32, %c0_i32_0 : i32, i32
  }
  func.func @transform_11(%arg0: i32) -> (i32, i32) {
    %c0_i32 = arith.constant 0 : i32
    %c0_i32_0 = arith.constant 0 : i32
    %c0_i32_1 = arith.constant 0 : i32
    return %c0_i32, %c0_i32_0 : i32, i32
  }
  func.func @transform_12(%arg0: i32) -> (i32, i32) {
    %c0_i32 = arith.constant 0 : i32
    %c0_i32_0 = arith.constant 0 : i32
    return %arg0, %c0_i32 : i32, i32
  }
}

module attributes {stable_mosaic.version = 11 : i64} {
  func.func @_transformer_block_kernel(%arg0: i32, %arg1: memref<16x32xf32, #tpu.memory_space<vmem>>, %arg2: memref<8x8xf32, #tpu.memory_space<vmem>>, %arg3: memref<32x96xf32, #tpu.memory_space<vmem>>, %arg4: memref<32x32xf32, #tpu.memory_space<vmem>>, %arg5: memref<1x32xf32, #tpu.memory_space<vmem>>, %arg6: memref<1x32xf32, #tpu.memory_space<vmem>>, %arg7: memref<32x64xf32, #tpu.memory_space<vmem>>, %arg8: memref<1x64xf32, #tpu.memory_space<vmem>>, %arg9: memref<64x32xf32, #tpu.memory_space<vmem>>, %arg10: memref<1x32xf32, #tpu.memory_space<vmem>>, %arg11: memref<1x32xf32, #tpu.memory_space<vmem>>, %arg12: memref<1x32xf32, #tpu.memory_space<vmem>>, %arg13: memref<16x32xf32, #tpu.memory_space<vmem>>, %arg14: memref<64x8xf32, #tpu.memory_space<vmem>>) attributes {dimension_semantics = [#tpu.dimension_semantics<parallel>], iteration_bounds = array<i64: 1>, scalar_prefetch = 0 : i64, scratch_operands = 1 : i64, tpu.core_type = #tpu.core_type<tc>, window_params = [{transform_indices = @transform_0, window_bounds = array<i64: 16, 32>}, {pipeline_mode = #tpu.pipeline_mode<synchronous>, transform_indices = @transform_1, window_bounds = array<i64: 8, 8>}, {pipeline_mode = #tpu.pipeline_mode<synchronous>, transform_indices = @transform_2, window_bounds = array<i64: 32, 96>}, {pipeline_mode = #tpu.pipeline_mode<synchronous>, transform_indices = @transform_3, window_bounds = array<i64: 32, 32>}, {pipeline_mode = #tpu.pipeline_mode<synchronous>, transform_indices = @transform_4, window_bounds = array<i64: 1, 32>}, {pipeline_mode = #tpu.pipeline_mode<synchronous>, transform_indices = @transform_5, window_bounds = array<i64: 1, 32>}, {pipeline_mode = #tpu.pipeline_mode<synchronous>, transform_indices = @transform_6, window_bounds = array<i64: 32, 64>}, {pipeline_mode = #tpu.pipeline_mode<synchronous>, transform_indices = @transform_7, window_bounds = array<i64: 1, 64>}, {pipeline_mode = #tpu.pipeline_mode<synchronous>, transform_indices = @transform_8, window_bounds = array<i64: 64, 32>}, {pipeline_mode = #tpu.pipeline_mode<synchronous>, transform_indices = @transform_9, window_bounds = array<i64: 1, 32>}, {pipeline_mode = #tpu.pipeline_mode<synchronous>, transform_indices = @transform_10, window_bounds = array<i64: 1, 32>}, {pipeline_mode = #tpu.pipeline_mode<synchronous>, transform_indices = @transform_11, window_bounds = array<i64: 1, 32>}, {transform_indices = @transform_12, window_bounds = array<i64: 16, 32>}]} {
    %c0 = arith.constant 0 : index
    %c0_0 = arith.constant 0 : index
    %0 = vector.load %arg1[%c0, %c0_0] : memref<16x32xf32, #tpu.memory_space<vmem>>, vector<16x32xf32>
    %c0_1 = arith.constant 0 : index
    %c0_2 = arith.constant 0 : index
    %1 = vector.load %arg2[%c0_1, %c0_2] : memref<8x8xf32, #tpu.memory_space<vmem>>, vector<8x8xf32>
    %c0_3 = arith.constant 0 : index
    %c0_4 = arith.constant 0 : index
    %2 = vector.load %arg3[%c0_3, %c0_4] : memref<32x96xf32, #tpu.memory_space<vmem>>, vector<32x96xf32>
    %cst = arith.constant dense<0.000000e+00> : vector<16x96xf32>
    %3 = tpu.matmul %0, %2, %cst {dimension_numbers = #tpu.dot_dimension_numbers<[1], [0], [0], [1], [0, 0, 1, 1], [], []>} : vector<16x32xf32>, vector<32x96xf32>, vector<16x96xf32> -> vector<16x96xf32>
    %4 = vector.extract_strided_slice %3 {offsets = [0, 0], sizes = [8, 32], strides = [1, 1]} : vector<16x96xf32> to vector<8x32xf32>
    %5 = vector.extract_strided_slice %3 {offsets = [0, 32], sizes = [8, 32], strides = [1, 1]} : vector<16x96xf32> to vector<8x32xf32>
    %6 = vector.extract_strided_slice %3 {offsets = [0, 64], sizes = [8, 32], strides = [1, 1]} : vector<16x96xf32> to vector<8x32xf32>
    %7 = vector.extract_strided_slice %4 {offsets = [0, 0], sizes = [8, 8], strides = [1, 1]} : vector<8x32xf32> to vector<8x8xf32>
    %8 = vector.extract_strided_slice %5 {offsets = [0, 0], sizes = [8, 8], strides = [1, 1]} : vector<8x32xf32> to vector<8x8xf32>
    %cst_5 = arith.constant dense<0.000000e+00> : vector<8x8xf32>
    %9 = tpu.matmul %7, %8, %cst_5 {dimension_numbers = #tpu.dot_dimension_numbers<[1], [1], [0], [0], [0, 0, 1, 0], [], []>} : vector<8x8xf32>, vector<8x8xf32>, vector<8x8xf32> -> vector<8x8xf32>
    %10 = arith.addf %9, %1 : vector<8x8xf32>
    %cst_6 = arith.constant dense<0xFF800000> : vector<8xf32>
    %11 = vector.multi_reduction <maximumf>, %10, %cst_6 [1] : vector<8x8xf32> to vector<8xf32>
    %12 = vector.shape_cast %11 : vector<8xf32> to vector<8x1xf32>
    %13 = vector.broadcast %12 : vector<8x1xf32> to vector<8x8xf32>
    %14 = arith.subf %10, %13 : vector<8x8xf32>
    %15 = math.exp %14 : vector<8x8xf32>
    %cst_7 = arith.constant dense<0.000000e+00> : vector<8xf32>
    %16 = vector.multi_reduction <add>, %15, %cst_7 [1] : vector<8x8xf32> to vector<8xf32>
    %17 = vector.shape_cast %16 : vector<8xf32> to vector<8x1xf32>
    %cst_8 = arith.constant 1.000000e+00 : f32
    %18 = vector.broadcast %cst_8 : f32 to vector<8x1xf32>
    %19 = arith.divf %18, %17 : vector<8x1xf32>
    %20 = arith.mulf %17, %19 : vector<8x1xf32>
    %21 = vector.extract_strided_slice %6 {offsets = [0, 0], sizes = [8, 8], strides = [1, 1]} : vector<8x32xf32> to vector<8x8xf32>
    %22 = vector.broadcast %20 : vector<8x1xf32> to vector<8x8xf32>
    %23 = arith.mulf %22, %21 : vector<8x8xf32>
    %c0_9 = arith.constant 0 : index
    %c0_10 = arith.constant 0 : index
    %24 = vector.load %arg14[%c0_9, %c0_10] : memref<64x8xf32, #tpu.memory_space<vmem>>, vector<8x8xf32>
    tpu.vector_store %arg14[%c0_9, %c0_10], %23 {strides = array<i32>} : memref<64x8xf32, #tpu.memory_space<vmem>>, vector<8x8xf32>,
    %25 = vector.extract_strided_slice %4 {offsets = [0, 8], sizes = [8, 8], strides = [1, 1]} : vector<8x32xf32> to vector<8x8xf32>
    %26 = vector.extract_strided_slice %5 {offsets = [0, 8], sizes = [8, 8], strides = [1, 1]} : vector<8x32xf32> to vector<8x8xf32>
    %cst_11 = arith.constant dense<0.000000e+00> : vector<8x8xf32>
    %27 = tpu.matmul %25, %26, %cst_11 {dimension_numbers = #tpu.dot_dimension_numbers<[1], [1], [0], [0], [0, 0, 1, 0], [], []>} : vector<8x8xf32>, vector<8x8xf32>, vector<8x8xf32> -> vector<8x8xf32>
    %28 = arith.addf %27, %1 : vector<8x8xf32>
    %cst_12 = arith.constant dense<0xFF800000> : vector<8xf32>
    %29 = vector.multi_reduction <maximumf>, %28, %cst_12 [1] : vector<8x8xf32> to vector<8xf32>
    %30 = vector.shape_cast %29 : vector<8xf32> to vector<8x1xf32>
    %31 = vector.broadcast %30 : vector<8x1xf32> to vector<8x8xf32>
    %32 = arith.subf %28, %31 : vector<8x8xf32>
    %33 = math.exp %32 : vector<8x8xf32>
    %cst_13 = arith.constant dense<0.000000e+00> : vector<8xf32>
    %34 = vector.multi_reduction <add>, %33, %cst_13 [1] : vector<8x8xf32> to vector<8xf32>
    %35 = vector.shape_cast %34 : vector<8xf32> to vector<8x1xf32>
    %cst_14 = arith.constant 1.000000e+00 : f32
    %36 = vector.broadcast %cst_14 : f32 to vector<8x1xf32>
    %37 = arith.divf %36, %35 : vector<8x1xf32>
    %38 = arith.mulf %35, %37 : vector<8x1xf32>
    %39 = vector.extract_strided_slice %6 {offsets = [0, 8], sizes = [8, 8], strides = [1, 1]} : vector<8x32xf32> to vector<8x8xf32>
    %40 = vector.broadcast %38 : vector<8x1xf32> to vector<8x8xf32>
    %41 = arith.mulf %40, %39 : vector<8x8xf32>
    %c8 = arith.constant 8 : index
    %c0_15 = arith.constant 0 : index
    %42 = vector.load %arg14[%c8, %c0_15] : memref<64x8xf32, #tpu.memory_space<vmem>>, vector<8x8xf32>
    tpu.vector_store %arg14[%c8, %c0_15], %41 {strides = array<i32>} : memref<64x8xf32, #tpu.memory_space<vmem>>, vector<8x8xf32>,
    %43 = vector.extract_strided_slice %4 {offsets = [0, 16], sizes = [8, 8], strides = [1, 1]} : vector<8x32xf32> to vector<8x8xf32>
    %44 = vector.extract_strided_slice %5 {offsets = [0, 16], sizes = [8, 8], strides = [1, 1]} : vector<8x32xf32> to vector<8x8xf32>
    %cst_16 = arith.constant dense<0.000000e+00> : vector<8x8xf32>
    %45 = tpu.matmul %43, %44, %cst_16 {dimension_numbers = #tpu.dot_dimension_numbers<[1], [1], [0], [0], [0, 0, 1, 0], [], []>} : vector<8x8xf32>, vector<8x8xf32>, vector<8x8xf32> -> vector<8x8xf32>
    %46 = arith.addf %45, %1 : vector<8x8xf32>
    %cst_17 = arith.constant dense<0xFF800000> : vector<8xf32>
    %47 = vector.multi_reduction <maximumf>, %46, %cst_17 [1] : vector<8x8xf32> to vector<8xf32>
    %48 = vector.shape_cast %47 : vector<8xf32> to vector<8x1xf32>
    %49 = vector.broadcast %48 : vector<8x1xf32> to vector<8x8xf32>
    %50 = arith.subf %46, %49 : vector<8x8xf32>
    %51 = math.exp %50 : vector<8x8xf32>
    %cst_18 = arith.constant dense<0.000000e+00> : vector<8xf32>
    %52 = vector.multi_reduction <add>, %51, %cst_18 [1] : vector<8x8xf32> to vector<8xf32>
    %53 = vector.shape_cast %52 : vector<8xf32> to vector<8x1xf32>
    %cst_19 = arith.constant 1.000000e+00 : f32
    %54 = vector.broadcast %cst_19 : f32 to vector<8x1xf32>
    %55 = arith.divf %54, %53 : vector<8x1xf32>
    %56 = arith.mulf %53, %55 : vector<8x1xf32>
    %57 = vector.extract_strided_slice %6 {offsets = [0, 16], sizes = [8, 8], strides = [1, 1]} : vector<8x32xf32> to vector<8x8xf32>
    %58 = vector.broadcast %56 : vector<8x1xf32> to vector<8x8xf32>
    %59 = arith.mulf %58, %57 : vector<8x8xf32>
    %c16 = arith.constant 16 : index
    %c0_20 = arith.constant 0 : index
    %60 = vector.load %arg14[%c16, %c0_20] : memref<64x8xf32, #tpu.memory_space<vmem>>, vector<8x8xf32>
    tpu.vector_store %arg14[%c16, %c0_20], %59 {strides = array<i32>} : memref<64x8xf32, #tpu.memory_space<vmem>>, vector<8x8xf32>,
    %61 = vector.extract_strided_slice %4 {offsets = [0, 24], sizes = [8, 8], strides = [1, 1]} : vector<8x32xf32> to vector<8x8xf32>
    %62 = vector.extract_strided_slice %5 {offsets = [0, 24], sizes = [8, 8], strides = [1, 1]} : vector<8x32xf32> to vector<8x8xf32>
    %cst_21 = arith.constant dense<0.000000e+00> : vector<8x8xf32>
    %63 = tpu.matmul %61, %62, %cst_21 {dimension_numbers = #tpu.dot_dimension_numbers<[1], [1], [0], [0], [0, 0, 1, 0], [], []>} : vector<8x8xf32>, vector<8x8xf32>, vector<8x8xf32> -> vector<8x8xf32>
    %64 = arith.addf %63, %1 : vector<8x8xf32>
    %cst_22 = arith.constant dense<0xFF800000> : vector<8xf32>
    %65 = vector.multi_reduction <maximumf>, %64, %cst_22 [1] : vector<8x8xf32> to vector<8xf32>
    %66 = vector.shape_cast %65 : vector<8xf32> to vector<8x1xf32>
    %67 = vector.broadcast %66 : vector<8x1xf32> to vector<8x8xf32>
    %68 = arith.subf %64, %67 : vector<8x8xf32>
    %69 = math.exp %68 : vector<8x8xf32>
    %cst_23 = arith.constant dense<0.000000e+00> : vector<8xf32>
    %70 = vector.multi_reduction <add>, %69, %cst_23 [1] : vector<8x8xf32> to vector<8xf32>
    %71 = vector.shape_cast %70 : vector<8xf32> to vector<8x1xf32>
    %cst_24 = arith.constant 1.000000e+00 : f32
    %72 = vector.broadcast %cst_24 : f32 to vector<8x1xf32>
    %73 = arith.divf %72, %71 : vector<8x1xf32>
    %74 = arith.mulf %71, %73 : vector<8x1xf32>
    %75 = vector.extract_strided_slice %6 {offsets = [0, 24], sizes = [8, 8], strides = [1, 1]} : vector<8x32xf32> to vector<8x8xf32>
    %76 = vector.broadcast %74 : vector<8x1xf32> to vector<8x8xf32>
    %77 = arith.mulf %76, %75 : vector<8x8xf32>
    %c24 = arith.constant 24 : index
    %c0_25 = arith.constant 0 : index
    %78 = vector.load %arg14[%c24, %c0_25] : memref<64x8xf32, #tpu.memory_space<vmem>>, vector<8x8xf32>
    tpu.vector_store %arg14[%c24, %c0_25], %77 {strides = array<i32>} : memref<64x8xf32, #tpu.memory_space<vmem>>, vector<8x8xf32>,
    %79 = vector.extract_strided_slice %3 {offsets = [8, 0], sizes = [8, 32], strides = [1, 1]} : vector<16x96xf32> to vector<8x32xf32>
    %80 = vector.extract_strided_slice %3 {offsets = [8, 32], sizes = [8, 32], strides = [1, 1]} : vector<16x96xf32> to vector<8x32xf32>
    %81 = vector.extract_strided_slice %3 {offsets = [8, 64], sizes = [8, 32], strides = [1, 1]} : vector<16x96xf32> to vector<8x32xf32>
    %82 = vector.extract_strided_slice %79 {offsets = [0, 0], sizes = [8, 8], strides = [1, 1]} : vector<8x32xf32> to vector<8x8xf32>
    %83 = vector.extract_strided_slice %80 {offsets = [0, 0], sizes = [8, 8], strides = [1, 1]} : vector<8x32xf32> to vector<8x8xf32>
    %cst_26 = arith.constant dense<0.000000e+00> : vector<8x8xf32>
    %84 = tpu.matmul %82, %83, %cst_26 {dimension_numbers = #tpu.dot_dimension_numbers<[1], [1], [0], [0], [0, 0, 1, 0], [], []>} : vector<8x8xf32>, vector<8x8xf32>, vector<8x8xf32> -> vector<8x8xf32>
    %85 = arith.addf %84, %1 : vector<8x8xf32>
    %cst_27 = arith.constant dense<0xFF800000> : vector<8xf32>
    %86 = vector.multi_reduction <maximumf>, %85, %cst_27 [1] : vector<8x8xf32> to vector<8xf32>
    %87 = vector.shape_cast %86 : vector<8xf32> to vector<8x1xf32>
    %88 = vector.broadcast %87 : vector<8x1xf32> to vector<8x8xf32>
    %89 = arith.subf %85, %88 : vector<8x8xf32>
    %90 = math.exp %89 : vector<8x8xf32>
    %cst_28 = arith.constant dense<0.000000e+00> : vector<8xf32>
    %91 = vector.multi_reduction <add>, %90, %cst_28 [1] : vector<8x8xf32> to vector<8xf32>
    %92 = vector.shape_cast %91 : vector<8xf32> to vector<8x1xf32>
    %cst_29 = arith.constant 1.000000e+00 : f32
    %93 = vector.broadcast %cst_29 : f32 to vector<8x1xf32>
    %94 = arith.divf %93, %92 : vector<8x1xf32>
    %95 = arith.mulf %92, %94 : vector<8x1xf32>
    %96 = vector.extract_strided_slice %81 {offsets = [0, 0], sizes = [8, 8], strides = [1, 1]} : vector<8x32xf32> to vector<8x8xf32>
    %97 = vector.broadcast %95 : vector<8x1xf32> to vector<8x8xf32>
    %98 = arith.mulf %97, %96 : vector<8x8xf32>
    %c32 = arith.constant 32 : index
    %c0_30 = arith.constant 0 : index
    %99 = vector.load %arg14[%c32, %c0_30] : memref<64x8xf32, #tpu.memory_space<vmem>>, vector<8x8xf32>
    tpu.vector_store %arg14[%c32, %c0_30], %98 {strides = array<i32>} : memref<64x8xf32, #tpu.memory_space<vmem>>, vector<8x8xf32>,
    %100 = vector.extract_strided_slice %79 {offsets = [0, 8], sizes = [8, 8], strides = [1, 1]} : vector<8x32xf32> to vector<8x8xf32>
    %101 = vector.extract_strided_slice %80 {offsets = [0, 8], sizes = [8, 8], strides = [1, 1]} : vector<8x32xf32> to vector<8x8xf32>
    %cst_31 = arith.constant dense<0.000000e+00> : vector<8x8xf32>
    %102 = tpu.matmul %100, %101, %cst_31 {dimension_numbers = #tpu.dot_dimension_numbers<[1], [1], [0], [0], [0, 0, 1, 0], [], []>} : vector<8x8xf32>, vector<8x8xf32>, vector<8x8xf32> -> vector<8x8xf32>
    %103 = arith.addf %102, %1 : vector<8x8xf32>
    %cst_32 = arith.constant dense<0xFF800000> : vector<8xf32>
    %104 = vector.multi_reduction <maximumf>, %103, %cst_32 [1] : vector<8x8xf32> to vector<8xf32>
    %105 = vector.shape_cast %104 : vector<8xf32> to vector<8x1xf32>
    %106 = vector.broadcast %105 : vector<8x1xf32> to vector<8x8xf32>
    %107 = arith.subf %103, %106 : vector<8x8xf32>
    %108 = math.exp %107 : vector<8x8xf32>
    %cst_33 = arith.constant dense<0.000000e+00> : vector<8xf32>
    %109 = vector.multi_reduction <add>, %108, %cst_33 [1] : vector<8x8xf32> to vector<8xf32>
    %110 = vector.shape_cast %109 : vector<8xf32> to vector<8x1xf32>
    %cst_34 = arith.constant 1.000000e+00 : f32
    %111 = vector.broadcast %cst_34 : f32 to vector<8x1xf32>
    %112 = arith.divf %111, %110 : vector<8x1xf32>
    %113 = arith.mulf %110, %112 : vector<8x1xf32>
    %114 = vector.extract_strided_slice %81 {offsets = [0, 8], sizes = [8, 8], strides = [1, 1]} : vector<8x32xf32> to vector<8x8xf32>
    %115 = vector.broadcast %113 : vector<8x1xf32> to vector<8x8xf32>
    %116 = arith.mulf %115, %114 : vector<8x8xf32>
    %c40 = arith.constant 40 : index
    %c0_35 = arith.constant 0 : index
    %117 = vector.load %arg14[%c40, %c0_35] : memref<64x8xf32, #tpu.memory_space<vmem>>, vector<8x8xf32>
    tpu.vector_store %arg14[%c40, %c0_35], %116 {strides = array<i32>} : memref<64x8xf32, #tpu.memory_space<vmem>>, vector<8x8xf32>,
    %118 = vector.extract_strided_slice %79 {offsets = [0, 16], sizes = [8, 8], strides = [1, 1]} : vector<8x32xf32> to vector<8x8xf32>
    %119 = vector.extract_strided_slice %80 {offsets = [0, 16], sizes = [8, 8], strides = [1, 1]} : vector<8x32xf32> to vector<8x8xf32>
    %cst_36 = arith.constant dense<0.000000e+00> : vector<8x8xf32>
    %120 = tpu.matmul %118, %119, %cst_36 {dimension_numbers = #tpu.dot_dimension_numbers<[1], [1], [0], [0], [0, 0, 1, 0], [], []>} : vector<8x8xf32>, vector<8x8xf32>, vector<8x8xf32> -> vector<8x8xf32>
    %121 = arith.addf %120, %1 : vector<8x8xf32>
    %cst_37 = arith.constant dense<0xFF800000> : vector<8xf32>
    %122 = vector.multi_reduction <maximumf>, %121, %cst_37 [1] : vector<8x8xf32> to vector<8xf32>
    %123 = vector.shape_cast %122 : vector<8xf32> to vector<8x1xf32>
    %124 = vector.broadcast %123 : vector<8x1xf32> to vector<8x8xf32>
    %125 = arith.subf %121, %124 : vector<8x8xf32>
    %126 = math.exp %125 : vector<8x8xf32>
    %cst_38 = arith.constant dense<0.000000e+00> : vector<8xf32>
    %127 = vector.multi_reduction <add>, %126, %cst_38 [1] : vector<8x8xf32> to vector<8xf32>
    %128 = vector.shape_cast %127 : vector<8xf32> to vector<8x1xf32>
    %cst_39 = arith.constant 1.000000e+00 : f32
    %129 = vector.broadcast %cst_39 : f32 to vector<8x1xf32>
    %130 = arith.divf %129, %128 : vector<8x1xf32>
    %131 = arith.mulf %128, %130 : vector<8x1xf32>
    %132 = vector.extract_strided_slice %81 {offsets = [0, 16], sizes = [8, 8], strides = [1, 1]} : vector<8x32xf32> to vector<8x8xf32>
    %133 = vector.broadcast %131 : vector<8x1xf32> to vector<8x8xf32>
    %134 = arith.mulf %133, %132 : vector<8x8xf32>
    %c48 = arith.constant 48 : index
    %c0_40 = arith.constant 0 : index
    %135 = vector.load %arg14[%c48, %c0_40] : memref<64x8xf32, #tpu.memory_space<vmem>>, vector<8x8xf32>
    tpu.vector_store %arg14[%c48, %c0_40], %134 {strides = array<i32>} : memref<64x8xf32, #tpu.memory_space<vmem>>, vector<8x8xf32>,
    %136 = vector.extract_strided_slice %79 {offsets = [0, 24], sizes = [8, 8], strides = [1, 1]} : vector<8x32xf32> to vector<8x8xf32>
    %137 = vector.extract_strided_slice %80 {offsets = [0, 24], sizes = [8, 8], strides = [1, 1]} : vector<8x32xf32> to vector<8x8xf32>
    %cst_41 = arith.constant dense<0.000000e+00> : vector<8x8xf32>
    %138 = tpu.matmul %136, %137, %cst_41 {dimension_numbers = #tpu.dot_dimension_numbers<[1], [1], [0], [0], [0, 0, 1, 0], [], []>} : vector<8x8xf32>, vector<8x8xf32>, vector<8x8xf32> -> vector<8x8xf32>
    %139 = arith.addf %138, %1 : vector<8x8xf32>
    %cst_42 = arith.constant dense<0xFF800000> : vector<8xf32>
    %140 = vector.multi_reduction <maximumf>, %139, %cst_42 [1] : vector<8x8xf32> to vector<8xf32>
    %141 = vector.shape_cast %140 : vector<8xf32> to vector<8x1xf32>
    %142 = vector.broadcast %141 : vector<8x1xf32> to vector<8x8xf32>
    %143 = arith.subf %139, %142 : vector<8x8xf32>
    %144 = math.exp %143 : vector<8x8xf32>
    %cst_43 = arith.constant dense<0.000000e+00> : vector<8xf32>
    %145 = vector.multi_reduction <add>, %144, %cst_43 [1] : vector<8x8xf32> to vector<8xf32>
    %146 = vector.shape_cast %145 : vector<8xf32> to vector<8x1xf32>
    %cst_44 = arith.constant 1.000000e+00 : f32
    %147 = vector.broadcast %cst_44 : f32 to vector<8x1xf32>
    %148 = arith.divf %147, %146 : vector<8x1xf32>
    %149 = arith.mulf %146, %148 : vector<8x1xf32>
    %150 = vector.extract_strided_slice %81 {offsets = [0, 24], sizes = [8, 8], strides = [1, 1]} : vector<8x32xf32> to vector<8x8xf32>
    %151 = vector.broadcast %149 : vector<8x1xf32> to vector<8x8xf32>
    %152 = arith.mulf %151, %150 : vector<8x8xf32>
    %c56 = arith.constant 56 : index
    %c0_45 = arith.constant 0 : index
    %153 = vector.load %arg14[%c56, %c0_45] : memref<64x8xf32, #tpu.memory_space<vmem>>, vector<8x8xf32>
    tpu.vector_store %arg14[%c56, %c0_45], %152 {strides = array<i32>} : memref<64x8xf32, #tpu.memory_space<vmem>>, vector<8x8xf32>,
    %cst_46 = arith.constant 0.000000e+00 : f32
    %154 = vector.broadcast %cst_46 : f32 to vector<16x32xf32>
    %c0_47 = arith.constant 0 : index
    %c0_48 = arith.constant 0 : index
    %155 = tpu.strided_load %arg14[%c0_47, %c0_48] {strides = array<i32: 4, 1>} : memref<64x8xf32, #tpu.memory_space<vmem>>, vector<16x8xf32>
    %c0_49 = arith.constant 0 : index
    %c0_50 = arith.constant 0 : index
    %156 = vector.load %arg4[%c0_49, %c0_50] : memref<32x32xf32, #tpu.memory_space<vmem>>, vector<8x32xf32>
    %cst_51 = arith.constant dense<0.000000e+00> : vector<16x32xf32>
    %157 = tpu.matmul %155, %156, %cst_51 {dimension_numbers = #tpu.dot_dimension_numbers<[1], [0], [0], [1], [0, 0, 1, 1], [], []>} : vector<16x8xf32>, vector<8x32xf32>, vector<16x32xf32> -> vector<16x32xf32>
    %158 = arith.addf %154, %157 : vector<16x32xf32>
    %c1 = arith.constant 1 : index
    %c0_52 = arith.constant 0 : index
    %159 = tpu.strided_load %arg14[%c1, %c0_52] {strides = array<i32: 4, 1>} : memref<64x8xf32, #tpu.memory_space<vmem>>, vector<16x8xf32>
    %c8_53 = arith.constant 8 : index
    %c0_54 = arith.constant 0 : index
    %160 = vector.load %arg4[%c8_53, %c0_54] : memref<32x32xf32, #tpu.memory_space<vmem>>, vector<8x32xf32>
    %cst_55 = arith.constant dense<0.000000e+00> : vector<16x32xf32>
    %161 = tpu.matmul %159, %160, %cst_55 {dimension_numbers = #tpu.dot_dimension_numbers<[1], [0], [0], [1], [0, 0, 1, 1], [], []>} : vector<16x8xf32>, vector<8x32xf32>, vector<16x32xf32> -> vector<16x32xf32>
    %162 = arith.addf %158, %161 : vector<16x32xf32>
    %c2 = arith.constant 2 : index
    %c0_56 = arith.constant 0 : index
    %163 = tpu.strided_load %arg14[%c2, %c0_56] {strides = array<i32: 4, 1>} : memref<64x8xf32, #tpu.memory_space<vmem>>, vector<16x8xf32>
    %c16_57 = arith.constant 16 : index
    %c0_58 = arith.constant 0 : index
    %164 = vector.load %arg4[%c16_57, %c0_58] : memref<32x32xf32, #tpu.memory_space<vmem>>, vector<8x32xf32>
    %cst_59 = arith.constant dense<0.000000e+00> : vector<16x32xf32>
    %165 = tpu.matmul %163, %164, %cst_59 {dimension_numbers = #tpu.dot_dimension_numbers<[1], [0], [0], [1], [0, 0, 1, 1], [], []>} : vector<16x8xf32>, vector<8x32xf32>, vector<16x32xf32> -> vector<16x32xf32>
    %166 = arith.addf %162, %165 : vector<16x32xf32>
    %c3 = arith.constant 3 : index
    %c0_60 = arith.constant 0 : index
    %167 = tpu.strided_load %arg14[%c3, %c0_60] {strides = array<i32: 4, 1>} : memref<64x8xf32, #tpu.memory_space<vmem>>, vector<16x8xf32>
    %c24_61 = arith.constant 24 : index
    %c0_62 = arith.constant 0 : index
    %168 = vector.load %arg4[%c24_61, %c0_62] : memref<32x32xf32, #tpu.memory_space<vmem>>, vector<8x32xf32>
    %cst_63 = arith.constant dense<0.000000e+00> : vector<16x32xf32>
    %169 = tpu.matmul %167, %168, %cst_63 {dimension_numbers = #tpu.dot_dimension_numbers<[1], [0], [0], [1], [0, 0, 1, 1], [], []>} : vector<16x8xf32>, vector<8x32xf32>, vector<16x32xf32> -> vector<16x32xf32>
    %170 = arith.addf %166, %169 : vector<16x32xf32>
    %171 = arith.addf %0, %170 : vector<16x32xf32>
    %cst_64 = arith.constant dense<0.000000e+00> : vector<16xf32>
    %172 = vector.multi_reduction <add>, %171, %cst_64 [1] : vector<16x32xf32> to vector<16xf32>
    %173 = vector.shape_cast %172 : vector<16xf32> to vector<16x1xf32>
    %cst_65 = arith.constant 3.200000e+01 : f32
    %174 = vector.broadcast %cst_65 : f32 to vector<16x1xf32>
    %175 = arith.divf %173, %174 : vector<16x1xf32>
    %176 = vector.broadcast %175 : vector<16x1xf32> to vector<16x32xf32>
    %177 = arith.subf %171, %176 : vector<16x32xf32>
    %178 = vector.broadcast %175 : vector<16x1xf32> to vector<16x32xf32>
    %179 = arith.subf %171, %178 : vector<16x32xf32>
    %180 = arith.mulf %177, %179 : vector<16x32xf32>
    %cst_66 = arith.constant dense<0.000000e+00> : vector<16xf32>
    %181 = vector.multi_reduction <add>, %180, %cst_66 [1] : vector<16x32xf32> to vector<16xf32>
    %182 = vector.shape_cast %181 : vector<16xf32> to vector<16x1xf32>
    %cst_67 = arith.constant 3.200000e+01 : f32
    %183 = vector.broadcast %cst_67 : f32 to vector<16x1xf32>
    %184 = arith.divf %182, %183 : vector<16x1xf32>
    %185 = vector.broadcast %175 : vector<16x1xf32> to vector<16x32xf32>
    %186 = arith.subf %171, %185 : vector<16x32xf32>
    %cst_68 = arith.constant 9.99999974E-6 : f32
    %187 = vector.broadcast %cst_68 : f32 to vector<16x1xf32>
    %188 = arith.addf %184, %187 : vector<16x1xf32>
    %189 = math.rsqrt %188 : vector<16x1xf32>
    %190 = vector.broadcast %189 : vector<16x1xf32> to vector<16x32xf32>
    %191 = arith.mulf %186, %190 : vector<16x32xf32>
    %c0_69 = arith.constant 0 : index
    %c0_70 = arith.constant 0 : index
    %192 = vector.load %arg5[%c0_69, %c0_70] : memref<1x32xf32, #tpu.memory_space<vmem>>, vector<1x32xf32>
    %193 = vector.broadcast %192 : vector<1x32xf32> to vector<16x32xf32>
    %194 = arith.mulf %191, %193 : vector<16x32xf32>
    %c0_71 = arith.constant 0 : index
    %c0_72 = arith.constant 0 : index
    %195 = vector.load %arg6[%c0_71, %c0_72] : memref<1x32xf32, #tpu.memory_space<vmem>>, vector<1x32xf32>
    %196 = vector.broadcast %195 : vector<1x32xf32> to vector<16x32xf32>
    %197 = arith.addf %194, %196 : vector<16x32xf32>
    %c0_73 = arith.constant 0 : index
    %c0_74 = arith.constant 0 : index
    %198 = vector.load %arg7[%c0_73, %c0_74] : memref<32x64xf32, #tpu.memory_space<vmem>>, vector<32x64xf32>
    %cst_75 = arith.constant dense<0.000000e+00> : vector<16x64xf32>
    %199 = tpu.matmul %197, %198, %cst_75 {dimension_numbers = #tpu.dot_dimension_numbers<[1], [0], [0], [1], [0, 0, 1, 1], [], []>} : vector<16x32xf32>, vector<32x64xf32>, vector<16x64xf32> -> vector<16x64xf32>
    %c0_76 = arith.constant 0 : index
    %c0_77 = arith.constant 0 : index
    %200 = vector.load %arg8[%c0_76, %c0_77] : memref<1x64xf32, #tpu.memory_space<vmem>>, vector<1x64xf32>
    %201 = vector.broadcast %200 : vector<1x64xf32> to vector<16x64xf32>
    %202 = arith.addf %199, %201 : vector<16x64xf32>
    %cst_78 = arith.constant 0.000000e+00 : f32
    %203 = vector.broadcast %cst_78 : f32 to vector<16x64xf32>
    %204 = arith.maximumf %202, %203 : vector<16x64xf32>
    %c0_79 = arith.constant 0 : index
    %c0_80 = arith.constant 0 : index
    %205 = vector.load %arg9[%c0_79, %c0_80] : memref<64x32xf32, #tpu.memory_space<vmem>>, vector<64x32xf32>
    %cst_81 = arith.constant dense<0.000000e+00> : vector<16x32xf32>
    %206 = tpu.matmul %204, %205, %cst_81 {dimension_numbers = #tpu.dot_dimension_numbers<[1], [0], [0], [1], [0, 0, 1, 1], [], []>} : vector<16x64xf32>, vector<64x32xf32>, vector<16x32xf32> -> vector<16x32xf32>
    %c0_82 = arith.constant 0 : index
    %c0_83 = arith.constant 0 : index
    %207 = vector.load %arg10[%c0_82, %c0_83] : memref<1x32xf32, #tpu.memory_space<vmem>>, vector<1x32xf32>
    %208 = vector.broadcast %207 : vector<1x32xf32> to vector<16x32xf32>
    %209 = arith.addf %206, %208 : vector<16x32xf32>
    %210 = arith.addf %197, %209 : vector<16x32xf32>
    %cst_84 = arith.constant dense<0.000000e+00> : vector<16xf32>
    %211 = vector.multi_reduction <add>, %210, %cst_84 [1] : vector<16x32xf32> to vector<16xf32>
    %212 = vector.shape_cast %211 : vector<16xf32> to vector<16x1xf32>
    %cst_85 = arith.constant 3.200000e+01 : f32
    %213 = vector.broadcast %cst_85 : f32 to vector<16x1xf32>
    %214 = arith.divf %212, %213 : vector<16x1xf32>
    %215 = vector.broadcast %214 : vector<16x1xf32> to vector<16x32xf32>
    %216 = arith.subf %210, %215 : vector<16x32xf32>
    %217 = vector.broadcast %214 : vector<16x1xf32> to vector<16x32xf32>
    %218 = arith.subf %210, %217 : vector<16x32xf32>
    %219 = arith.mulf %216, %218 : vector<16x32xf32>
    %cst_86 = arith.constant dense<0.000000e+00> : vector<16xf32>
    %220 = vector.multi_reduction <add>, %219, %cst_86 [1] : vector<16x32xf32> to vector<16xf32>
    %221 = vector.shape_cast %220 : vector<16xf32> to vector<16x1xf32>
    %cst_87 = arith.constant 3.200000e+01 : f32
    %222 = vector.broadcast %cst_87 : f32 to vector<16x1xf32>
    %223 = arith.divf %221, %222 : vector<16x1xf32>
    %224 = vector.broadcast %214 : vector<16x1xf32> to vector<16x32xf32>
    %225 = arith.subf %210, %224 : vector<16x32xf32>
    %cst_88 = arith.constant 9.99999974E-6 : f32
    %226 = vector.broadcast %cst_88 : f32 to vector<16x1xf32>
    %227 = arith.addf %223, %226 : vector<16x1xf32>
    %228 = math.rsqrt %227 : vector<16x1xf32>
    %229 = vector.broadcast %228 : vector<16x1xf32> to vector<16x32xf32>
    %230 = arith.mulf %225, %229 : vector<16x32xf32>
    %c0_89 = arith.constant 0 : index
    %c0_90 = arith.constant 0 : index
    %231 = vector.load %arg11[%c0_89, %c0_90] : memref<1x32xf32, #tpu.memory_space<vmem>>, vector<1x32xf32>
    %232 = vector.broadcast %231 : vector<1x32xf32> to vector<16x32xf32>
    %233 = arith.mulf %230, %232 : vector<16x32xf32>
    %c0_91 = arith.constant 0 : index
    %c0_92 = arith.constant 0 : index
    %234 = vector.load %arg12[%c0_91, %c0_92] : memref<1x32xf32, #tpu.memory_space<vmem>>, vector<1x32xf32>
    %235 = vector.broadcast %234 : vector<1x32xf32> to vector<16x32xf32>
    %236 = arith.addf %233, %235 : vector<16x32xf32>
    %c0_93 = arith.constant 0 : index
    %c0_94 = arith.constant 0 : index
    %237 = vector.load %arg13[%c0_93, %c0_94] : memref<16x32xf32, #tpu.memory_space<vmem>>, vector<16x32xf32>
    tpu.vector_store %arg13[%c0_93, %c0_94], %236 {strides = array<i32>} : memref<16x32xf32, #tpu.memory_space<vmem>>, vector<16x32xf32>,
    return
  }
  func.func @transform_0(%arg0: i32) -> (i32, i32) {
    %c0_i32 = arith.constant 0 : i32
    %c0_i32_0 = arith.constant 0 : i32
    return %arg0, %c0_i32 : i32, i32
  }
  func.func @transform_1(%arg0: i32) -> (i32, i32) {
    %c0_i32 = arith.constant 0 : i32
    %c0_i32_0 = arith.constant 0 : i32
    %c0_i32_1 = arith.constant 0 : i32
    return %c0_i32, %c0_i32_0 : i32, i32
  }
  func.func @transform_2(%arg0: i32) -> (i32, i32) {
    %c0_i32 = arith.constant 0 : i32
    %c0_i32_0 = arith.constant 0 : i32
    %c0_i32_1 = arith.constant 0 : i32
    return %c0_i32, %c0_i32_0 : i32, i32
  }
  func.func @transform_3(%arg0: i32) -> (i32, i32) {
    %c0_i32 = arith.constant 0 : i32
    %c0_i32_0 = arith.constant 0 : i32
    %c0_i32_1 = arith.constant 0 : i32
    return %c0_i32, %c0_i32_0 : i32, i32
  }
  func.func @transform_4(%arg0: i32) -> (i32, i32) {
    %c0_i32 = arith.constant 0 : i32
    %c0_i32_0 = arith.constant 0 : i32
    %c0_i32_1 = arith.constant 0 : i32
    return %c0_i32, %c0_i32_0 : i32, i32
  }
  func.func @transform_5(%arg0: i32) -> (i32, i32) {
    %c0_i32 = arith.constant 0 : i32
    %c0_i32_0 = arith.constant 0 : i32
    %c0_i32_1 = arith.constant 0 : i32
    return %c0_i32, %c0_i32_0 : i32, i32
  }
  func.func @transform_6(%arg0: i32) -> (i32, i32) {
    %c0_i32 = arith.constant 0 : i32
    %c0_i32_0 = arith.constant 0 : i32
    %c0_i32_1 = arith.constant 0 : i32
    return %c0_i32, %c0_i32_0 : i32, i32
  }
  func.func @transform_7(%arg0: i32) -> (i32, i32) {
    %c0_i32 = arith.constant 0 : i32
    %c0_i32_0 = arith.constant 0 : i32
    %c0_i32_1 = arith.constant 0 : i32
    return %c0_i32, %c0_i32_0 : i32, i32
  }
  func.func @transform_8(%arg0: i32) -> (i32, i32) {
    %c0_i32 = arith.constant 0 : i32
    %c0_i32_0 = arith.constant 0 : i32
    %c0_i32_1 = arith.constant 0 : i32
    return %c0_i32, %c0_i32_0 : i32, i32
  }
  func.func @transform_9(%arg0: i32) -> (i32, i32) {
    %c0_i32 = arith.constant 0 : i32
    %c0_i32_0 = arith.constant 0 : i32
    %c0_i32_1 = arith.constant 0 : i32
    return %c0_i32, %c0_i32_0 : i32, i32
  }
  func.func @transform_10(%arg0: i32) -> (i32, i32) {
    %c0_i32 = arith.constant 0 : i32
    %c0_i32_0 = arith.constant 0 : i32
    %c0_i32_1 = arith.constant 0 : i32
    return %c0_i32, %c0_i32_0 : i32, i32
  }
  func.func @transform_11(%arg0: i32) -> (i32, i32) {
    %c0_i32 = arith.constant 0 : i32
    %c0_i32_0 = arith.constant 0 : i32
    %c0_i32_1 = arith.constant 0 : i32
    return %c0_i32, %c0_i32_0 : i32, i32
  }
  func.func @transform_12(%arg0: i32) -> (i32, i32) {
    %c0_i32 = arith.constant 0 : i32
    %c0_i32_0 = arith.constant 0 : i32
    return %arg0, %c0_i32 : i32, i32
  }
}

module attributes {stable_mosaic.version = 11 : i64} {
  func.func @_transformer_block_kernel(%arg0: i32, %arg1: memref<16x32xf32, #tpu.memory_space<vmem>>, %arg2: memref<8x8xf32, #tpu.memory_space<vmem>>, %arg3: memref<32x96xf32, #tpu.memory_space<vmem>>, %arg4: memref<32x32xf32, #tpu.memory_space<vmem>>, %arg5: memref<1x32xf32, #tpu.memory_space<vmem>>, %arg6: memref<1x32xf32, #tpu.memory_space<vmem>>, %arg7: memref<32x64xf32, #tpu.memory_space<vmem>>, %arg8: memref<1x64xf32, #tpu.memory_space<vmem>>, %arg9: memref<64x32xf32, #tpu.memory_space<vmem>>, %arg10: memref<1x32xf32, #tpu.memory_space<vmem>>, %arg11: memref<1x32xf32, #tpu.memory_space<vmem>>, %arg12: memref<1x32xf32, #tpu.memory_space<vmem>>, %arg13: memref<16x32xf32, #tpu.memory_space<vmem>>, %arg14: memref<64x8xf32, #tpu.memory_space<vmem>>) attributes {dimension_semantics = [#tpu.dimension_semantics<parallel>], iteration_bounds = array<i64: 1>, scalar_prefetch = 0 : i64, scratch_operands = 1 : i64, tpu.core_type = #tpu.core_type<tc>, window_params = [{transform_indices = @transform_0, window_bounds = array<i64: 16, 32>}, {pipeline_mode = #tpu.pipeline_mode<synchronous>, transform_indices = @transform_1, window_bounds = array<i64: 8, 8>}, {pipeline_mode = #tpu.pipeline_mode<synchronous>, transform_indices = @transform_2, window_bounds = array<i64: 32, 96>}, {pipeline_mode = #tpu.pipeline_mode<synchronous>, transform_indices = @transform_3, window_bounds = array<i64: 32, 32>}, {pipeline_mode = #tpu.pipeline_mode<synchronous>, transform_indices = @transform_4, window_bounds = array<i64: 1, 32>}, {pipeline_mode = #tpu.pipeline_mode<synchronous>, transform_indices = @transform_5, window_bounds = array<i64: 1, 32>}, {pipeline_mode = #tpu.pipeline_mode<synchronous>, transform_indices = @transform_6, window_bounds = array<i64: 32, 64>}, {pipeline_mode = #tpu.pipeline_mode<synchronous>, transform_indices = @transform_7, window_bounds = array<i64: 1, 64>}, {pipeline_mode = #tpu.pipeline_mode<synchronous>, transform_indices = @transform_8, window_bounds = array<i64: 64, 32>}, {pipeline_mode = #tpu.pipeline_mode<synchronous>, transform_indices = @transform_9, window_bounds = array<i64: 1, 32>}, {pipeline_mode = #tpu.pipeline_mode<synchronous>, transform_indices = @transform_10, window_bounds = array<i64: 1, 32>}, {pipeline_mode = #tpu.pipeline_mode<synchronous>, transform_indices = @transform_11, window_bounds = array<i64: 1, 32>}, {transform_indices = @transform_12, window_bounds = array<i64: 16, 32>}]} {
    %c0 = arith.constant 0 : index
    %c0_0 = arith.constant 0 : index
    %0 = vector.load %arg1[%c0, %c0_0] : memref<16x32xf32, #tpu.memory_space<vmem>>, vector<16x32xf32>
    %c0_1 = arith.constant 0 : index
    %c0_2 = arith.constant 0 : index
    %1 = vector.load %arg2[%c0_1, %c0_2] : memref<8x8xf32, #tpu.memory_space<vmem>>, vector<8x8xf32>
    %c0_3 = arith.constant 0 : index
    %c0_4 = arith.constant 0 : index
    %2 = vector.load %arg3[%c0_3, %c0_4] : memref<32x96xf32, #tpu.memory_space<vmem>>, vector<32x96xf32>
    %cst = arith.constant dense<0.000000e+00> : vector<16x96xf32>
    %3 = tpu.matmul %0, %2, %cst {dimension_numbers = #tpu.dot_dimension_numbers<[1], [0], [0], [1], [0, 0, 1, 1], [], []>} : vector<16x32xf32>, vector<32x96xf32>, vector<16x96xf32> -> vector<16x96xf32>
    %4 = vector.extract_strided_slice %3 {offsets = [0, 0], sizes = [8, 32], strides = [1, 1]} : vector<16x96xf32> to vector<8x32xf32>
    %5 = vector.extract_strided_slice %3 {offsets = [0, 32], sizes = [8, 32], strides = [1, 1]} : vector<16x96xf32> to vector<8x32xf32>
    %6 = vector.extract_strided_slice %3 {offsets = [0, 64], sizes = [8, 32], strides = [1, 1]} : vector<16x96xf32> to vector<8x32xf32>
    %7 = vector.extract_strided_slice %4 {offsets = [0, 0], sizes = [8, 8], strides = [1, 1]} : vector<8x32xf32> to vector<8x8xf32>
    %8 = vector.extract_strided_slice %5 {offsets = [0, 0], sizes = [8, 8], strides = [1, 1]} : vector<8x32xf32> to vector<8x8xf32>
    %cst_5 = arith.constant dense<0.000000e+00> : vector<8x8xf32>
    %9 = tpu.matmul %7, %8, %cst_5 {dimension_numbers = #tpu.dot_dimension_numbers<[1], [1], [0], [0], [0, 0, 1, 0], [], []>} : vector<8x8xf32>, vector<8x8xf32>, vector<8x8xf32> -> vector<8x8xf32>
    %10 = arith.addf %9, %1 : vector<8x8xf32>
    %cst_6 = arith.constant dense<0xFF800000> : vector<8xf32>
    %11 = vector.multi_reduction <maximumf>, %10, %cst_6 [1] : vector<8x8xf32> to vector<8xf32>
    %12 = vector.shape_cast %11 : vector<8xf32> to vector<8x1xf32>
    %13 = vector.broadcast %12 : vector<8x1xf32> to vector<8x8xf32>
    %14 = arith.subf %10, %13 : vector<8x8xf32>
    %15 = math.exp %14 : vector<8x8xf32>
    %cst_7 = arith.constant dense<0.000000e+00> : vector<8xf32>
    %16 = vector.multi_reduction <add>, %15, %cst_7 [1] : vector<8x8xf32> to vector<8xf32>
    %17 = vector.shape_cast %16 : vector<8xf32> to vector<8x1xf32>
    %cst_8 = arith.constant 1.000000e+00 : f32
    %18 = vector.broadcast %cst_8 : f32 to vector<8x1xf32>
    %19 = arith.divf %18, %17 : vector<8x1xf32>
    %20 = arith.mulf %17, %19 : vector<8x1xf32>
    %21 = vector.extract_strided_slice %6 {offsets = [0, 0], sizes = [8, 8], strides = [1, 1]} : vector<8x32xf32> to vector<8x8xf32>
    %22 = vector.broadcast %20 : vector<8x1xf32> to vector<8x8xf32>
    %23 = arith.mulf %22, %21 : vector<8x8xf32>
    %c0_9 = arith.constant 0 : index
    %c0_10 = arith.constant 0 : index
    %24 = vector.load %arg14[%c0_9, %c0_10] : memref<64x8xf32, #tpu.memory_space<vmem>>, vector<8x8xf32>
    tpu.vector_store %arg14[%c0_9, %c0_10], %23 {strides = array<i32>} : memref<64x8xf32, #tpu.memory_space<vmem>>, vector<8x8xf32>,
    %25 = vector.extract_strided_slice %4 {offsets = [0, 8], sizes = [8, 8], strides = [1, 1]} : vector<8x32xf32> to vector<8x8xf32>
    %26 = vector.extract_strided_slice %5 {offsets = [0, 8], sizes = [8, 8], strides = [1, 1]} : vector<8x32xf32> to vector<8x8xf32>
    %cst_11 = arith.constant dense<0.000000e+00> : vector<8x8xf32>
    %27 = tpu.matmul %25, %26, %cst_11 {dimension_numbers = #tpu.dot_dimension_numbers<[1], [1], [0], [0], [0, 0, 1, 0], [], []>} : vector<8x8xf32>, vector<8x8xf32>, vector<8x8xf32> -> vector<8x8xf32>
    %28 = arith.addf %27, %1 : vector<8x8xf32>
    %cst_12 = arith.constant dense<0xFF800000> : vector<8xf32>
    %29 = vector.multi_reduction <maximumf>, %28, %cst_12 [1] : vector<8x8xf32> to vector<8xf32>
    %30 = vector.shape_cast %29 : vector<8xf32> to vector<8x1xf32>
    %31 = vector.broadcast %30 : vector<8x1xf32> to vector<8x8xf32>
    %32 = arith.subf %28, %31 : vector<8x8xf32>
    %33 = math.exp %32 : vector<8x8xf32>
    %cst_13 = arith.constant dense<0.000000e+00> : vector<8xf32>
    %34 = vector.multi_reduction <add>, %33, %cst_13 [1] : vector<8x8xf32> to vector<8xf32>
    %35 = vector.shape_cast %34 : vector<8xf32> to vector<8x1xf32>
    %cst_14 = arith.constant 1.000000e+00 : f32
    %36 = vector.broadcast %cst_14 : f32 to vector<8x1xf32>
    %37 = arith.divf %36, %35 : vector<8x1xf32>
    %38 = arith.mulf %35, %37 : vector<8x1xf32>
    %39 = vector.extract_strided_slice %6 {offsets = [0, 8], sizes = [8, 8], strides = [1, 1]} : vector<8x32xf32> to vector<8x8xf32>
    %40 = vector.broadcast %38 : vector<8x1xf32> to vector<8x8xf32>
    %41 = arith.mulf %40, %39 : vector<8x8xf32>
    %c8 = arith.constant 8 : index
    %c0_15 = arith.constant 0 : index
    %42 = vector.load %arg14[%c8, %c0_15] : memref<64x8xf32, #tpu.memory_space<vmem>>, vector<8x8xf32>
    tpu.vector_store %arg14[%c8, %c0_15], %41 {strides = array<i32>} : memref<64x8xf32, #tpu.memory_space<vmem>>, vector<8x8xf32>,
    %43 = vector.extract_strided_slice %4 {offsets = [0, 16], sizes = [8, 8], strides = [1, 1]} : vector<8x32xf32> to vector<8x8xf32>
    %44 = vector.extract_strided_slice %5 {offsets = [0, 16], sizes = [8, 8], strides = [1, 1]} : vector<8x32xf32> to vector<8x8xf32>
    %cst_16 = arith.constant dense<0.000000e+00> : vector<8x8xf32>
    %45 = tpu.matmul %43, %44, %cst_16 {dimension_numbers = #tpu.dot_dimension_numbers<[1], [1], [0], [0], [0, 0, 1, 0], [], []>} : vector<8x8xf32>, vector<8x8xf32>, vector<8x8xf32> -> vector<8x8xf32>
    %46 = arith.addf %45, %1 : vector<8x8xf32>
    %cst_17 = arith.constant dense<0xFF800000> : vector<8xf32>
    %47 = vector.multi_reduction <maximumf>, %46, %cst_17 [1] : vector<8x8xf32> to vector<8xf32>
    %48 = vector.shape_cast %47 : vector<8xf32> to vector<8x1xf32>
    %49 = vector.broadcast %48 : vector<8x1xf32> to vector<8x8xf32>
    %50 = arith.subf %46, %49 : vector<8x8xf32>
    %51 = math.exp %50 : vector<8x8xf32>
    %cst_18 = arith.constant dense<0.000000e+00> : vector<8xf32>
    %52 = vector.multi_reduction <add>, %51, %cst_18 [1] : vector<8x8xf32> to vector<8xf32>
    %53 = vector.shape_cast %52 : vector<8xf32> to vector<8x1xf32>
    %cst_19 = arith.constant 1.000000e+00 : f32
    %54 = vector.broadcast %cst_19 : f32 to vector<8x1xf32>
    %55 = arith.divf %54, %53 : vector<8x1xf32>
    %56 = arith.mulf %53, %55 : vector<8x1xf32>
    %57 = vector.extract_strided_slice %6 {offsets = [0, 16], sizes = [8, 8], strides = [1, 1]} : vector<8x32xf32> to vector<8x8xf32>
    %58 = vector.broadcast %56 : vector<8x1xf32> to vector<8x8xf32>
    %59 = arith.mulf %58, %57 : vector<8x8xf32>
    %c16 = arith.constant 16 : index
    %c0_20 = arith.constant 0 : index
    %60 = vector.load %arg14[%c16, %c0_20] : memref<64x8xf32, #tpu.memory_space<vmem>>, vector<8x8xf32>
    tpu.vector_store %arg14[%c16, %c0_20], %59 {strides = array<i32>} : memref<64x8xf32, #tpu.memory_space<vmem>>, vector<8x8xf32>,
    %61 = vector.extract_strided_slice %4 {offsets = [0, 24], sizes = [8, 8], strides = [1, 1]} : vector<8x32xf32> to vector<8x8xf32>
    %62 = vector.extract_strided_slice %5 {offsets = [0, 24], sizes = [8, 8], strides = [1, 1]} : vector<8x32xf32> to vector<8x8xf32>
    %cst_21 = arith.constant dense<0.000000e+00> : vector<8x8xf32>
    %63 = tpu.matmul %61, %62, %cst_21 {dimension_numbers = #tpu.dot_dimension_numbers<[1], [1], [0], [0], [0, 0, 1, 0], [], []>} : vector<8x8xf32>, vector<8x8xf32>, vector<8x8xf32> -> vector<8x8xf32>
    %64 = arith.addf %63, %1 : vector<8x8xf32>
    %cst_22 = arith.constant dense<0xFF800000> : vector<8xf32>
    %65 = vector.multi_reduction <maximumf>, %64, %cst_22 [1] : vector<8x8xf32> to vector<8xf32>
    %66 = vector.shape_cast %65 : vector<8xf32> to vector<8x1xf32>
    %67 = vector.broadcast %66 : vector<8x1xf32> to vector<8x8xf32>
    %68 = arith.subf %64, %67 : vector<8x8xf32>
    %69 = math.exp %68 : vector<8x8xf32>
    %cst_23 = arith.constant dense<0.000000e+00> : vector<8xf32>
    %70 = vector.multi_reduction <add>, %69, %cst_23 [1] : vector<8x8xf32> to vector<8xf32>
    %71 = vector.shape_cast %70 : vector<8xf32> to vector<8x1xf32>
    %cst_24 = arith.constant 1.000000e+00 : f32
    %72 = vector.broadcast %cst_24 : f32 to vector<8x1xf32>
    %73 = arith.divf %72, %71 : vector<8x1xf32>
    %74 = arith.mulf %71, %73 : vector<8x1xf32>
    %75 = vector.extract_strided_slice %6 {offsets = [0, 24], sizes = [8, 8], strides = [1, 1]} : vector<8x32xf32> to vector<8x8xf32>
    %76 = vector.broadcast %74 : vector<8x1xf32> to vector<8x8xf32>
    %77 = arith.mulf %76, %75 : vector<8x8xf32>
    %c24 = arith.constant 24 : index
    %c0_25 = arith.constant 0 : index
    %78 = vector.load %arg14[%c24, %c0_25] : memref<64x8xf32, #tpu.memory_space<vmem>>, vector<8x8xf32>
    tpu.vector_store %arg14[%c24, %c0_25], %77 {strides = array<i32>} : memref<64x8xf32, #tpu.memory_space<vmem>>, vector<8x8xf32>,
    %79 = vector.extract_strided_slice %3 {offsets = [8, 0], sizes = [8, 32], strides = [1, 1]} : vector<16x96xf32> to vector<8x32xf32>
    %80 = vector.extract_strided_slice %3 {offsets = [8, 32], sizes = [8, 32], strides = [1, 1]} : vector<16x96xf32> to vector<8x32xf32>
    %81 = vector.extract_strided_slice %3 {offsets = [8, 64], sizes = [8, 32], strides = [1, 1]} : vector<16x96xf32> to vector<8x32xf32>
    %82 = vector.extract_strided_slice %79 {offsets = [0, 0], sizes = [8, 8], strides = [1, 1]} : vector<8x32xf32> to vector<8x8xf32>
    %83 = vector.extract_strided_slice %80 {offsets = [0, 0], sizes = [8, 8], strides = [1, 1]} : vector<8x32xf32> to vector<8x8xf32>
    %cst_26 = arith.constant dense<0.000000e+00> : vector<8x8xf32>
    %84 = tpu.matmul %82, %83, %cst_26 {dimension_numbers = #tpu.dot_dimension_numbers<[1], [1], [0], [0], [0, 0, 1, 0], [], []>} : vector<8x8xf32>, vector<8x8xf32>, vector<8x8xf32> -> vector<8x8xf32>
    %85 = arith.addf %84, %1 : vector<8x8xf32>
    %cst_27 = arith.constant dense<0xFF800000> : vector<8xf32>
    %86 = vector.multi_reduction <maximumf>, %85, %cst_27 [1] : vector<8x8xf32> to vector<8xf32>
    %87 = vector.shape_cast %86 : vector<8xf32> to vector<8x1xf32>
    %88 = vector.broadcast %87 : vector<8x1xf32> to vector<8x8xf32>
    %89 = arith.subf %85, %88 : vector<8x8xf32>
    %90 = math.exp %89 : vector<8x8xf32>
    %cst_28 = arith.constant dense<0.000000e+00> : vector<8xf32>
    %91 = vector.multi_reduction <add>, %90, %cst_28 [1] : vector<8x8xf32> to vector<8xf32>
    %92 = vector.shape_cast %91 : vector<8xf32> to vector<8x1xf32>
    %cst_29 = arith.constant 1.000000e+00 : f32
    %93 = vector.broadcast %cst_29 : f32 to vector<8x1xf32>
    %94 = arith.divf %93, %92 : vector<8x1xf32>
    %95 = arith.mulf %92, %94 : vector<8x1xf32>
    %96 = vector.extract_strided_slice %81 {offsets = [0, 0], sizes = [8, 8], strides = [1, 1]} : vector<8x32xf32> to vector<8x8xf32>
    %97 = vector.broadcast %95 : vector<8x1xf32> to vector<8x8xf32>
    %98 = arith.mulf %97, %96 : vector<8x8xf32>
    %c32 = arith.constant 32 : index
    %c0_30 = arith.constant 0 : index
    %99 = vector.load %arg14[%c32, %c0_30] : memref<64x8xf32, #tpu.memory_space<vmem>>, vector<8x8xf32>
    tpu.vector_store %arg14[%c32, %c0_30], %98 {strides = array<i32>} : memref<64x8xf32, #tpu.memory_space<vmem>>, vector<8x8xf32>,
    %100 = vector.extract_strided_slice %79 {offsets = [0, 8], sizes = [8, 8], strides = [1, 1]} : vector<8x32xf32> to vector<8x8xf32>
    %101 = vector.extract_strided_slice %80 {offsets = [0, 8], sizes = [8, 8], strides = [1, 1]} : vector<8x32xf32> to vector<8x8xf32>
    %cst_31 = arith.constant dense<0.000000e+00> : vector<8x8xf32>
    %102 = tpu.matmul %100, %101, %cst_31 {dimension_numbers = #tpu.dot_dimension_numbers<[1], [1], [0], [0], [0, 0, 1, 0], [], []>} : vector<8x8xf32>, vector<8x8xf32>, vector<8x8xf32> -> vector<8x8xf32>
    %103 = arith.addf %102, %1 : vector<8x8xf32>
    %cst_32 = arith.constant dense<0xFF800000> : vector<8xf32>
    %104 = vector.multi_reduction <maximumf>, %103, %cst_32 [1] : vector<8x8xf32> to vector<8xf32>
    %105 = vector.shape_cast %104 : vector<8xf32> to vector<8x1xf32>
    %106 = vector.broadcast %105 : vector<8x1xf32> to vector<8x8xf32>
    %107 = arith.subf %103, %106 : vector<8x8xf32>
    %108 = math.exp %107 : vector<8x8xf32>
    %cst_33 = arith.constant dense<0.000000e+00> : vector<8xf32>
    %109 = vector.multi_reduction <add>, %108, %cst_33 [1] : vector<8x8xf32> to vector<8xf32>
    %110 = vector.shape_cast %109 : vector<8xf32> to vector<8x1xf32>
    %cst_34 = arith.constant 1.000000e+00 : f32
    %111 = vector.broadcast %cst_34 : f32 to vector<8x1xf32>
    %112 = arith.divf %111, %110 : vector<8x1xf32>
    %113 = arith.mulf %110, %112 : vector<8x1xf32>
    %114 = vector.extract_strided_slice %81 {offsets = [0, 8], sizes = [8, 8], strides = [1, 1]} : vector<8x32xf32> to vector<8x8xf32>
    %115 = vector.broadcast %113 : vector<8x1xf32> to vector<8x8xf32>
    %116 = arith.mulf %115, %114 : vector<8x8xf32>
    %c40 = arith.constant 40 : index
    %c0_35 = arith.constant 0 : index
    %117 = vector.load %arg14[%c40, %c0_35] : memref<64x8xf32, #tpu.memory_space<vmem>>, vector<8x8xf32>
    tpu.vector_store %arg14[%c40, %c0_35], %116 {strides = array<i32>} : memref<64x8xf32, #tpu.memory_space<vmem>>, vector<8x8xf32>,
    %118 = vector.extract_strided_slice %79 {offsets = [0, 16], sizes = [8, 8], strides = [1, 1]} : vector<8x32xf32> to vector<8x8xf32>
    %119 = vector.extract_strided_slice %80 {offsets = [0, 16], sizes = [8, 8], strides = [1, 1]} : vector<8x32xf32> to vector<8x8xf32>
    %cst_36 = arith.constant dense<0.000000e+00> : vector<8x8xf32>
    %120 = tpu.matmul %118, %119, %cst_36 {dimension_numbers = #tpu.dot_dimension_numbers<[1], [1], [0], [0], [0, 0, 1, 0], [], []>} : vector<8x8xf32>, vector<8x8xf32>, vector<8x8xf32> -> vector<8x8xf32>
    %121 = arith.addf %120, %1 : vector<8x8xf32>
    %cst_37 = arith.constant dense<0xFF800000> : vector<8xf32>
    %122 = vector.multi_reduction <maximumf>, %121, %cst_37 [1] : vector<8x8xf32> to vector<8xf32>
    %123 = vector.shape_cast %122 : vector<8xf32> to vector<8x1xf32>
    %124 = vector.broadcast %123 : vector<8x1xf32> to vector<8x8xf32>
    %125 = arith.subf %121, %124 : vector<8x8xf32>
    %126 = math.exp %125 : vector<8x8xf32>
    %cst_38 = arith.constant dense<0.000000e+00> : vector<8xf32>
    %127 = vector.multi_reduction <add>, %126, %cst_38 [1] : vector<8x8xf32> to vector<8xf32>
    %128 = vector.shape_cast %127 : vector<8xf32> to vector<8x1xf32>
    %cst_39 = arith.constant 1.000000e+00 : f32
    %129 = vector.broadcast %cst_39 : f32 to vector<8x1xf32>
    %130 = arith.divf %129, %128 : vector<8x1xf32>
    %131 = arith.mulf %128, %130 : vector<8x1xf32>
    %132 = vector.extract_strided_slice %81 {offsets = [0, 16], sizes = [8, 8], strides = [1, 1]} : vector<8x32xf32> to vector<8x8xf32>
    %133 = vector.broadcast %131 : vector<8x1xf32> to vector<8x8xf32>
    %134 = arith.mulf %133, %132 : vector<8x8xf32>
    %c48 = arith.constant 48 : index
    %c0_40 = arith.constant 0 : index
    %135 = vector.load %arg14[%c48, %c0_40] : memref<64x8xf32, #tpu.memory_space<vmem>>, vector<8x8xf32>
    tpu.vector_store %arg14[%c48, %c0_40], %134 {strides = array<i32>} : memref<64x8xf32, #tpu.memory_space<vmem>>, vector<8x8xf32>,
    %136 = vector.extract_strided_slice %79 {offsets = [0, 24], sizes = [8, 8], strides = [1, 1]} : vector<8x32xf32> to vector<8x8xf32>
    %137 = vector.extract_strided_slice %80 {offsets = [0, 24], sizes = [8, 8], strides = [1, 1]} : vector<8x32xf32> to vector<8x8xf32>
    %cst_41 = arith.constant dense<0.000000e+00> : vector<8x8xf32>
    %138 = tpu.matmul %136, %137, %cst_41 {dimension_numbers = #tpu.dot_dimension_numbers<[1], [1], [0], [0], [0, 0, 1, 0], [], []>} : vector<8x8xf32>, vector<8x8xf32>, vector<8x8xf32> -> vector<8x8xf32>
    %139 = arith.addf %138, %1 : vector<8x8xf32>
    %cst_42 = arith.constant dense<0xFF800000> : vector<8xf32>
    %140 = vector.multi_reduction <maximumf>, %139, %cst_42 [1] : vector<8x8xf32> to vector<8xf32>
    %141 = vector.shape_cast %140 : vector<8xf32> to vector<8x1xf32>
    %142 = vector.broadcast %141 : vector<8x1xf32> to vector<8x8xf32>
    %143 = arith.subf %139, %142 : vector<8x8xf32>
    %144 = math.exp %143 : vector<8x8xf32>
    %cst_43 = arith.constant dense<0.000000e+00> : vector<8xf32>
    %145 = vector.multi_reduction <add>, %144, %cst_43 [1] : vector<8x8xf32> to vector<8xf32>
    %146 = vector.shape_cast %145 : vector<8xf32> to vector<8x1xf32>
    %cst_44 = arith.constant 1.000000e+00 : f32
    %147 = vector.broadcast %cst_44 : f32 to vector<8x1xf32>
    %148 = arith.divf %147, %146 : vector<8x1xf32>
    %149 = arith.mulf %146, %148 : vector<8x1xf32>
    %150 = vector.extract_strided_slice %81 {offsets = [0, 24], sizes = [8, 8], strides = [1, 1]} : vector<8x32xf32> to vector<8x8xf32>
    %151 = vector.broadcast %149 : vector<8x1xf32> to vector<8x8xf32>
    %152 = arith.mulf %151, %150 : vector<8x8xf32>
    %c56 = arith.constant 56 : index
    %c0_45 = arith.constant 0 : index
    %153 = vector.load %arg14[%c56, %c0_45] : memref<64x8xf32, #tpu.memory_space<vmem>>, vector<8x8xf32>
    tpu.vector_store %arg14[%c56, %c0_45], %152 {strides = array<i32>} : memref<64x8xf32, #tpu.memory_space<vmem>>, vector<8x8xf32>,
    %cst_46 = arith.constant 0.000000e+00 : f32
    %154 = vector.broadcast %cst_46 : f32 to vector<16x32xf32>
    %c0_47 = arith.constant 0 : index
    %c0_48 = arith.constant 0 : index
    %155 = tpu.strided_load %arg14[%c0_47, %c0_48] {strides = array<i32: 4, 1>} : memref<64x8xf32, #tpu.memory_space<vmem>>, vector<16x8xf32>
    %c0_49 = arith.constant 0 : index
    %c0_50 = arith.constant 0 : index
    %156 = vector.load %arg4[%c0_49, %c0_50] : memref<32x32xf32, #tpu.memory_space<vmem>>, vector<8x32xf32>
    %cst_51 = arith.constant dense<0.000000e+00> : vector<16x32xf32>
    %157 = tpu.matmul %155, %156, %cst_51 {dimension_numbers = #tpu.dot_dimension_numbers<[1], [0], [0], [1], [0, 0, 1, 1], [], []>} : vector<16x8xf32>, vector<8x32xf32>, vector<16x32xf32> -> vector<16x32xf32>
    %158 = arith.addf %154, %157 : vector<16x32xf32>
    %c1 = arith.constant 1 : index
    %c0_52 = arith.constant 0 : index
    %159 = tpu.strided_load %arg14[%c1, %c0_52] {strides = array<i32: 4, 1>} : memref<64x8xf32, #tpu.memory_space<vmem>>, vector<16x8xf32>
    %c8_53 = arith.constant 8 : index
    %c0_54 = arith.constant 0 : index
    %160 = vector.load %arg4[%c8_53, %c0_54] : memref<32x32xf32, #tpu.memory_space<vmem>>, vector<8x32xf32>
    %cst_55 = arith.constant dense<0.000000e+00> : vector<16x32xf32>
    %161 = tpu.matmul %159, %160, %cst_55 {dimension_numbers = #tpu.dot_dimension_numbers<[1], [0], [0], [1], [0, 0, 1, 1], [], []>} : vector<16x8xf32>, vector<8x32xf32>, vector<16x32xf32> -> vector<16x32xf32>
    %162 = arith.addf %158, %161 : vector<16x32xf32>
    %c2 = arith.constant 2 : index
    %c0_56 = arith.constant 0 : index
    %163 = tpu.strided_load %arg14[%c2, %c0_56] {strides = array<i32: 4, 1>} : memref<64x8xf32, #tpu.memory_space<vmem>>, vector<16x8xf32>
    %c16_57 = arith.constant 16 : index
    %c0_58 = arith.constant 0 : index
    %164 = vector.load %arg4[%c16_57, %c0_58] : memref<32x32xf32, #tpu.memory_space<vmem>>, vector<8x32xf32>
    %cst_59 = arith.constant dense<0.000000e+00> : vector<16x32xf32>
    %165 = tpu.matmul %163, %164, %cst_59 {dimension_numbers = #tpu.dot_dimension_numbers<[1], [0], [0], [1], [0, 0, 1, 1], [], []>} : vector<16x8xf32>, vector<8x32xf32>, vector<16x32xf32> -> vector<16x32xf32>
    %166 = arith.addf %162, %165 : vector<16x32xf32>
    %c3 = arith.constant 3 : index
    %c0_60 = arith.constant 0 : index
    %167 = tpu.strided_load %arg14[%c3, %c0_60] {strides = array<i32: 4, 1>} : memref<64x8xf32, #tpu.memory_space<vmem>>, vector<16x8xf32>
    %c24_61 = arith.constant 24 : index
    %c0_62 = arith.constant 0 : index
    %168 = vector.load %arg4[%c24_61, %c0_62] : memref<32x32xf32, #tpu.memory_space<vmem>>, vector<8x32xf32>
    %cst_63 = arith.constant dense<0.000000e+00> : vector<16x32xf32>
    %169 = tpu.matmul %167, %168, %cst_63 {dimension_numbers = #tpu.dot_dimension_numbers<[1], [0], [0], [1], [0, 0, 1, 1], [], []>} : vector<16x8xf32>, vector<8x32xf32>, vector<16x32xf32> -> vector<16x32xf32>
    %170 = arith.addf %166, %169 : vector<16x32xf32>
    %171 = arith.addf %0, %170 : vector<16x32xf32>
    %cst_64 = arith.constant dense<0.000000e+00> : vector<16xf32>
    %172 = vector.multi_reduction <add>, %171, %cst_64 [1] : vector<16x32xf32> to vector<16xf32>
    %173 = vector.shape_cast %172 : vector<16xf32> to vector<16x1xf32>
    %cst_65 = arith.constant 3.200000e+01 : f32
    %174 = vector.broadcast %cst_65 : f32 to vector<16x1xf32>
    %175 = arith.divf %173, %174 : vector<16x1xf32>
    %176 = vector.broadcast %175 : vector<16x1xf32> to vector<16x32xf32>
    %177 = arith.subf %171, %176 : vector<16x32xf32>
    %178 = vector.broadcast %175 : vector<16x1xf32> to vector<16x32xf32>
    %179 = arith.subf %171, %178 : vector<16x32xf32>
    %180 = arith.mulf %177, %179 : vector<16x32xf32>
    %cst_66 = arith.constant dense<0.000000e+00> : vector<16xf32>
    %181 = vector.multi_reduction <add>, %180, %cst_66 [1] : vector<16x32xf32> to vector<16xf32>
    %182 = vector.shape_cast %181 : vector<16xf32> to vector<16x1xf32>
    %cst_67 = arith.constant 3.200000e+01 : f32
    %183 = vector.broadcast %cst_67 : f32 to vector<16x1xf32>
    %184 = arith.divf %182, %183 : vector<16x1xf32>
    %185 = vector.broadcast %175 : vector<16x1xf32> to vector<16x32xf32>
    %186 = arith.subf %171, %185 : vector<16x32xf32>
    %cst_68 = arith.constant 9.99999974E-6 : f32
    %187 = vector.broadcast %cst_68 : f32 to vector<16x1xf32>
    %188 = arith.addf %184, %187 : vector<16x1xf32>
    %189 = math.rsqrt %188 : vector<16x1xf32>
    %190 = vector.broadcast %189 : vector<16x1xf32> to vector<16x32xf32>
    %191 = arith.mulf %186, %190 : vector<16x32xf32>
    %c0_69 = arith.constant 0 : index
    %c0_70 = arith.constant 0 : index
    %192 = vector.load %arg5[%c0_69, %c0_70] : memref<1x32xf32, #tpu.memory_space<vmem>>, vector<1x32xf32>
    %193 = vector.broadcast %192 : vector<1x32xf32> to vector<16x32xf32>
    %194 = arith.mulf %191, %193 : vector<16x32xf32>
    %c0_71 = arith.constant 0 : index
    %c0_72 = arith.constant 0 : index
    %195 = vector.load %arg6[%c0_71, %c0_72] : memref<1x32xf32, #tpu.memory_space<vmem>>, vector<1x32xf32>
    %196 = vector.broadcast %195 : vector<1x32xf32> to vector<16x32xf32>
    %197 = arith.addf %194, %196 : vector<16x32xf32>
    %c0_73 = arith.constant 0 : index
    %c0_74 = arith.constant 0 : index
    %198 = vector.load %arg7[%c0_73, %c0_74] : memref<32x64xf32, #tpu.memory_space<vmem>>, vector<32x64xf32>
    %cst_75 = arith.constant dense<0.000000e+00> : vector<16x64xf32>
    %199 = tpu.matmul %197, %198, %cst_75 {dimension_numbers = #tpu.dot_dimension_numbers<[1], [0], [0], [1], [0, 0, 1, 1], [], []>} : vector<16x32xf32>, vector<32x64xf32>, vector<16x64xf32> -> vector<16x64xf32>
    %c0_76 = arith.constant 0 : index
    %c0_77 = arith.constant 0 : index
    %200 = vector.load %arg8[%c0_76, %c0_77] : memref<1x64xf32, #tpu.memory_space<vmem>>, vector<1x64xf32>
    %201 = vector.broadcast %200 : vector<1x64xf32> to vector<16x64xf32>
    %202 = arith.addf %199, %201 : vector<16x64xf32>
    %cst_78 = arith.constant 0.000000e+00 : f32
    %203 = vector.broadcast %cst_78 : f32 to vector<16x64xf32>
    %204 = arith.maximumf %202, %203 : vector<16x64xf32>
    %c0_79 = arith.constant 0 : index
    %c0_80 = arith.constant 0 : index
    %205 = vector.load %arg9[%c0_79, %c0_80] : memref<64x32xf32, #tpu.memory_space<vmem>>, vector<64x32xf32>
    %cst_81 = arith.constant dense<0.000000e+00> : vector<16x32xf32>
    %206 = tpu.matmul %204, %205, %cst_81 {dimension_numbers = #tpu.dot_dimension_numbers<[1], [0], [0], [1], [0, 0, 1, 1], [], []>} : vector<16x64xf32>, vector<64x32xf32>, vector<16x32xf32> -> vector<16x32xf32>
    %c0_82 = arith.constant 0 : index
    %c0_83 = arith.constant 0 : index
    %207 = vector.load %arg10[%c0_82, %c0_83] : memref<1x32xf32, #tpu.memory_space<vmem>>, vector<1x32xf32>
    %208 = vector.broadcast %207 : vector<1x32xf32> to vector<16x32xf32>
    %209 = arith.addf %206, %208 : vector<16x32xf32>
    %210 = arith.addf %197, %209 : vector<16x32xf32>
    %cst_84 = arith.constant dense<0.000000e+00> : vector<16xf32>
    %211 = vector.multi_reduction <add>, %210, %cst_84 [1] : vector<16x32xf32> to vector<16xf32>
    %212 = vector.shape_cast %211 : vector<16xf32> to vector<16x1xf32>
    %cst_85 = arith.constant 3.200000e+01 : f32
    %213 = vector.broadcast %cst_85 : f32 to vector<16x1xf32>
    %214 = arith.divf %212, %213 : vector<16x1xf32>
    %215 = vector.broadcast %214 : vector<16x1xf32> to vector<16x32xf32>
    %216 = arith.subf %210, %215 : vector<16x32xf32>
    %217 = vector.broadcast %214 : vector<16x1xf32> to vector<16x32xf32>
    %218 = arith.subf %210, %217 : vector<16x32xf32>
    %219 = arith.mulf %216, %218 : vector<16x32xf32>
    %cst_86 = arith.constant dense<0.000000e+00> : vector<16xf32>
    %220 = vector.multi_reduction <add>, %219, %cst_86 [1] : vector<16x32xf32> to vector<16xf32>
    %221 = vector.shape_cast %220 : vector<16xf32> to vector<16x1xf32>
    %cst_87 = arith.constant 3.200000e+01 : f32
    %222 = vector.broadcast %cst_87 : f32 to vector<16x1xf32>
    %223 = arith.divf %221, %222 : vector<16x1xf32>
    %224 = vector.broadcast %214 : vector<16x1xf32> to vector<16x32xf32>
    %225 = arith.subf %210, %224 : vector<16x32xf32>
    %cst_88 = arith.constant 9.99999974E-6 : f32
    %226 = vector.broadcast %cst_88 : f32 to vector<16x1xf32>
    %227 = arith.addf %223, %226 : vector<16x1xf32>
    %228 = math.rsqrt %227 : vector<16x1xf32>
    %229 = vector.broadcast %228 : vector<16x1xf32> to vector<16x32xf32>
    %230 = arith.mulf %225, %229 : vector<16x32xf32>
    %c0_89 = arith.constant 0 : index
    %c0_90 = arith.constant 0 : index
    %231 = vector.load %arg11[%c0_89, %c0_90] : memref<1x32xf32, #tpu.memory_space<vmem>>, vector<1x32xf32>
    %232 = vector.broadcast %231 : vector<1x32xf32> to vector<16x32xf32>
    %233 = arith.mulf %230, %232 : vector<16x32xf32>
    %c0_91 = arith.constant 0 : index
    %c0_92 = arith.constant 0 : index
    %234 = vector.load %arg12[%c0_91, %c0_92] : memref<1x32xf32, #tpu.memory_space<vmem>>, vector<1x32xf32>
    %235 = vector.broadcast %234 : vector<1x32xf32> to vector<16x32xf32>
    %236 = arith.addf %233, %235 : vector<16x32xf32>
    %c0_93 = arith.constant 0 : index
    %c0_94 = arith.constant 0 : index
    %237 = vector.load %arg13[%c0_93, %c0_94] : memref<16x32xf32, #tpu.memory_space<vmem>>, vector<16x32xf32>
    tpu.vector_store %arg13[%c0_93, %c0_94], %236 {strides = array<i32>} : memref<16x32xf32, #tpu.memory_space<vmem>>, vector<16x32xf32>,
    return
  }
  func.func @transform_0(%arg0: i32) -> (i32, i32) {
    %c0_i32 = arith.constant 0 : i32
    %c0_i32_0 = arith.constant 0 : i32
    return %arg0, %c0_i32 : i32, i32
  }
  func.func @transform_1(%arg0: i32) -> (i32, i32) {
    %c0_i32 = arith.constant 0 : i32
    %c0_i32_0 = arith.constant 0 : i32
    %c0_i32_1 = arith.constant 0 : i32
    return %c0_i32, %c0_i32_0 : i32, i32
  }
  func.func @transform_2(%arg0: i32) -> (i32, i32) {
    %c0_i32 = arith.constant 0 : i32
    %c0_i32_0 = arith.constant 0 : i32
    %c0_i32_1 = arith.constant 0 : i32
    return %c0_i32, %c0_i32_0 : i32, i32
  }
  func.func @transform_3(%arg0: i32) -> (i32, i32) {
    %c0_i32 = arith.constant 0 : i32
    %c0_i32_0 = arith.constant 0 : i32
    %c0_i32_1 = arith.constant 0 : i32
    return %c0_i32, %c0_i32_0 : i32, i32
  }
  func.func @transform_4(%arg0: i32) -> (i32, i32) {
    %c0_i32 = arith.constant 0 : i32
    %c0_i32_0 = arith.constant 0 : i32
    %c0_i32_1 = arith.constant 0 : i32
    return %c0_i32, %c0_i32_0 : i32, i32
  }
  func.func @transform_5(%arg0: i32) -> (i32, i32) {
    %c0_i32 = arith.constant 0 : i32
    %c0_i32_0 = arith.constant 0 : i32
    %c0_i32_1 = arith.constant 0 : i32
    return %c0_i32, %c0_i32_0 : i32, i32
  }
  func.func @transform_6(%arg0: i32) -> (i32, i32) {
    %c0_i32 = arith.constant 0 : i32
    %c0_i32_0 = arith.constant 0 : i32
    %c0_i32_1 = arith.constant 0 : i32
    return %c0_i32, %c0_i32_0 : i32, i32
  }
  func.func @transform_7(%arg0: i32) -> (i32, i32) {
    %c0_i32 = arith.constant 0 : i32
    %c0_i32_0 = arith.constant 0 : i32
    %c0_i32_1 = arith.constant 0 : i32
    return %c0_i32, %c0_i32_0 : i32, i32
  }
  func.func @transform_8(%arg0: i32) -> (i32, i32) {
    %c0_i32 = arith.constant 0 : i32
    %c0_i32_0 = arith.constant 0 : i32
    %c0_i32_1 = arith.constant 0 : i32
    return %c0_i32, %c0_i32_0 : i32, i32
  }
  func.func @transform_9(%arg0: i32) -> (i32, i32) {
    %c0_i32 = arith.constant 0 : i32
    %c0_i32_0 = arith.constant 0 : i32
    %c0_i32_1 = arith.constant 0 : i32
    return %c0_i32, %c0_i32_0 : i32, i32
  }
  func.func @transform_10(%arg0: i32) -> (i32, i32) {
    %c0_i32 = arith.constant 0 : i32
    %c0_i32_0 = arith.constant 0 : i32
    %c0_i32_1 = arith.constant 0 : i32
    return %c0_i32, %c0_i32_0 : i32, i32
  }
  func.func @transform_11(%arg0: i32) -> (i32, i32) {
    %c0_i32 = arith.constant 0 : i32
    %c0_i32_0 = arith.constant 0 : i32
    %c0_i32_1 = arith.constant 0 : i32
    return %c0_i32, %c0_i32_0 : i32, i32
  }
  func.func @transform_12(%arg0: i32) -> (i32, i32) {
    %c0_i32 = arith.constant 0 : i32
    %c0_i32_0 = arith.constant 0 : i32
    return %arg0, %c0_i32 : i32, i32
  }
}

</mosaic_0001>

<bundles_post_ra>
// kernel: tpu_custom_call.1
= control target key start
LH: loop header
LB: loop body
LE: loop exit
PB: predicated region body
PF: predicated region fallthrough
CT: control target
= control target key end

     0   :  { %17 = vsyncpa [#allocation4], 0  ;;  %s1460_s0 = inlined_call_operand.hbm [shape: f32[16,32], index: 0, kind: input, shape index: {}]   ;;  %s1461_s1 = inlined_call_operand.hbm [shape: f32[8,8], index: 1, kind: input, shape index: {}]   ;;  %s1462_s2 = inlined_call_operand.vmem [shape: f32[32,96], index: 2, kind: input, shape index: {}]   ;;  %s1463_s3 = inlined_call_operand.vmem [shape: f32[32,32], index: 3, kind: input, shape index: {}]   ;;  %s1464_s4 = inlined_call_operand.vmem [shape: f32[1,32], index: 4, kind: input, shape index: {}]   ;;  %s1465_s5 = inlined_call_operand.vmem [shape: f32[1,32], index: 5, kind: input, shape index: {}]   ;;  %s1466_s6 = inlined_call_operand.vmem [shape: f32[32,64], index: 6, kind: input, shape index: {}]   ;;  %s1467_s7 = inlined_call_operand.vmem [shape: f32[1,64], index: 7, kind: input, shape index: {}]   ;;  %s1468_s8 = inlined_call_operand.vmem [shape: f32[64,32], index: 8, kind: input, shape index: {}]   ;;  %s1469_s9 = inlined_call_operand.vmem [shape: f32[1,32], index: 9, kind: input, shape index: {}]   ;;  %s1470_s10 = inlined_call_operand.vmem [shape: f32[1,32], index: 10, kind: input, shape index: {}]   ;;  %s1471_s11 = inlined_call_operand.vmem [shape: f32[1,32], index: 11, kind: input, shape index: {}]   ;;  %s1472_s12 = inlined_call_operand.hbm [shape: f32[16,32], index: 12, kind: output, shape index: {}]  }
   0x1   :  { %18 = vsyncpa [#allocation7], 0 }
   0x2   :  { %19 = vsyncpa [#allocation5], 0  ;;  %s24_s23 = sshll.u32 %s1460_s0, 4  ;;  %s1126_s24 = smov [#allocation3]   ;;  %s25_s23 = int_to_ptr.hbm [resolvable:$true] %s24_s23 }
   0x3   :  { %s26_s25 = sshll.u32 %s1126_s24, 4  ;;  %s38_s28 = sshll.u32 %s1461_s1, 4  ;;  %s27_s25 = int_to_ptr.vmem [resolvable:$true] %s26_s25  ;;  %s39_s28 = int_to_ptr.hbm [resolvable:$true] %s38_s28 }
   0x4   :  { %s1127_s29 = smov 128   ;;  %s1128_s30 = smov 8  }
   0x5   :  { %32 = dma.hbm_to_vmem [thread:$0]  %s25_s23, 256, %s27_s25, [#allocation4], %s1127_s29, %s1127_s29, %s1128_s30  }
   0x6   :  { %s1129_s13 = smov [#allocation6]  }
   0x7   :  { %s40_s14 = sshll.u32 %s1129_s13, 4  ;;  %s41_s14 = int_to_ptr.vmem [resolvable:$true] %s40_s14 }
   0x8   :  { %43 = dma.hbm_to_vmem [thread:$0]  %s39_s28, 128, %s41_s14, [#allocation7]  }
   0x9   :  { %1120 = dma.done.wait [#allocation4], 256  }
   0xa   :  { %1121 = vsyncadd [#allocation4], 4294967040 }
   0xb   :  { %1122 = dma.done.wait [#allocation7], 128  }
   0xc   :  { %1123 = vsyncadd [#allocation7], 4294967168  ;;  %v78_v0 = vld [vmem:[%s1462_s2 + $0x18] sm:$0xff]  ;;  %v77_v1 = vld [vmem:[%s1462_s2 + $0x10] sm:$0xff]  ;;  %vm79_vm0 = vcmask 261120   ;;  %s1130_s21 = smov 112  }
   0xd   :  { %98 = vmatpush.msra.mxu0 %v78_v0  ;;  %v76_v2 = vld [vmem:[%s1462_s2 + $0x8] sm:$0xff]  ;;  %v75_v3 = vld [vmem:[%s1462_s2] sm:$0xff]  ;;  %s1131_s22 = smov 96   ;;  %s1132_s2 = smov 88   ;;  %vm112_vm1 = vcmask 64512   ;;  %v74_v22 = vld [vmem:[#allocation6] sm:$0xff] }
   0xe   :  { %v1229_v4 = vld [vmem:[#allocation3] sm:$0xff]  ;;  %v1233_v5 = vld [vmem:[#allocation3 + $0x8] sm:$0xff]  ;;  %s1133_s23 = smov 80   ;;  %s1134_s24 = smov 120  }
   0xf   :  { %99 = vmatpush.msra.mxu0 %v77_v1  ;;  %s1135_s25 = smov 72   ;;  %s1136_s26 = smov 104  }
  0x10   :  { %s1137_s27 = smov 64   ;;  %s1138_s28 = smov 56  }
  0x11   :  { %100 = vmatpush.msra.mxu0 %v76_v2  ;;  %s1139_s13 = smov 48   ;;  %s1140_s14 = smov 40  }
  0x12   :  { %s931_s15 = sshll.u32 %s1472_s12, 4  ;;  %s932_s15 = int_to_ptr.hbm [resolvable:$true] %s931_s15 }
  0x13   :  { %101 = vmatpush.msra.mxu0 %v75_v3 }
  0x14   :  { %945 = vmatmul.msk.f32.vlgmr.msra.gmra.mxu0 %vm79_vm0, %v1229_v4 }
  0x1c   :  { %946 = vmatmul.msk.f32.gmra.mxu0 %vm79_vm0, %v1233_v5 }
  0x91   :  { %v1237_v6 = vpop.f32.mrf.mxu0 }
  0x92   :  { %227 = vrot.lane.b32.xlu2 %v1237_v6, %s1130_s21  ;;  %110 = vrot.lane.b32.xlu1 %v1237_v6, %s1131_s22 }
  0x93   :  { %170 = vrot.lane.b32.xlu0 %v1237_v6, %s1132_s2 }
  0x99   :  { %v1242_v7 = vpop.f32.mrf.mxu0 }
  0x9a   :  { %229 = vrot.lane.b32.xlu1 %v1237_v6, %s1133_s23  ;;  %346 = vrot.lane.b32.xlu2 %v1242_v7, %s1131_s22 }
  0x9b   :  { %168 = vrot.lane.b32.xlu0 %v1237_v6, %s1134_s24 }
  0xa2   :  { %405 = vrot.lane.b32.xlu1 %v1242_v7, %s1132_s2  ;;  %523 = vrot.lane.b32.xlu2 %v1242_v7, %s1135_s25 }
  0xa3   :  { %288 = vrot.lane.b32.xlu0 %v1237_v6, %s1135_s25 }
  0xaa   :  { %403 = vrot.lane.b32.xlu1 %v1242_v7, %s1134_s24  ;;  %521 = vrot.lane.b32.xlu2 %v1242_v7, %s1136_s26 }
  0xab   :  { %286 = vrot.lane.b32.xlu0 %v1237_v6, %s1136_s26 }
  0xb2   :  { %462 = vrot.lane.b32.xlu1 %v1242_v7, %s1130_s21 }
  0xb3   :  { %464 = vrot.lane.b32.xlu0 %v1242_v7, %s1133_s23 }
  0xec   :  { %v228_v8 = vpop.permute.xlu2 %227 }
  0xf4   :  { %v347_v9 = vpop.permute.xlu2 %346 }
  0xfc   :  { %v524_v14 = vpop.permute.xlu2 %523 }
 0x104   :  { %v111_v10 = vpop.permute.xlu1 %110  ;;  %v522_v18 = vpop.permute.xlu2 %521 }
 0x105   :  { %v171_v11 = vpop.permute.xlu0 %170  ;;  %947 = vmatpush.xpose.msk.msra.mxu1 %vm112_vm1, %v111_v10 }
 0x106   :  { %949 = vmatpush.xpose.msk.msra.mxu2 %vm112_vm1, %v171_v11 }
 0x108   :  { %948 = vmatmul.msk.f32.vlgmr.msra.gmra.mxu1 %vm112_vm1, %v1237_v6 }
 0x10a   :  { %955 = vmatpush.xpose.msk.msrb.mxu2 %vm112_vm1, %v347_v9 }
 0x10c   :  { %v230_v12 = vpop.permute.xlu1 %229 }
 0x10d   :  { %v169_v13 = vpop.permute.xlu0 %168  ;;  %951 = vmatpush.xpose.msk.msra.mxu3 %vm112_vm1, %v230_v12 }
 0x10e   :  { %950 = vmatmul.msk.f32.vlgmr.msra.gmra.mxu2 %vm112_vm1, %v169_v13 }
 0x10f   :  { %961 = vmatpush.xpose.msk.msra.mxu2 %vm112_vm1, %v524_v14 }
 0x110   :  { %952 = vmatmul.msk.f32.vlgmr.msra.gmra.mxu3 %vm112_vm1, %v228_v8 }
 0x114   :  { %v406_v15 = vpop.permute.xlu1 %405 }
 0x115   :  { %v289_v16 = vpop.permute.xlu0 %288  ;;  %957 = vmatpush.xpose.msk.msrb.mxu3 %vm112_vm1, %v406_v15 }
 0x116   :  { %953 = vmatpush.xpose.msk.msrb.mxu1 %vm112_vm1, %v289_v16  ;;  %956 = vmatmul.msk.f32.vlgmr.msrb.gmra.mxu2 %vm112_vm1, %v1242_v7 }
 0x11c   :  { %v404_v17 = vpop.permute.xlu1 %403 }
 0x11d   :  { %v287_v19 = vpop.permute.xlu0 %286  ;;  %958 = vmatmul.msk.f32.vlgmr.msrb.gmra.mxu3 %vm112_vm1, %v404_v17 }
 0x11e   :  { %954 = vmatmul.msk.f32.vlgmr.msrb.gmra.mxu1 %vm112_vm1, %v287_v19  ;;  %962 = vmatmul.msk.f32.vlgmr.msra.gmra.mxu2 %vm112_vm1, %v522_v18 }
 0x124   :  { %v463_v21 = vpop.permute.xlu1 %462 }
 0x125   :  { %v465_v20 = vpop.permute.xlu0 %464 }
 0x126   :  { %959 = vmatpush.xpose.msk.msra.mxu1 %vm112_vm1, %v465_v20 }
 0x129   :  { %960 = vmatmul.msk.f32.vlgmr.msra.gmra.mxu1 %vm112_vm1, %v463_v21 }
 0x185   :  { %v134_v23 = vpop.f32.mrf.mxu1 }
 0x186   :  { %v135_v24 = vadd.f32 %v134_v23, %v74_v22 }
 0x188   :  { %v137_v25 = vsel %vm112_vm1, %v135_v24, -inf }
 0x189   :  { %138 = vmax.xlane.f32.xlu2 %v137_v25 }
 0x191   :  { %v193_v26 = vpop.f32.mrf.mxu2 }
 0x192   :  { %v194_v27 = vadd.f32 %v193_v26, %v74_v22 }
 0x193   :  { %v252_v28 = vpop.f32.mrf.mxu3 }
 0x194   :  { %v253_v29 = vadd.f32 %v252_v28, %v74_v22  ;;  %v196_v30 = vsel %vm112_vm1, %v194_v27, -inf }
 0x195   :  { %197 = vmax.xlane.f32.xlu0 %v196_v30 }
 0x196   :  { %v255_v31 = vsel %vm112_vm1, %v253_v29, -inf }
 0x197   :  { %256 = vmax.xlane.f32.xlu1 %v255_v31 }
 0x199   :  { %v369_v34 = vpop.f32.mrf.mxu2 }
 0x19a   :  { %v370_v38 = vadd.f32 %v369_v34, %v74_v22 }
 0x19b   :  { %v311_v32 = vpop.f32.mrf.mxu1 }
 0x19c   :  { %v312_v33 = vadd.f32 %v311_v32, %v74_v22  ;;  %v372_v41 = vsel %vm112_vm1, %v370_v38, -inf }
 0x19e   :  { %v314_v35 = vsel %vm112_vm1, %v312_v33, -inf }
 0x19f   :  { %315 = vmax.xlane.f32.xlu2 %v314_v35 }
 0x1a0   :  { %v428_v36 = vpop.f32.mrf.mxu3 }
 0x1a1   :  { %v429_v37 = vadd.f32 %v428_v36, %v74_v22  ;;  %v546_v42 = vpop.f32.mrf.mxu2 }
 0x1a2   :  { %v547_v45 = vadd.f32 %v546_v42, %v74_v22 }
 0x1a3   :  { %v431_v39 = vsel %vm112_vm1, %v429_v37, -inf }
 0x1a4   :  { %432 = vmax.xlane.f32.xlu0 %v431_v39  ;;  %v549_v46 = vsel %vm112_vm1, %v547_v45, -inf }
 0x1a6   :  { %v487_v40 = vpop.f32.mrf.mxu1 }
 0x1a7   :  { %v488_v43 = vadd.f32 %v487_v40, %v74_v22  ;;  %373 = vmax.xlane.f32.xlu2 %v372_v41 }
 0x1a9   :  { %v490_v44 = vsel %vm112_vm1, %v488_v43, -inf }
 0x1aa   :  { %491 = vmax.xlane.f32.xlu1 %v490_v44 }
 0x1af   :  { %550 = vmax.xlane.f32.xlu2 %v549_v46 }
 0x1fc   :  { %v139_v47 = vpop.xlane.xlu2 %138 }
 0x1fd   :  { %v140_v48 = vsub.f32 %v135_v24, %v139_v47 }
 0x1ff   :  { %v141_v49 = vmul.f32 1.442695, %v140_v48 }
 0x201   :  { %1006 = vpow2.f32 %v141_v49 }
 0x207   :  { %v1007_v50 = vpop.eup %1006 }
 0x208   :  { %v198_v51 = vpop.xlane.xlu0 %197  ;;  %v143_v52 = vsel %vm112_vm1, %v1007_v50, 0.0 }
 0x209   :  { %v199_v53 = vsub.f32 %v194_v27, %v198_v51  ;;  %144 = vadd.xlane.f32.xlu0 %v143_v52 }
 0x20a   :  { %v257_v54 = vpop.xlane.xlu1 %256 }
 0x20b   :  { %v200_v55 = vmul.f32 1.442695, %v199_v53  ;;  %v258_v56 = vsub.f32 %v253_v29, %v257_v54 }
 0x20d   :  { %1008 = vpow2.f32 %v200_v55  ;;  %v259_v57 = vmul.f32 1.442695, %v258_v56 }
 0x20f   :  { %1010 = vpow2.f32 %v259_v57 }
 0x212   :  { %v316_v58 = vpop.xlane.xlu2 %315 }
 0x213   :  { %v1009_v59 = vpop.eup %1008  ;;  %v317_v60 = vsub.f32 %v312_v33, %v316_v58 }
 0x214   :  { %v202_v61 = vsel %vm112_vm1, %v1009_v59, 0.0 }
 0x215   :  { %v1011_v62 = vpop.eup %1010  ;;  %v318_v63 = vmul.f32 1.442695, %v317_v60  ;;  %203 = vadd.xlane.f32.xlu1 %v202_v61 }
 0x216   :  { %v261_v0 = vsel %vm112_vm1, %v1011_v62, 0.0 }
 0x217   :  { %1012 = vpow2.f32 %v318_v63  ;;  %v433_v1 = vpop.xlane.xlu0 %432  ;;  %262 = vadd.xlane.f32.xlu2 %v261_v0 }
 0x218   :  { %v434_v2 = vsub.f32 %v429_v37, %v433_v1 }
 0x21a   :  { %v435_v3 = vmul.f32 1.442695, %v434_v2  ;;  %v374_v8 = vpop.xlane.xlu2 %373 }
 0x21b   :  { %v375_v9 = vsub.f32 %v370_v38, %v374_v8 }
 0x21c   :  { %1014 = vpow2.f32 %v435_v3 }
 0x21d   :  { %v1013_v10 = vpop.eup %1012  ;;  %v376_v11 = vmul.f32 1.442695, %v375_v9  ;;  %v492_v12 = vpop.xlane.xlu1 %491 }
 0x21e   :  { %v493_v13 = vsub.f32 %v488_v43, %v492_v12  ;;  %v320_v14 = vsel %vm112_vm1, %v1013_v10, 0.0 }
 0x21f   :  { %1016 = vpow2.f32 %v376_v11  ;;  %321 = vadd.xlane.f32.xlu0 %v320_v14 }
 0x220   :  { %v494_v15 = vmul.f32 1.442695, %v493_v13 }
 0x222   :  { %v1015_v16 = vpop.eup %1014  ;;  %1018 = vpow2.f32 %v494_v15  ;;  %v551_v17 = vpop.xlane.xlu2 %550 }
 0x223   :  { %v552_v18 = vsub.f32 %v547_v45, %v551_v17  ;;  %v437_v19 = vsel %vm112_vm1, %v1015_v16, 0.0 }
 0x224   :  { %438 = vadd.xlane.f32.xlu2 %v437_v19 }
 0x225   :  { %v1017_v20 = vpop.eup %1016  ;;  %v553_v21 = vmul.f32 1.442695, %v552_v18 }
 0x226   :  { %v378_v22 = vsel %vm112_vm1, %v1017_v20, 0.0 }
 0x227   :  { %1020 = vpow2.f32 %v553_v21  ;;  %379 = vadd.xlane.f32.xlu1 %v378_v22 }
 0x228   :  { %v1019_v23 = vpop.eup %1018 }
 0x229   :  { %v496_v24 = vsel %vm112_vm1, %v1019_v23, 0.0 }
 0x22a   :  { %497 = vadd.xlane.f32.xlu0 %v496_v24 }
 0x22d   :  { %v1021_v25 = vpop.eup %1020 }
 0x22e   :  { %v555_v26 = vsel %vm112_vm1, %v1021_v25, 0.0 }
 0x22f   :  { %556 = vadd.xlane.f32.xlu1 %v555_v26 }
 0x27c   :  { %v145_v27 = vpop.xlane.xlu0 %144 }
 0x27d   :  { %1022 = vrcp.f32 %v145_v27  ;;  %v157_v31 = vand.u32 2147483648, %v145_v27  ;;  %v155_v34 = vand.u32 2147483647, %v145_v27  ;;  %vm151_vm3 = vweird.f32 %v145_v27 }
 0x27f   :  { %v158_v37 = vor.u32 1.1754944e-38, %v157_v31  ;;  %vm156_vm5 = vcmp.eq.f32.partialorder %v155_v34, 8.507059e+37 }
 0x283   :  { %v1023_v28 = vpop.eup %1022 }
 0x284   :  { %v147_v29 = vmul.f32 %v1023_v28, %v145_v27  ;;  %vm152_vm2 = vweird.f32 %v1023_v28 }
 0x285   :  { %vm153_vm4 = vmor %vm151_vm3, %vm152_vm2 }
 0x286   :  { %v148_v30 = vsub.f32 1.0, %v147_v29 }
 0x288   :  { %v149_v32 = vmul.f32 %v1023_v28, %v148_v30  ;;  %v204_v33 = vpop.xlane.xlu1 %203 }
 0x289   :  { %1024 = vrcp.f32 %v204_v33  ;;  %v216_v48 = vand.u32 2147483648, %v204_v33  ;;  %v214_v51 = vand.u32 2147483647, %v204_v33  ;;  %vm210_vm7 = vweird.f32 %v204_v33 }
 0x28a   :  { %v263_v35 = vpop.xlane.xlu2 %262  ;;  %v150_v36 = vadd.f32 %v1023_v28, %v149_v32 }
 0x28b   :  { %1026 = vrcp.f32 %v263_v35  ;;  %v275_v53 = vand.u32 2147483648, %v263_v35  ;;  %v217_v56 = vor.u32 1.1754944e-38, %v216_v48  ;;  %v273_v57 = vand.u32 2147483647, %v263_v35 }
 0x28c   :  { %v154_v38 = vsel %vm153_vm4, %v1023_v28, %v150_v36  ;;  %vm215_vm10 = vcmp.eq.f32.partialorder %v214_v51, 8.507059e+37  ;;  %vm269_vm11 = vweird.f32 %v263_v35 }
 0x28d   :  { %v159_v39 = vsel %vm156_vm5, %v158_v37, %v154_v38  ;;  %v276_v1 = vor.u32 1.1754944e-38, %v275_v53  ;;  %vm274_vm13 = vcmp.eq.f32.partialorder %v273_v57, 8.507059e+37 }
 0x28e   :  { %v161_v40 = vmul.f32 %v159_v39, %v145_v27 }
 0x28f   :  { %v1025_v41 = vpop.eup %1024 }
 0x290   :  { %v206_v42 = vmul.f32 %v1025_v41, %v204_v33  ;;  %v162_v43 = vmul.f32 %v161_v40, %v1237_v6  ;;  %vm211_vm6 = vweird.f32 %v1025_v41 }
 0x291   :  { %v1027_v44 = vpop.eup %1026  ;;  %vm212_vm8 = vmor %vm210_vm7, %vm211_vm6 }
 0x292   :  { %v207_v45 = vsub.f32 1.0, %v206_v42  ;;  %v265_v46 = vmul.f32 %v1027_v44, %v263_v35  ;;  %v1290_v47 = vpop.xlane.xlu0 %321  ;;  %164 = vrot.lane.b32.xlu2 %v162_v43, %s1137_s27  ;;  %vm270_vm9 = vweird.f32 %v1027_v44 }
 0x293   :  { %1028 = vrcp.f32 %v1290_v47  ;;  %vm271_vm12 = vmor %vm269_vm11, %vm270_vm9  ;;  %v334_v10 = vand.u32 2147483648, %v1290_v47  ;;  %v332_v15 = vand.u32 2147483647, %v1290_v47  ;;  %vm328_vm15 = vweird.f32 %v1290_v47 }
 0x294   :  { %v208_v49 = vmul.f32 %v1025_v41, %v207_v45  ;;  %v266_v50 = vsub.f32 1.0, %v265_v46 }
 0x295   :  { %vm333_vm3 = vcmp.eq.f32.partialorder %v332_v15, 8.507059e+37  ;;  %v335_v25 = vor.u32 1.1754944e-38, %v334_v10 }
 0x296   :  { %v267_v52 = vmul.f32 %v1027_v44, %v266_v50  ;;  %v209_v54 = vadd.f32 %v1025_v41, %v208_v49 }
 0x297   :  { %v1294_v55 = vpop.xlane.xlu2 %438 }
 0x298   :  { %1030 = vrcp.f32 %v1294_v55  ;;  %v213_v58 = vsel %vm212_vm8, %v1025_v41, %v209_v54  ;;  %v268_v61 = vadd.f32 %v1027_v44, %v267_v52  ;;  %v451_v21 = vand.u32 2147483648, %v1294_v55 }
 0x299   :  { %v1029_v59 = vpop.eup %1028  ;;  %v218_v60 = vsel %vm215_vm10, %v217_v56, %v213_v58  ;;  %v449_v27 = vand.u32 2147483647, %v1294_v55  ;;  %vm445_vm5 = vweird.f32 %v1294_v55 }
 0x29a   :  { %v324_v62 = vmul.f32 %v1029_v59, %v1290_v47  ;;  %v1298_v63 = vpop.xlane.xlu1 %379  ;;  %v220_v0 = vmul.f32 %v218_v60, %v204_v33  ;;  %v272_v2 = vsel %vm271_vm12, %v1027_v44, %v268_v61  ;;  %vm329_vm14 = vweird.f32 %v1029_v59 }
 0x29b   :  { %1032 = vrcp.f32 %v1298_v63  ;;  %v277_v9 = vsel %vm274_vm13, %v276_v1, %v272_v2  ;;  %vm330_vm2 = vmor %vm328_vm15, %vm329_vm14  ;;  %v392_v30 = vand.u32 2147483648, %v1298_v63  ;;  %vm386_vm6 = vweird.f32 %v1298_v63 }
 0x29c   :  { %v325_v3 = vsub.f32 1.0, %v324_v62  ;;  %v221_v8 = vmul.f32 %v220_v0, %v1237_v6  ;;  %v279_v12 = vmul.f32 %v277_v9, %v263_v35  ;;  %v452_v35 = vor.u32 1.1754944e-38, %v451_v21 }
 0x29d   :  { %v1303_v11 = vpop.xlane.xlu0 %497  ;;  %v390_v37 = vand.u32 2147483647, %v1298_v63  ;;  %vm450_vm9 = vcmp.eq.f32.partialorder %v449_v27, 8.507059e+37  ;;  %v393_v44 = vor.u32 1.1754944e-38, %v392_v30 }
 0x29e   :  { %v1031_v13 = vpop.eup %1030  ;;  %v326_v14 = vmul.f32 %v1029_v59, %v325_v3  ;;  %1034 = vrcp.f32 %v1303_v11  ;;  %223 = vrot.lane.b32.xlu0 %v221_v8, %s1138_s28  ;;  %v280_v17 = vmul.f32 %v279_v12, %v1237_v6  ;;  %v510_v41 = vand.u32 2147483648, %v1303_v11  ;;  %v588_v12 = vld [vmem:[%s1463_s3 + $0x8] sm:$0xff] }
 0x29f   :  { %v441_v16 = vmul.f32 %v1031_v13, %v1294_v55  ;;  %vm446_vm4 = vweird.f32 %v1031_v13  ;;  %vm391_vm12 = vcmp.eq.f32.partialorder %v390_v37, 8.507059e+37  ;;  %vm504_vm13 = vweird.f32 %v1303_v11  ;;  %610 = vmatpush.msra.mxu3 %v588_v12 }
 0x2a0   :  { %v327_v18 = vadd.f32 %v1029_v59, %v326_v14  ;;  %282 = vrot.lane.b32.xlu1 %v280_v17, %s1139_s13  ;;  %vm447_vm7 = vmor %vm445_vm5, %vm446_vm4 }
 0x2a1   :  { %v1033_v19 = vpop.eup %1032  ;;  %v442_v20 = vsub.f32 1.0, %v441_v16 }
 0x2a2   :  { %v382_v22 = vmul.f32 %v1033_v19, %v1298_v63  ;;  %v1314_v23 = vpop.xlane.xlu1 %556  ;;  %v331_v24 = vsel %vm330_vm2, %v1029_v59, %v327_v18  ;;  %vm387_vm8 = vweird.f32 %v1033_v19 }
 0x2a3   :  { %v443_v26 = vmul.f32 %v1031_v13, %v442_v20  ;;  %1036 = vrcp.f32 %v1314_v23  ;;  %v336_v31 = vsel %vm333_vm3, %v335_v25, %v331_v24  ;;  %vm388_vm10 = vmor %vm386_vm6, %vm387_vm8  ;;  %v569_v56 = vand.u32 2147483648, %v1314_v23 }
 0x2a4   :  { %v1035_v28 = vpop.eup %1034  ;;  %v383_v29 = vsub.f32 1.0, %v382_v22  ;;  %v338_v33 = vmul.f32 %v336_v31, %v1290_v47  ;;  %v567_v58 = vand.u32 2147483647, %v1314_v23  ;;  %vm563_vm3 = vweird.f32 %v1314_v23 }
 0x2a5   :  { %v500_v32 = vmul.f32 %v1035_v28, %v1303_v11  ;;  %v444_v34 = vadd.f32 %v1031_v13, %v443_v26  ;;  %vm505_vm11 = vweird.f32 %v1035_v28  ;;  %v570_v1 = vor.u32 1.1754944e-38, %v569_v56 }
 0x2a6   :  { %v384_v36 = vmul.f32 %v1033_v19, %v383_v29  ;;  %v339_v39 = vmul.f32 %v338_v33, %v1237_v6  ;;  %v508_v6 = vand.u32 2147483647, %v1303_v11  ;;  %vm506_vm14 = vmor %vm504_vm13, %vm505_vm11  ;;  %vm568_vm5 = vcmp.eq.f32.partialorder %v567_v58, 8.507059e+37 }
 0x2a7   :  { %v501_v38 = vsub.f32 1.0, %v500_v32  ;;  %v448_v40 = vsel %vm447_vm7, %v1031_v13, %v444_v34  ;;  %v651_v13 = vld [vmem:[%s1463_s3 + $0x10] sm:$0xff] }
 0x2a8   :  { %v453_v42 = vsel %vm450_vm9, %v452_v35, %v448_v40  ;;  %v385_v43 = vadd.f32 %v1033_v19, %v384_v36  ;;  %341 = vrot.lane.b32.xlu0 %v339_v39, %s1140_s14  ;;  %vm509_vm15 = vcmp.eq.f32.partialorder %v508_v6, 8.507059e+37  ;;  %673 = vmatpush.msrb.mxu1 %v651_v13 }
 0x2a9   :  { %v1037_v45 = vpop.eup %1036  ;;  %v502_v46 = vmul.f32 %v1035_v28, %v501_v38  ;;  %v455_v47 = vmul.f32 %v453_v42, %v1294_v55  ;;  %v511_v55 = vor.u32 1.1754944e-38, %v510_v41 }
 0x2aa   :  { %v559_v48 = vmul.f32 %v1037_v45, %v1314_v23  ;;  %v389_v49 = vsel %vm388_vm10, %v1033_v19, %v385_v43  ;;  %vm564_vm2 = vweird.f32 %v1037_v45 }
 0x2ab   :  { %v456_v50 = vmul.f32 %v455_v47, %v1242_v7  ;;  %v394_v51 = vsel %vm391_vm12, %v393_v44, %v389_v49  ;;  %v503_v52 = vadd.f32 %v1035_v28, %v502_v46  ;;  %vm565_vm4 = vmor %vm563_vm3, %vm564_vm2  ;;  %v1141_v47 = vmov 32.0  }
 0x2ac   :  { %v560_v53 = vsub.f32 1.0, %v559_v48  ;;  %v396_v54 = vmul.f32 %v394_v51, %v1298_v63  ;;  %1038 = vrcp.f32 %v1141_v47  ;;  %vm835_vm12 = vcmask 523264   ;;  %v1003_v47 = vld [vmem:[%s1469_s9] ss:$0 sm:$0xff] }
 0x2ad   :  { %458 = vrot.lane.b32.xlu1 %v456_v50, %s1138_s28  ;;  %v507_v57 = vsel %vm506_vm14, %v1035_v28, %v503_v52 }
 0x2ae   :  { %v561_v59 = vmul.f32 %v1037_v45, %v560_v53  ;;  %v397_v60 = vmul.f32 %v396_v54, %v1242_v7  ;;  %v512_v61 = vsel %vm509_vm15, %v511_v55, %v507_v57 }
 0x2af   :  { %v514_v62 = vmul.f32 %v512_v61, %v1303_v11  ;;  %v583_v11 = vld [vmem:[%s1463_s3] sm:$0xff]  ;;  %v787_v61 = vld [vmem:[%s1466_s6 + $0x18] sm:$0xff] }
 0x2b0   :  { %399 = vrot.lane.b32.xlu2 %v397_v60, %s1137_s27  ;;  %v562_v63 = vadd.f32 %v1037_v45, %v561_v59  ;;  %639 = vmatpush.msrb.mxu0 %v583_v11 }
 0x2b1   :  { %v515_v0 = vmul.f32 %v514_v62, %v1242_v7  ;;  %810 = vmatpush.msrb.mxu3 %v787_v61  ;;  %v786_v62 = vld [vmem:[%s1466_s6 + $0x10] sm:$0xff] }
 0x2b2   :  { %v566_v2 = vsel %vm565_vm4, %v1037_v45, %v562_v63  ;;  %v1039_v6 = vpop.eup %1038  ;;  %v785_v63 = vld [vmem:[%s1466_s6 + $0x8] sm:$0xff] }
 0x2b3   :  { %517 = vrot.lane.b32.xlu0 %v515_v0, %s1139_s13  ;;  %v571_v3 = vsel %vm568_vm5, %v570_v1, %v566_v2  ;;  %v728_v48 = vmul.f32 32.0, %v1039_v6  ;;  %811 = vmatpush.msrb.mxu3 %v786_v62  ;;  %v784_v0 = vld [vmem:[%s1466_s6] sm:$0xff] }
 0x2b4   :  { %v573_v8 = vmul.f32 %v571_v3, %v1314_v23 }
 0x2b5   :  { %812 = vmatpush.msrb.mxu3 %v785_v63 }
 0x2b6   :  { %v574_v9 = vmul.f32 %v573_v8, %v1242_v7  ;;  %v687_v7 = vld [vmem:[%s1463_s3 + $0x18] sm:$0xff] }
 0x2b7   :  { %709 = vmatpush.msrb.mxu2 %v687_v7  ;;  %813 = vmatpush.msrb.mxu3 %v784_v0  ;;  %v830_v8 = vld [vmem:[%s1468_s8 + $0x38] sm:$0xff]  ;;  %v827_v7 = vld [vmem:[%s1468_s8 + $0x20] sm:$0xff] }
 0x2b8   :  { %576 = vrot.lane.b32.xlu2 %v574_v9, %s1140_s14  ;;  %v829_v9 = vld [vmem:[%s1468_s8 + $0x30] sm:$0xff]  ;;  %850 = vmatpush.msra.mxu0 %v830_v8 }
 0x2b9   :  { %975 = vmatpush.msra.mxu1 %v830_v8 }
 0x2ba   :  { %851 = vmatpush.msra.mxu0 %v829_v9 }
 0x2bb   :  { %976 = vmatpush.msra.mxu1 %v829_v9 }
 0x2ec   :  { %v165_v10 = vpop.permute.xlu2 %164 }
 0x2ed   :  { %167 = vst.msk [vmem:[#allocation2] sm:$0xff] %vm112_vm1, %v165_v10  ;;  %v828_v10 = vld [vmem:[%s1468_s8 + $0x28] sm:$0xff] }
 0x2ee   :  { %852 = vmatpush.msra.mxu0 %v828_v10  ;;  %977 = vmatpush.msra.mxu1 %v828_v10 }
 0x2f0   :  { %853 = vmatpush.msra.mxu0 %v827_v7  ;;  %978 = vmatpush.msra.mxu1 %v827_v7 }
 0x30a   :  { %v400_v14 = vpop.permute.xlu2 %399 }
 0x30b   :  { %402 = vst.msk [vmem:[#allocation2 + $0x20] sm:$0xff] %vm112_vm1, %v400_v14 }
 0x310   :  { %v224_v15 = vpop.permute.xlu0 %223 }
 0x311   :  { %226 = vst.msk [vmem:[#allocation2 + $0x8] sm:$0xff] %vm112_vm1, %v224_v15 }
 0x312   :  { %v577_v16 = vpop.permute.xlu2 %576  ;;  %v283_v17 = vpop.permute.xlu1 %282 }
 0x313   :  { %579 = vst.msk [vmem:[#allocation2 + $0x38] sm:$0xff] %vm112_vm1, %v577_v16  ;;  %v826_v16 = vld [vmem:[%s1468_s8 + $0x18] sm:$0xff] }
 0x314   :  { %285 = vst.msk [vmem:[#allocation2 + $0x10] sm:$0xff] %vm112_vm1, %v283_v17  ;;  %854 = vmatpush.msra.mxu0 %v826_v16  ;;  %979 = vmatpush.msra.mxu1 %v826_v16  ;;  %v1004_v16 = vld [vmem:[%s1470_s10] ss:$0 sm:$0xff]  ;;  %s1142_s10 = smov [#allocation8]  }
 0x315   :  { %s929_s13 = sshll.u32 %s1142_s10, 4  ;;  %s930_s13 = int_to_ptr.vmem [resolvable:$true] %s929_s13 }
 0x31a   :  { %v342_v18 = vpop.permute.xlu0 %341 }
 0x31b   :  { %344 = vst.msk [vmem:[#allocation2 + $0x18] sm:$0xff] %vm112_vm1, %v342_v18 }
 0x31f   :  { %v459_v19 = vpop.permute.xlu1 %458 }
 0x320   :  { %461 = vst.msk [vmem:[#allocation2 + $0x28] sm:$0xff] %vm112_vm1, %v459_v19 }
 0x322   :  { %v585_v20 = vld [vmem:[#allocation2 + $0x1] ss:$4 sm:$0xff]  ;;  %v580_v21 = vld [vmem:[#allocation2] ss:$4 sm:$0xff]  ;;  %v648_v22 = vld [vmem:[#allocation2 + $0x2] ss:$4 sm:$0xff] }
 0x323   :  { %963 = vmatmul.msk.f32.vlgmr.msra.gmra.mxu3 %vm112_vm1, %v585_v20  ;;  %965 = vmatmul.msk.f32.vlgmr.msrb.gmra.mxu0 %vm112_vm1, %v580_v21  ;;  %v684_v23 = vld [vmem:[#allocation2 + $0x3] ss:$4 sm:$0xff] }
 0x324   :  { %967 = vmatmul.msk.f32.vlgmr.msrb.gmra.mxu1 %vm112_vm1, %v648_v22  ;;  %969 = vmatmul.msk.f32.vlgmr.msrb.gmra.mxu2 %vm112_vm1, %v684_v23  ;;  %v1000_v22 = vld [vmem:[%s1464_s4] ss:$0 sm:$0xff] }
 0x325   :  { %v518_v24 = vpop.permute.xlu0 %517 }
 0x326   :  { %520 = vst.msk [vmem:[#allocation2 + $0x30] sm:$0xff] %vm112_vm1, %v518_v24 }
 0x32d   :  { %v587_v25 = vld [vmem:[#allocation2 + $0x21] ss:$4 sm:$0xff]  ;;  %v582_v26 = vld [vmem:[#allocation2 + $0x20] ss:$4 sm:$0xff]  ;;  %v650_v27 = vld [vmem:[#allocation2 + $0x22] ss:$4 sm:$0xff] }
 0x32e   :  { %964 = vmatmul.msk.f32.gmra.mxu3 %vm112_vm1, %v587_v25  ;;  %966 = vmatmul.msk.f32.gmra.mxu0 %vm112_vm1, %v582_v26  ;;  %v686_v28 = vld [vmem:[#allocation2 + $0x23] ss:$4 sm:$0xff]  ;;  %v1001_v26 = vld [vmem:[%s1465_s5] ss:$0 sm:$0xff] }
 0x32f   :  { %968 = vmatmul.msk.f32.gmra.mxu1 %vm112_vm1, %v650_v27  ;;  %970 = vmatmul.msk.f32.gmra.mxu2 %vm112_vm1, %v686_v28  ;;  %vm732_vm1 = vweird.f32 %v1039_v6 }
 0x3a0   :  { %v641_v29 = vpop.f32.mrf.mxu0 }
 0x3a1   :  { %v675_v32 = vpop.f32.mrf.mxu1 }
 0x3a6   :  { %v612_v30 = vpop.f32.mrf.mxu3 }
 0x3a7   :  { %v642_v31 = vadd.f32 %v641_v29, %v612_v30  ;;  %v711_v34 = vpop.f32.mrf.mxu2 }
 0x3a9   :  { %v681_v33 = vadd.f32 %v675_v32, %v642_v31 }
 0x3ab   :  { %v717_v35 = vadd.f32 %v711_v34, %v681_v33  ;;  %v644_v38 = vpop.f32.mrf.mxu0 }
 0x3ac   :  { %v678_v41 = vpop.f32.mrf.mxu1 }
 0x3ad   :  { %v719_v36 = vadd.f32 %v717_v35, %v1229_v4  ;;  %v729_v4 = vsub.f32 1.0, %v728_v48 }
 0x3af   :  { %v721_v37 = vsel %vm79_vm0, %v719_v36, 0.0  ;;  %v730_v49 = vmul.f32 %v1039_v6, %v729_v4 }
 0x3b0   :  { %722 = vadd.xlane.f32.xlu1 %v721_v37  ;;  %v825_v37 = vld [vmem:[%s1468_s8 + $0x10] sm:$0xff] }
 0x3b1   :  { %v615_v39 = vpop.f32.mrf.mxu3  ;;  %v731_v50 = vadd.f32 %v1039_v6, %v730_v49  ;;  %855 = vmatpush.msra.mxu0 %v825_v37  ;;  %980 = vmatpush.msra.mxu1 %v825_v37 }
 0x3b2   :  { %v645_v40 = vadd.f32 %v644_v38, %v615_v39  ;;  %v714_v43 = vpop.f32.mrf.mxu2  ;;  %v824_v38 = vld [vmem:[%s1468_s8 + $0x8] sm:$0xff]  ;;  %v823_v39 = vld [vmem:[%s1468_s8] sm:$0xff] }
 0x3b3   :  { %v1380_v51 = vsel %vm732_vm1, %v1039_v6, %v731_v50  ;;  %856 = vmatpush.msra.mxu0 %v824_v38  ;;  %981 = vmatpush.msra.mxu1 %v824_v38 }
 0x3b4   :  { %v682_v42 = vadd.f32 %v678_v41, %v645_v40  ;;  %v1002_v40 = vld [vmem:[%s1467_s7] ss:$0 sm:$0xff] }
 0x3b5   :  { %857 = vmatpush.msra.mxu0 %v823_v39  ;;  %982 = vmatpush.msra.mxu1 %v823_v39 }
 0x3b6   :  { %v718_v44 = vadd.f32 %v714_v43, %v682_v42 }
 0x3b8   :  { %v720_v45 = vadd.f32 %v718_v44, %v1233_v5 }
 0x3ba   :  { %v724_v46 = vsel %vm79_vm0, %v720_v45, 0.0 }
 0x3bb   :  { %725 = vadd.xlane.f32.xlu0 %v724_v46 }
 0x423   :  { %v723_v52 = vpop.xlane.xlu1 %722 }
 0x424   :  { %v734_v53 = vmul.f32 %v1380_v51, %v723_v52 }
 0x426   :  { %v736_v54 = vsub.f32 %v719_v36, %v734_v53 }
 0x428   :  { %v738_v55 = vmul.f32 %v736_v54, %v736_v54 }
 0x42a   :  { %v740_v5 = vsel %vm79_vm0, %v738_v55, 0.0 }
 0x42b   :  { %741 = vadd.xlane.f32.xlu2 %v740_v5 }
 0x42e   :  { %v726_v56 = vpop.xlane.xlu0 %725 }
 0x42f   :  { %v735_v57 = vmul.f32 %v1380_v51, %v726_v56 }
 0x431   :  { %v737_v58 = vsub.f32 %v720_v45, %v735_v57 }
 0x433   :  { %v739_v59 = vmul.f32 %v737_v58, %v737_v58 }
 0x435   :  { %v743_v60 = vsel %vm79_vm0, %v739_v59, 0.0 }
 0x436   :  { %744 = vadd.xlane.f32.xlu1 %v743_v60 }
 0x49e   :  { %v742_v1 = vpop.xlane.xlu2 %741 }
 0x49f   :  { %v746_v2 = vmul.f32 %v742_v1, %v1380_v51 }
 0x4a1   :  { %v748_v3 = vadd.f32 1e-05, %v746_v2 }
 0x4a3   :  { %1040 = vrsqrt.f32 %v748_v3  ;;  %vm756_vm7 = vweird.f32 %v748_v3 }
 0x4a9   :  { %v745_v11 = vpop.xlane.xlu1 %744  ;;  %v1041_v12 = vpop.eup %1040 }
 0x4aa   :  { %v747_v13 = vmul.f32 %v745_v11, %v1380_v51  ;;  %v751_v14 = vmul.f32 %v1041_v12, %v748_v3  ;;  %vm757_vm6 = vweird.f32 %v1041_v12 }
 0x4ab   :  { %vm758_vm8 = vmor %vm756_vm7, %vm757_vm6 }
 0x4ac   :  { %v749_v15 = vadd.f32 1e-05, %v747_v13  ;;  %v752_v17 = vmul.f32 %v1041_v12, %v751_v14 }
 0x4ae   :  { %1042 = vrsqrt.f32 %v749_v15  ;;  %v753_v18 = vmul.f32 0.5, %v752_v17  ;;  %vm766_vm10 = vweird.f32 %v749_v15 }
 0x4b0   :  { %v754_v19 = vsub.f32 1.5, %v753_v18 }
 0x4b2   :  { %v755_v20 = vmul.f32 %v1041_v12, %v754_v19 }
 0x4b4   :  { %v1043_v21 = vpop.eup %1042  ;;  %v759_v23 = vsel %vm758_vm8, %v1041_v12, %v755_v20 }
 0x4b5   :  { %v761_v24 = vmul.f32 %v1043_v21, %v749_v15  ;;  %v770_v25 = vmul.f32 %v759_v23, %v736_v54  ;;  %vm767_vm9 = vweird.f32 %v1043_v21 }
 0x4b6   :  { %vm768_vm11 = vmor %vm766_vm10, %vm767_vm9 }
 0x4b7   :  { %v762_v27 = vmul.f32 %v1043_v21, %v761_v24  ;;  %v776_v28 = vmul.f32 %v1000_v22, %v770_v25 }
 0x4b9   :  { %v763_v29 = vmul.f32 0.5, %v762_v27  ;;  %v782_v30 = vadd.f32 %v1001_v26, %v776_v28 }
 0x4bb   :  { %v764_v31 = vsub.f32 1.5, %v763_v29  ;;  %971 = vmatmul.msk.f32.vlgmr.msrb.gmra.mxu3 %vm79_vm0, %v782_v30 }
 0x4bd   :  { %v765_v32 = vmul.f32 %v1043_v21, %v764_v31 }
 0x4bf   :  { %v769_v33 = vsel %vm768_vm11, %v1043_v21, %v765_v32 }
 0x4c0   :  { %v771_v34 = vmul.f32 %v769_v33, %v737_v58 }
 0x4c2   :  { %v777_v35 = vmul.f32 %v1000_v22, %v771_v34 }
 0x4c4   :  { %v783_v36 = vadd.f32 %v1001_v26, %v777_v35 }
 0x4c6   :  { %972 = vmatmul.msk.f32.gmra.mxu3 %vm79_vm0, %v783_v36 }
 0x53e   :  { %v815_v41 = vpop.f32.mrf.mxu3 }
 0x53f   :  { %v816_v42 = vadd.f32 %v1002_v40, %v815_v41 }
 0x541   :  { %v821_v43 = vmax.f32 %v816_v42, 0.0 }
 0x543   :  { %973 = vmatmul.msk.f32.vlgmr.msra.gmra.mxu0 %vm835_vm12, %v821_v43 }
 0x549   :  { %v818_v44 = vpop.f32.mrf.mxu3 }
 0x54a   :  { %v819_v45 = vadd.f32 %v1002_v40, %v818_v44 }
 0x54c   :  { %v822_v46 = vmax.f32 %v819_v45, 0.0 }
 0x54e   :  { %974 = vmatmul.msk.f32.vlgmr.msra.gmra.mxu1 %vm835_vm12, %v822_v46 }
 0x5c0   :  { %v859_v6 = vpop.f32.mrf.mxu0 }
 0x5c1   :  { %v860_v48 = vadd.f32 %v1003_v47, %v859_v6 }
 0x5c3   :  { %v865_v4 = vadd.f32 %v860_v48, %v782_v30 }
 0x5c5   :  { %v867_v49 = vsel %vm79_vm0, %v865_v4, 0.0 }
 0x5c6   :  { %868 = vadd.xlane.f32.xlu0 %v867_v49 }
 0x5cb   :  { %v862_v50 = vpop.f32.mrf.mxu1 }
 0x5cc   :  { %v863_v52 = vadd.f32 %v1003_v47, %v862_v50 }
 0x5ce   :  { %v866_v53 = vadd.f32 %v863_v52, %v783_v36 }
 0x5d0   :  { %v870_v54 = vsel %vm79_vm0, %v866_v53, 0.0 }
 0x5d1   :  { %871 = vadd.xlane.f32.xlu2 %v870_v54 }
 0x639   :  { %v869_v55 = vpop.xlane.xlu0 %868 }
 0x63a   :  { %v873_v5 = vmul.f32 %v869_v55, %v1380_v51 }
 0x63c   :  { %v875_v56 = vsub.f32 %v865_v4, %v873_v5 }
 0x63e   :  { %v877_v57 = vmul.f32 %v875_v56, %v875_v56 }
 0x640   :  { %v879_v58 = vsel %vm79_vm0, %v877_v57, 0.0 }
 0x641   :  { %880 = vadd.xlane.f32.xlu1 %v879_v58 }
 0x644   :  { %v872_v59 = vpop.xlane.xlu2 %871 }
 0x645   :  { %v874_v60 = vmul.f32 %v872_v59, %v1380_v51 }
 0x647   :  { %v876_v61 = vsub.f32 %v866_v53, %v874_v60 }
 0x649   :  { %v878_v62 = vmul.f32 %v876_v61, %v876_v61 }
 0x64b   :  { %v882_v63 = vsel %vm79_vm0, %v878_v62, 0.0 }
 0x64c   :  { %883 = vadd.xlane.f32.xlu0 %v882_v63 }
 0x6b4   :  { %v881_v0 = vpop.xlane.xlu1 %880 }
 0x6b5   :  { %v885_v1 = vmul.f32 %v881_v0, %v1380_v51 }
 0x6b7   :  { %v887_v2 = vadd.f32 1e-05, %v885_v1 }
 0x6b9   :  { %1044 = vrsqrt.f32 %v887_v2  ;;  %vm895_vm14 = vweird.f32 %v887_v2 }
 0x6bf   :  { %v884_v3 = vpop.xlane.xlu0 %883  ;;  %v1045_v8 = vpop.eup %1044 }
 0x6c0   :  { %v886_v9 = vmul.f32 %v884_v3, %v1380_v51  ;;  %v890_v10 = vmul.f32 %v1045_v8, %v887_v2  ;;  %vm896_vm13 = vweird.f32 %v1045_v8  ;;  %v1005_v51 = vld [vmem:[%s1471_s11] ss:$0 sm:$0xff] }
 0x6c1   :  { %vm897_vm15 = vmor %vm895_vm14, %vm896_vm13 }
 0x6c2   :  { %v888_v11 = vadd.f32 1e-05, %v886_v9  ;;  %v891_v12 = vmul.f32 %v1045_v8, %v890_v10 }
 0x6c4   :  { %1046 = vrsqrt.f32 %v888_v11  ;;  %v892_v13 = vmul.f32 0.5, %v891_v12  ;;  %vm905_vm3 = vweird.f32 %v888_v11 }
 0x6c6   :  { %v893_v7 = vsub.f32 1.5, %v892_v13 }
 0x6c8   :  { %v894_v14 = vmul.f32 %v1045_v8, %v893_v7 }
 0x6ca   :  { %v1047_v15 = vpop.eup %1046  ;;  %v898_v17 = vsel %vm897_vm15, %v1045_v8, %v894_v14 }
 0x6cb   :  { %v900_v18 = vmul.f32 %v1047_v15, %v888_v11  ;;  %v909_v19 = vmul.f32 %v898_v17, %v875_v56  ;;  %vm906_vm2 = vweird.f32 %v1047_v15 }
 0x6cc   :  { %vm907_vm4 = vmor %vm905_vm3, %vm906_vm2 }
 0x6cd   :  { %v901_v20 = vmul.f32 %v1047_v15, %v900_v18  ;;  %v915_v21 = vmul.f32 %v1004_v16, %v909_v19 }
 0x6cf   :  { %v902_v22 = vmul.f32 0.5, %v901_v20  ;;  %v921_v23 = vadd.f32 %v1005_v51, %v915_v21 }
 0x6d1   :  { %v903_v24 = vsub.f32 1.5, %v902_v22  ;;  %923 = vst.msk [vmem:[#allocation8] sm:$0xff] %vm79_vm0, %v921_v23 }
 0x6d3   :  { %v904_v25 = vmul.f32 %v1047_v15, %v903_v24 }
 0x6d5   :  { %v908_v26 = vsel %vm907_vm4, %v1047_v15, %v904_v25 }
 0x6d6   :  { %v910_v27 = vmul.f32 %v908_v26, %v876_v61 }
 0x6d8   :  { %v916_v28 = vmul.f32 %v1004_v16, %v910_v27 }
 0x6da   :  { %v922_v29 = vadd.f32 %v1005_v51, %v916_v28 }
 0x6dc   :  { %924 = vst.msk [vmem:[#allocation8 + $0x8] sm:$0xff] %vm79_vm0, %v922_v29 }
 0x6dd   :  { %937 = dma.vmem_to_hbm [thread:$0]  %s930_s13, 256, %s932_s15, [#allocation5], %s1127_s29, %s1127_s29, %s1128_s30  }
 0x6de   :  { %1124 = dma.done.wait [#allocation5], 256  }
 0x6df   :  { %1125 = vsyncadd [#allocation5], 4294967040 }
 0x6e0   :  { %942 = vsyncpa [#allocation4], 1 }
 0x6e1   :  { %943 = vsyncpa [#allocation7], 1 }
 0x6e2   :  { %944 = vsyncpa [#allocation5], 1 }

// kernel: tpu_custom_call.1
= control target key start
LH: loop header
LB: loop body
LE: loop exit
PB: predicated region body
PF: predicated region fallthrough
CT: control target
= control target key end

     0   :  { %17 = vsyncpa [#allocation4], 0  ;;  %s1460_s0 = inlined_call_operand.hbm [shape: f32[16,32], index: 0, kind: input, shape index: {}]   ;;  %s1461_s1 = inlined_call_operand.hbm [shape: f32[8,8], index: 1, kind: input, shape index: {}]   ;;  %s1462_s2 = inlined_call_operand.vmem [shape: f32[32,96], index: 2, kind: input, shape index: {}]   ;;  %s1463_s3 = inlined_call_operand.vmem [shape: f32[32,32], index: 3, kind: input, shape index: {}]   ;;  %s1464_s4 = inlined_call_operand.vmem [shape: f32[1,32], index: 4, kind: input, shape index: {}]   ;;  %s1465_s5 = inlined_call_operand.vmem [shape: f32[1,32], index: 5, kind: input, shape index: {}]   ;;  %s1466_s6 = inlined_call_operand.vmem [shape: f32[32,64], index: 6, kind: input, shape index: {}]   ;;  %s1467_s7 = inlined_call_operand.vmem [shape: f32[1,64], index: 7, kind: input, shape index: {}]   ;;  %s1468_s8 = inlined_call_operand.vmem [shape: f32[64,32], index: 8, kind: input, shape index: {}]   ;;  %s1469_s9 = inlined_call_operand.vmem [shape: f32[1,32], index: 9, kind: input, shape index: {}]   ;;  %s1470_s10 = inlined_call_operand.vmem [shape: f32[1,32], index: 10, kind: input, shape index: {}]   ;;  %s1471_s11 = inlined_call_operand.vmem [shape: f32[1,32], index: 11, kind: input, shape index: {}]   ;;  %s1472_s12 = inlined_call_operand.hbm [shape: f32[16,32], index: 12, kind: output, shape index: {}]  }
   0x1   :  { %18 = vsyncpa [#allocation7], 0 }
   0x2   :  { %19 = vsyncpa [#allocation5], 0  ;;  %s24_s23 = sshll.u32 %s1460_s0, 4  ;;  %s1126_s24 = smov [#allocation3]   ;;  %s25_s23 = int_to_ptr.hbm [resolvable:$true] %s24_s23 }
   0x3   :  { %s26_s25 = sshll.u32 %s1126_s24, 4  ;;  %s38_s28 = sshll.u32 %s1461_s1, 4  ;;  %s27_s25 = int_to_ptr.vmem [resolvable:$true] %s26_s25  ;;  %s39_s28 = int_to_ptr.hbm [resolvable:$true] %s38_s28 }
   0x4   :  { %s1127_s29 = smov 128   ;;  %s1128_s30 = smov 8  }
   0x5   :  { %32 = dma.hbm_to_vmem [thread:$0]  %s25_s23, 256, %s27_s25, [#allocation4], %s1127_s29, %s1127_s29, %s1128_s30  }
   0x6   :  { %s1129_s13 = smov [#allocation6]  }
   0x7   :  { %s40_s14 = sshll.u32 %s1129_s13, 4  ;;  %s41_s14 = int_to_ptr.vmem [resolvable:$true] %s40_s14 }
   0x8   :  { %43 = dma.hbm_to_vmem [thread:$0]  %s39_s28, 128, %s41_s14, [#allocation7]  }
   0x9   :  { %1120 = dma.done.wait [#allocation4], 256  }
   0xa   :  { %1121 = vsyncadd [#allocation4], 4294967040 }
   0xb   :  { %1122 = dma.done.wait [#allocation7], 128  }
   0xc   :  { %1123 = vsyncadd [#allocation7], 4294967168  ;;  %v78_v0 = vld [vmem:[%s1462_s2 + $0x18] sm:$0xff]  ;;  %v77_v1 = vld [vmem:[%s1462_s2 + $0x10] sm:$0xff]  ;;  %vm79_vm0 = vcmask 261120   ;;  %s1130_s21 = smov 112  }
   0xd   :  { %98 = vmatpush.msra.mxu0 %v78_v0  ;;  %v76_v2 = vld [vmem:[%s1462_s2 + $0x8] sm:$0xff]  ;;  %v75_v3 = vld [vmem:[%s1462_s2] sm:$0xff]  ;;  %s1131_s22 = smov 96   ;;  %s1132_s2 = smov 88   ;;  %vm112_vm1 = vcmask 64512   ;;  %v74_v22 = vld [vmem:[#allocation6] sm:$0xff] }
   0xe   :  { %v1229_v4 = vld [vmem:[#allocation3] sm:$0xff]  ;;  %v1233_v5 = vld [vmem:[#allocation3 + $0x8] sm:$0xff]  ;;  %s1133_s23 = smov 80   ;;  %s1134_s24 = smov 120  }
   0xf   :  { %99 = vmatpush.msra.mxu0 %v77_v1  ;;  %s1135_s25 = smov 72   ;;  %s1136_s26 = smov 104  }
  0x10   :  { %s1137_s27 = smov 64   ;;  %s1138_s28 = smov 56  }
  0x11   :  { %100 = vmatpush.msra.mxu0 %v76_v2  ;;  %s1139_s13 = smov 48   ;;  %s1140_s14 = smov 40  }
  0x12   :  { %s931_s15 = sshll.u32 %s1472_s12, 4  ;;  %s932_s15 = int_to_ptr.hbm [resolvable:$true] %s931_s15 }
  0x13   :  { %101 = vmatpush.msra.mxu0 %v75_v3 }
  0x14   :  { %945 = vmatmul.msk.f32.vlgmr.msra.gmra.mxu0 %vm79_vm0, %v1229_v4 }
  0x1c   :  { %946 = vmatmul.msk.f32.gmra.mxu0 %vm79_vm0, %v1233_v5 }
  0x91   :  { %v1237_v6 = vpop.f32.mrf.mxu0 }
  0x92   :  { %227 = vrot.lane.b32.xlu2 %v1237_v6, %s1130_s21  ;;  %110 = vrot.lane.b32.xlu1 %v1237_v6, %s1131_s22 }
  0x93   :  { %170 = vrot.lane.b32.xlu0 %v1237_v6, %s1132_s2 }
  0x99   :  { %v1242_v7 = vpop.f32.mrf.mxu0 }
  0x9a   :  { %229 = vrot.lane.b32.xlu1 %v1237_v6, %s1133_s23  ;;  %346 = vrot.lane.b32.xlu2 %v1242_v7, %s1131_s22 }
  0x9b   :  { %168 = vrot.lane.b32.xlu0 %v1237_v6, %s1134_s24 }
  0xa2   :  { %405 = vrot.lane.b32.xlu1 %v1242_v7, %s1132_s2  ;;  %523 = vrot.lane.b32.xlu2 %v1242_v7, %s1135_s25 }
  0xa3   :  { %288 = vrot.lane.b32.xlu0 %v1237_v6, %s1135_s25 }
  0xaa   :  { %403 = vrot.lane.b32.xlu1 %v1242_v7, %s1134_s24  ;;  %521 = vrot.lane.b32.xlu2 %v1242_v7, %s1136_s26 }
  0xab   :  { %286 = vrot.lane.b32.xlu0 %v1237_v6, %s1136_s26 }
  0xb2   :  { %462 = vrot.lane.b32.xlu1 %v1242_v7, %s1130_s21 }
  0xb3   :  { %464 = vrot.lane.b32.xlu0 %v1242_v7, %s1133_s23 }
  0xec   :  { %v228_v8 = vpop.permute.xlu2 %227 }
  0xf4   :  { %v347_v9 = vpop.permute.xlu2 %346 }
  0xfc   :  { %v524_v14 = vpop.permute.xlu2 %523 }
 0x104   :  { %v111_v10 = vpop.permute.xlu1 %110  ;;  %v522_v18 = vpop.permute.xlu2 %521 }
 0x105   :  { %v171_v11 = vpop.permute.xlu0 %170  ;;  %947 = vmatpush.xpose.msk.msra.mxu1 %vm112_vm1, %v111_v10 }
 0x106   :  { %949 = vmatpush.xpose.msk.msra.mxu2 %vm112_vm1, %v171_v11 }
 0x108   :  { %948 = vmatmul.msk.f32.vlgmr.msra.gmra.mxu1 %vm112_vm1, %v1237_v6 }
 0x10a   :  { %955 = vmatpush.xpose.msk.msrb.mxu2 %vm112_vm1, %v347_v9 }
 0x10c   :  { %v230_v12 = vpop.permute.xlu1 %229 }
 0x10d   :  { %v169_v13 = vpop.permute.xlu0 %168  ;;  %951 = vmatpush.xpose.msk.msra.mxu3 %vm112_vm1, %v230_v12 }
 0x10e   :  { %950 = vmatmul.msk.f32.vlgmr.msra.gmra.mxu2 %vm112_vm1, %v169_v13 }
 0x10f   :  { %961 = vmatpush.xpose.msk.msra.mxu2 %vm112_vm1, %v524_v14 }
 0x110   :  { %952 = vmatmul.msk.f32.vlgmr.msra.gmra.mxu3 %vm112_vm1, %v228_v8 }
 0x114   :  { %v406_v15 = vpop.permute.xlu1 %405 }
 0x115   :  { %v289_v16 = vpop.permute.xlu0 %288  ;;  %957 = vmatpush.xpose.msk.msrb.mxu3 %vm112_vm1, %v406_v15 }
 0x116   :  { %953 = vmatpush.xpose.msk.msrb.mxu1 %vm112_vm1, %v289_v16  ;;  %956 = vmatmul.msk.f32.vlgmr.msrb.gmra.mxu2 %vm112_vm1, %v1242_v7 }
 0x11c   :  { %v404_v17 = vpop.permute.xlu1 %403 }
 0x11d   :  { %v287_v19 = vpop.permute.xlu0 %286  ;;  %958 = vmatmul.msk.f32.vlgmr.msrb.gmra.mxu3 %vm112_vm1, %v404_v17 }
 0x11e   :  { %954 = vmatmul.msk.f32.vlgmr.msrb.gmra.mxu1 %vm112_vm1, %v287_v19  ;;  %962 = vmatmul.msk.f32.vlgmr.msra.gmra.mxu2 %vm112_vm1, %v522_v18 }
 0x124   :  { %v463_v21 = vpop.permute.xlu1 %462 }
 0x125   :  { %v465_v20 = vpop.permute.xlu0 %464 }
 0x126   :  { %959 = vmatpush.xpose.msk.msra.mxu1 %vm112_vm1, %v465_v20 }
 0x129   :  { %960 = vmatmul.msk.f32.vlgmr.msra.gmra.mxu1 %vm112_vm1, %v463_v21 }
 0x185   :  { %v134_v23 = vpop.f32.mrf.mxu1 }
 0x186   :  { %v135_v24 = vadd.f32 %v134_v23, %v74_v22 }
 0x188   :  { %v137_v25 = vsel %vm112_vm1, %v135_v24, -inf }
 0x189   :  { %138 = vmax.xlane.f32.xlu2 %v137_v25 }
 0x191   :  { %v193_v26 = vpop.f32.mrf.mxu2 }
 0x192   :  { %v194_v27 = vadd.f32 %v193_v26, %v74_v22 }
 0x193   :  { %v252_v28 = vpop.f32.mrf.mxu3 }
 0x194   :  { %v253_v29 = vadd.f32 %v252_v28, %v74_v22  ;;  %v196_v30 = vsel %vm112_vm1, %v194_v27, -inf }
 0x195   :  { %197 = vmax.xlane.f32.xlu0 %v196_v30 }
 0x196   :  { %v255_v31 = vsel %vm112_vm1, %v253_v29, -inf }
 0x197   :  { %256 = vmax.xlane.f32.xlu1 %v255_v31 }
 0x199   :  { %v369_v34 = vpop.f32.mrf.mxu2 }
 0x19a   :  { %v370_v38 = vadd.f32 %v369_v34, %v74_v22 }
 0x19b   :  { %v311_v32 = vpop.f32.mrf.mxu1 }
 0x19c   :  { %v312_v33 = vadd.f32 %v311_v32, %v74_v22  ;;  %v372_v41 = vsel %vm112_vm1, %v370_v38, -inf }
 0x19e   :  { %v314_v35 = vsel %vm112_vm1, %v312_v33, -inf }
 0x19f   :  { %315 = vmax.xlane.f32.xlu2 %v314_v35 }
 0x1a0   :  { %v428_v36 = vpop.f32.mrf.mxu3 }
 0x1a1   :  { %v429_v37 = vadd.f32 %v428_v36, %v74_v22  ;;  %v546_v42 = vpop.f32.mrf.mxu2 }
 0x1a2   :  { %v547_v45 = vadd.f32 %v546_v42, %v74_v22 }
 0x1a3   :  { %v431_v39 = vsel %vm112_vm1, %v429_v37, -inf }
 0x1a4   :  { %432 = vmax.xlane.f32.xlu0 %v431_v39  ;;  %v549_v46 = vsel %vm112_vm1, %v547_v45, -inf }
 0x1a6   :  { %v487_v40 = vpop.f32.mrf.mxu1 }
 0x1a7   :  { %v488_v43 = vadd.f32 %v487_v40, %v74_v22  ;;  %373 = vmax.xlane.f32.xlu2 %v372_v41 }
 0x1a9   :  { %v490_v44 = vsel %vm112_vm1, %v488_v43, -inf }
 0x1aa   :  { %491 = vmax.xlane.f32.xlu1 %v490_v44 }
 0x1af   :  { %550 = vmax.xlane.f32.xlu2 %v549_v46 }
 0x1fc   :  { %v139_v47 = vpop.xlane.xlu2 %138 }
 0x1fd   :  { %v140_v48 = vsub.f32 %v135_v24, %v139_v47 }
 0x1ff   :  { %v141_v49 = vmul.f32 1.442695, %v140_v48 }
 0x201   :  { %1006 = vpow2.f32 %v141_v49 }
 0x207   :  { %v1007_v50 = vpop.eup %1006 }
 0x208   :  { %v198_v51 = vpop.xlane.xlu0 %197  ;;  %v143_v52 = vsel %vm112_vm1, %v1007_v50, 0.0 }
 0x209   :  { %v199_v53 = vsub.f32 %v194_v27, %v198_v51  ;;  %144 = vadd.xlane.f32.xlu0 %v143_v52 }
 0x20a   :  { %v257_v54 = vpop.xlane.xlu1 %256 }
 0x20b   :  { %v200_v55 = vmul.f32 1.442695, %v199_v53  ;;  %v258_v56 = vsub.f32 %v253_v29, %v257_v54 }
 0x20d   :  { %1008 = vpow2.f32 %v200_v55  ;;  %v259_v57 = vmul.f32 1.442695, %v258_v56 }
 0x20f   :  { %1010 = vpow2.f32 %v259_v57 }
 0x212   :  { %v316_v58 = vpop.xlane.xlu2 %315 }
 0x213   :  { %v1009_v59 = vpop.eup %1008  ;;  %v317_v60 = vsub.f32 %v312_v33, %v316_v58 }
 0x214   :  { %v202_v61 = vsel %vm112_vm1, %v1009_v59, 0.0 }
 0x215   :  { %v1011_v62 = vpop.eup %1010  ;;  %v318_v63 = vmul.f32 1.442695, %v317_v60  ;;  %203 = vadd.xlane.f32.xlu1 %v202_v61 }
 0x216   :  { %v261_v0 = vsel %vm112_vm1, %v1011_v62, 0.0 }
 0x217   :  { %1012 = vpow2.f32 %v318_v63  ;;  %v433_v1 = vpop.xlane.xlu0 %432  ;;  %262 = vadd.xlane.f32.xlu2 %v261_v0 }
 0x218   :  { %v434_v2 = vsub.f32 %v429_v37, %v433_v1 }
 0x21a   :  { %v435_v3 = vmul.f32 1.442695, %v434_v2  ;;  %v374_v8 = vpop.xlane.xlu2 %373 }
 0x21b   :  { %v375_v9 = vsub.f32 %v370_v38, %v374_v8 }
 0x21c   :  { %1014 = vpow2.f32 %v435_v3 }
 0x21d   :  { %v1013_v10 = vpop.eup %1012  ;;  %v376_v11 = vmul.f32 1.442695, %v375_v9  ;;  %v492_v12 = vpop.xlane.xlu1 %491 }
 0x21e   :  { %v493_v13 = vsub.f32 %v488_v43, %v492_v12  ;;  %v320_v14 = vsel %vm112_vm1, %v1013_v10, 0.0 }
 0x21f   :  { %1016 = vpow2.f32 %v376_v11  ;;  %321 = vadd.xlane.f32.xlu0 %v320_v14 }
 0x220   :  { %v494_v15 = vmul.f32 1.442695, %v493_v13 }
 0x222   :  { %v1015_v16 = vpop.eup %1014  ;;  %1018 = vpow2.f32 %v494_v15  ;;  %v551_v17 = vpop.xlane.xlu2 %550 }
 0x223   :  { %v552_v18 = vsub.f32 %v547_v45, %v551_v17  ;;  %v437_v19 = vsel %vm112_vm1, %v1015_v16, 0.0 }
 0x224   :  { %438 = vadd.xlane.f32.xlu2 %v437_v19 }
 0x225   :  { %v1017_v20 = vpop.eup %1016  ;;  %v553_v21 = vmul.f32 1.442695, %v552_v18 }
 0x226   :  { %v378_v22 = vsel %vm112_vm1, %v1017_v20, 0.0 }
 0x227   :  { %1020 = vpow2.f32 %v553_v21  ;;  %379 = vadd.xlane.f32.xlu1 %v378_v22 }
 0x228   :  { %v1019_v23 = vpop.eup %1018 }
 0x229   :  { %v496_v24 = vsel %vm112_vm1, %v1019_v23, 0.0 }
 0x22a   :  { %497 = vadd.xlane.f32.xlu0 %v496_v24 }
 0x22d   :  { %v1021_v25 = vpop.eup %1020 }
 0x22e   :  { %v555_v26 = vsel %vm112_vm1, %v1021_v25, 0.0 }
 0x22f   :  { %556 = vadd.xlane.f32.xlu1 %v555_v26 }
 0x27c   :  { %v145_v27 = vpop.xlane.xlu0 %144 }
 0x27d   :  { %1022 = vrcp.f32 %v145_v27  ;;  %v157_v31 = vand.u32 2147483648, %v145_v27  ;;  %v155_v34 = vand.u32 2147483647, %v145_v27  ;;  %vm151_vm3 = vweird.f32 %v145_v27 }
 0x27f   :  { %v158_v37 = vor.u32 1.1754944e-38, %v157_v31  ;;  %vm156_vm5 = vcmp.eq.f32.partialorder %v155_v34, 8.507059e+37 }
 0x283   :  { %v1023_v28 = vpop.eup %1022 }
 0x284   :  { %v147_v29 = vmul.f32 %v1023_v28, %v145_v27  ;;  %vm152_vm2 = vweird.f32 %v1023_v28 }
 0x285   :  { %vm153_vm4 = vmor %vm151_vm3, %vm152_vm2 }
 0x286   :  { %v148_v30 = vsub.f32 1.0, %v147_v29 }
 0x288   :  { %v149_v32 = vmul.f32 %v1023_v28, %v148_v30  ;;  %v204_v33 = vpop.xlane.xlu1 %203 }
 0x289   :  { %1024 = vrcp.f32 %v204_v33  ;;  %v216_v48 = vand.u32 2147483648, %v204_v33  ;;  %v214_v51 = vand.u32 2147483647, %v204_v33  ;;  %vm210_vm7 = vweird.f32 %v204_v33 }
 0x28a   :  { %v263_v35 = vpop.xlane.xlu2 %262  ;;  %v150_v36 = vadd.f32 %v1023_v28, %v149_v32 }
 0x28b   :  { %1026 = vrcp.f32 %v263_v35  ;;  %v275_v53 = vand.u32 2147483648, %v263_v35  ;;  %v217_v56 = vor.u32 1.1754944e-38, %v216_v48  ;;  %v273_v57 = vand.u32 2147483647, %v263_v35 }
 0x28c   :  { %v154_v38 = vsel %vm153_vm4, %v1023_v28, %v150_v36  ;;  %vm215_vm10 = vcmp.eq.f32.partialorder %v214_v51, 8.507059e+37  ;;  %vm269_vm11 = vweird.f32 %v263_v35 }
 0x28d   :  { %v159_v39 = vsel %vm156_vm5, %v158_v37, %v154_v38  ;;  %v276_v1 = vor.u32 1.1754944e-38, %v275_v53  ;;  %vm274_vm13 = vcmp.eq.f32.partialorder %v273_v57, 8.507059e+37 }
 0x28e   :  { %v161_v40 = vmul.f32 %v159_v39, %v145_v27 }
 0x28f   :  { %v1025_v41 = vpop.eup %1024 }
 0x290   :  { %v206_v42 = vmul.f32 %v1025_v41, %v204_v33  ;;  %v162_v43 = vmul.f32 %v161_v40, %v1237_v6  ;;  %vm211_vm6 = vweird.f32 %v1025_v41 }
 0x291   :  { %v1027_v44 = vpop.eup %1026  ;;  %vm212_vm8 = vmor %vm210_vm7, %vm211_vm6 }
 0x292   :  { %v207_v45 = vsub.f32 1.0, %v206_v42  ;;  %v265_v46 = vmul.f32 %v1027_v44, %v263_v35  ;;  %v1290_v47 = vpop.xlane.xlu0 %321  ;;  %164 = vrot.lane.b32.xlu2 %v162_v43, %s1137_s27  ;;  %vm270_vm9 = vweird.f32 %v1027_v44 }
 0x293   :  { %1028 = vrcp.f32 %v1290_v47  ;;  %vm271_vm12 = vmor %vm269_vm11, %vm270_vm9  ;;  %v334_v10 = vand.u32 2147483648, %v1290_v47  ;;  %v332_v15 = vand.u32 2147483647, %v1290_v47  ;;  %vm328_vm15 = vweird.f32 %v1290_v47 }
 0x294   :  { %v208_v49 = vmul.f32 %v1025_v41, %v207_v45  ;;  %v266_v50 = vsub.f32 1.0, %v265_v46 }
 0x295   :  { %vm333_vm3 = vcmp.eq.f32.partialorder %v332_v15, 8.507059e+37  ;;  %v335_v25 = vor.u32 1.1754944e-38, %v334_v10 }
 0x296   :  { %v267_v52 = vmul.f32 %v1027_v44, %v266_v50  ;;  %v209_v54 = vadd.f32 %v1025_v41, %v208_v49 }
 0x297   :  { %v1294_v55 = vpop.xlane.xlu2 %438 }
 0x298   :  { %1030 = vrcp.f32 %v1294_v55  ;;  %v213_v58 = vsel %vm212_vm8, %v1025_v41, %v209_v54  ;;  %v268_v61 = vadd.f32 %v1027_v44, %v267_v52  ;;  %v451_v21 = vand.u32 2147483648, %v1294_v55 }
 0x299   :  { %v1029_v59 = vpop.eup %1028  ;;  %v218_v60 = vsel %vm215_vm10, %v217_v56, %v213_v58  ;;  %v449_v27 = vand.u32 2147483647, %v1294_v55  ;;  %vm445_vm5 = vweird.f32 %v1294_v55 }
 0x29a   :  { %v324_v62 = vmul.f32 %v1029_v59, %v1290_v47  ;;  %v1298_v63 = vpop.xlane.xlu1 %379  ;;  %v220_v0 = vmul.f32 %v218_v60, %v204_v33  ;;  %v272_v2 = vsel %vm271_vm12, %v1027_v44, %v268_v61  ;;  %vm329_vm14 = vweird.f32 %v1029_v59 }
 0x29b   :  { %1032 = vrcp.f32 %v1298_v63  ;;  %v277_v9 = vsel %vm274_vm13, %v276_v1, %v272_v2  ;;  %vm330_vm2 = vmor %vm328_vm15, %vm329_vm14  ;;  %v392_v30 = vand.u32 2147483648, %v1298_v63  ;;  %vm386_vm6 = vweird.f32 %v1298_v63 }
 0x29c   :  { %v325_v3 = vsub.f32 1.0, %v324_v62  ;;  %v221_v8 = vmul.f32 %v220_v0, %v1237_v6  ;;  %v279_v12 = vmul.f32 %v277_v9, %v263_v35  ;;  %v452_v35 = vor.u32 1.1754944e-38, %v451_v21 }
 0x29d   :  { %v1303_v11 = vpop.xlane.xlu0 %497  ;;  %v390_v37 = vand.u32 2147483647, %v1298_v63  ;;  %vm450_vm9 = vcmp.eq.f32.partialorder %v449_v27, 8.507059e+37  ;;  %v393_v44 = vor.u32 1.1754944e-38, %v392_v30 }
 0x29e   :  { %v1031_v13 = vpop.eup %1030  ;;  %v326_v14 = vmul.f32 %v1029_v59, %v325_v3  ;;  %1034 = vrcp.f32 %v1303_v11  ;;  %223 = vrot.lane.b32.xlu0 %v221_v8, %s1138_s28  ;;  %v280_v17 = vmul.f32 %v279_v12, %v1237_v6  ;;  %v510_v41 = vand.u32 2147483648, %v1303_v11  ;;  %v588_v12 = vld [vmem:[%s1463_s3 + $0x8] sm:$0xff] }
 0x29f   :  { %v441_v16 = vmul.f32 %v1031_v13, %v1294_v55  ;;  %vm446_vm4 = vweird.f32 %v1031_v13  ;;  %vm391_vm12 = vcmp.eq.f32.partialorder %v390_v37, 8.507059e+37  ;;  %vm504_vm13 = vweird.f32 %v1303_v11  ;;  %610 = vmatpush.msra.mxu3 %v588_v12 }
 0x2a0   :  { %v327_v18 = vadd.f32 %v1029_v59, %v326_v14  ;;  %282 = vrot.lane.b32.xlu1 %v280_v17, %s1139_s13  ;;  %vm447_vm7 = vmor %vm445_vm5, %vm446_vm4 }
 0x2a1   :  { %v1033_v19 = vpop.eup %1032  ;;  %v442_v20 = vsub.f32 1.0, %v441_v16 }
 0x2a2   :  { %v382_v22 = vmul.f32 %v1033_v19, %v1298_v63  ;;  %v1314_v23 = vpop.xlane.xlu1 %556  ;;  %v331_v24 = vsel %vm330_vm2, %v1029_v59, %v327_v18  ;;  %vm387_vm8 = vweird.f32 %v1033_v19 }
 0x2a3   :  { %v443_v26 = vmul.f32 %v1031_v13, %v442_v20  ;;  %1036 = vrcp.f32 %v1314_v23  ;;  %v336_v31 = vsel %vm333_vm3, %v335_v25, %v331_v24  ;;  %vm388_vm10 = vmor %vm386_vm6, %vm387_vm8  ;;  %v569_v56 = vand.u32 2147483648, %v1314_v23 }
 0x2a4   :  { %v1035_v28 = vpop.eup %1034  ;;  %v383_v29 = vsub.f32 1.0, %v382_v22  ;;  %v338_v33 = vmul.f32 %v336_v31, %v1290_v47  ;;  %v567_v58 = vand.u32 2147483647, %v1314_v23  ;;  %vm563_vm3 = vweird.f32 %v1314_v23 }
 0x2a5   :  { %v500_v32 = vmul.f32 %v1035_v28, %v1303_v11  ;;  %v444_v34 = vadd.f32 %v1031_v13, %v443_v26  ;;  %vm505_vm11 = vweird.f32 %v1035_v28  ;;  %v570_v1 = vor.u32 1.1754944e-38, %v569_v56 }
 0x2a6   :  { %v384_v36 = vmul.f32 %v1033_v19, %v383_v29  ;;  %v339_v39 = vmul.f32 %v338_v33, %v1237_v6  ;;  %v508_v6 = vand.u32 2147483647, %v1303_v11  ;;  %vm506_vm14 = vmor %vm504_vm13, %vm505_vm11  ;;  %vm568_vm5 = vcmp.eq.f32.partialorder %v567_v58, 8.507059e+37 }
 0x2a7   :  { %v501_v38 = vsub.f32 1.0, %v500_v32  ;;  %v448_v40 = vsel %vm447_vm7, %v1031_v13, %v444_v34  ;;  %v651_v13 = vld [vmem:[%s1463_s3 + $0x10] sm:$0xff] }
 0x2a8   :  { %v453_v42 = vsel %vm450_vm9, %v452_v35, %v448_v40  ;;  %v385_v43 = vadd.f32 %v1033_v19, %v384_v36  ;;  %341 = vrot.lane.b32.xlu0 %v339_v39, %s1140_s14  ;;  %vm509_vm15 = vcmp.eq.f32.partialorder %v508_v6, 8.507059e+37  ;;  %673 = vmatpush.msrb.mxu1 %v651_v13 }
 0x2a9   :  { %v1037_v45 = vpop.eup %1036  ;;  %v502_v46 = vmul.f32 %v1035_v28, %v501_v38  ;;  %v455_v47 = vmul.f32 %v453_v42, %v1294_v55  ;;  %v511_v55 = vor.u32 1.1754944e-38, %v510_v41 }
 0x2aa   :  { %v559_v48 = vmul.f32 %v1037_v45, %v1314_v23  ;;  %v389_v49 = vsel %vm388_vm10, %v1033_v19, %v385_v43  ;;  %vm564_vm2 = vweird.f32 %v1037_v45 }
 0x2ab   :  { %v456_v50 = vmul.f32 %v455_v47, %v1242_v7  ;;  %v394_v51 = vsel %vm391_vm12, %v393_v44, %v389_v49  ;;  %v503_v52 = vadd.f32 %v1035_v28, %v502_v46  ;;  %vm565_vm4 = vmor %vm563_vm3, %vm564_vm2  ;;  %v1141_v47 = vmov 32.0  }
 0x2ac   :  { %v560_v53 = vsub.f32 1.0, %v559_v48  ;;  %v396_v54 = vmul.f32 %v394_v51, %v1298_v63  ;;  %1038 = vrcp.f32 %v1141_v47  ;;  %vm835_vm12 = vcmask 523264   ;;  %v1003_v47 = vld [vmem:[%s1469_s9] ss:$0 sm:$0xff] }
 0x2ad   :  { %458 = vrot.lane.b32.xlu1 %v456_v50, %s1138_s28  ;;  %v507_v57 = vsel %vm506_vm14, %v1035_v28, %v503_v52 }
 0x2ae   :  { %v561_v59 = vmul.f32 %v1037_v45, %v560_v53  ;;  %v397_v60 = vmul.f32 %v396_v54, %v1242_v7  ;;  %v512_v61 = vsel %vm509_vm15, %v511_v55, %v507_v57 }
 0x2af   :  { %v514_v62 = vmul.f32 %v512_v61, %v1303_v11  ;;  %v583_v11 = vld [vmem:[%s1463_s3] sm:$0xff]  ;;  %v787_v61 = vld [vmem:[%s1466_s6 + $0x18] sm:$0xff] }
 0x2b0   :  { %399 = vrot.lane.b32.xlu2 %v397_v60, %s1137_s27  ;;  %v562_v63 = vadd.f32 %v1037_v45, %v561_v59  ;;  %639 = vmatpush.msrb.mxu0 %v583_v11 }
 0x2b1   :  { %v515_v0 = vmul.f32 %v514_v62, %v1242_v7  ;;  %810 = vmatpush.msrb.mxu3 %v787_v61  ;;  %v786_v62 = vld [vmem:[%s1466_s6 + $0x10] sm:$0xff] }
 0x2b2   :  { %v566_v2 = vsel %vm565_vm4, %v1037_v45, %v562_v63  ;;  %v1039_v6 = vpop.eup %1038  ;;  %v785_v63 = vld [vmem:[%s1466_s6 + $0x8] sm:$0xff] }
 0x2b3   :  { %517 = vrot.lane.b32.xlu0 %v515_v0, %s1139_s13  ;;  %v571_v3 = vsel %vm568_vm5, %v570_v1, %v566_v2  ;;  %v728_v48 = vmul.f32 32.0, %v1039_v6  ;;  %811 = vmatpush.msrb.mxu3 %v786_v62  ;;  %v784_v0 = vld [vmem:[%s1466_s6] sm:$0xff] }
 0x2b4   :  { %v573_v8 = vmul.f32 %v571_v3, %v1314_v23 }
 0x2b5   :  { %812 = vmatpush.msrb.mxu3 %v785_v63 }
 0x2b6   :  { %v574_v9 = vmul.f32 %v573_v8, %v1242_v7  ;;  %v687_v7 = vld [vmem:[%s1463_s3 + $0x18] sm:$0xff] }
 0x2b7   :  { %709 = vmatpush.msrb.mxu2 %v687_v7  ;;  %813 = vmatpush.msrb.mxu3 %v784_v0  ;;  %v830_v8 = vld [vmem:[%s1468_s8 + $0x38] sm:$0xff]  ;;  %v827_v7 = vld [vmem:[%s1468_s8 + $0x20] sm:$0xff] }
 0x2b8   :  { %576 = vrot.lane.b32.xlu2 %v574_v9, %s1140_s14  ;;  %v829_v9 = vld [vmem:[%s1468_s8 + $0x30] sm:$0xff]  ;;  %850 = vmatpush.msra.mxu0 %v830_v8 }
 0x2b9   :  { %975 = vmatpush.msra.mxu1 %v830_v8 }
 0x2ba   :  { %851 = vmatpush.msra.mxu0 %v829_v9 }
 0x2bb   :  { %976 = vmatpush.msra.mxu1 %v829_v9 }
 0x2ec   :  { %v165_v10 = vpop.permute.xlu2 %164 }
 0x2ed   :  { %167 = vst.msk [vmem:[#allocation2] sm:$0xff] %vm112_vm1, %v165_v10  ;;  %v828_v10 = vld [vmem:[%s1468_s8 + $0x28] sm:$0xff] }
 0x2ee   :  { %852 = vmatpush.msra.mxu0 %v828_v10  ;;  %977 = vmatpush.msra.mxu1 %v828_v10 }
 0x2f0   :  { %853 = vmatpush.msra.mxu0 %v827_v7  ;;  %978 = vmatpush.msra.mxu1 %v827_v7 }
 0x30a   :  { %v400_v14 = vpop.permute.xlu2 %399 }
 0x30b   :  { %402 = vst.msk [vmem:[#allocation2 + $0x20] sm:$0xff] %vm112_vm1, %v400_v14 }
 0x310   :  { %v224_v15 = vpop.permute.xlu0 %223 }
 0x311   :  { %226 = vst.msk [vmem:[#allocation2 + $0x8] sm:$0xff] %vm112_vm1, %v224_v15 }
 0x312   :  { %v577_v16 = vpop.permute.xlu2 %576  ;;  %v283_v17 = vpop.permute.xlu1 %282 }
 0x313   :  { %579 = vst.msk [vmem:[#allocation2 + $0x38] sm:$0xff] %vm112_vm1, %v577_v16  ;;  %v826_v16 = vld [vmem:[%s1468_s8 + $0x18] sm:$0xff] }
 0x314   :  { %285 = vst.msk [vmem:[#allocation2 + $0x10] sm:$0xff] %vm112_vm1, %v283_v17  ;;  %854 = vmatpush.msra.mxu0 %v826_v16  ;;  %979 = vmatpush.msra.mxu1 %v826_v16  ;;  %v1004_v16 = vld [vmem:[%s1470_s10] ss:$0 sm:$0xff]  ;;  %s1142_s10 = smov [#allocation8]  }
 0x315   :  { %s929_s13 = sshll.u32 %s1142_s10, 4  ;;  %s930_s13 = int_to_ptr.vmem [resolvable:$true] %s929_s13 }
 0x31a   :  { %v342_v18 = vpop.permute.xlu0 %341 }
 0x31b   :  { %344 = vst.msk [vmem:[#allocation2 + $0x18] sm:$0xff] %vm112_vm1, %v342_v18 }
 0x31f   :  { %v459_v19 = vpop.permute.xlu1 %458 }
 0x320   :  { %461 = vst.msk [vmem:[#allocation2 + $0x28] sm:$0xff] %vm112_vm1, %v459_v19 }
 0x322   :  { %v585_v20 = vld [vmem:[#allocation2 + $0x1] ss:$4 sm:$0xff]  ;;  %v580_v21 = vld [vmem:[#allocation2] ss:$4 sm:$0xff]  ;;  %v648_v22 = vld [vmem:[#allocation2 + $0x2] ss:$4 sm:$0xff] }
 0x323   :  { %963 = vmatmul.msk.f32.vlgmr.msra.gmra.mxu3 %vm112_vm1, %v585_v20  ;;  %965 = vmatmul.msk.f32.vlgmr.msrb.gmra.mxu0 %vm112_vm1, %v580_v21  ;;  %v684_v23 = vld [vmem:[#allocation2 + $0x3] ss:$4 sm:$0xff] }
 0x324   :  { %967 = vmatmul.msk.f32.vlgmr.msrb.gmra.mxu1 %vm112_vm1, %v648_v22  ;;  %969 = vmatmul.msk.f32.vlgmr.msrb.gmra.mxu2 %vm112_vm1, %v684_v23  ;;  %v1000_v22 = vld [vmem:[%s1464_s4] ss:$0 sm:$0xff] }
 0x325   :  { %v518_v24 = vpop.permute.xlu0 %517 }
 0x326   :  { %520 = vst.msk [vmem:[#allocation2 + $0x30] sm:$0xff] %vm112_vm1, %v518_v24 }
 0x32d   :  { %v587_v25 = vld [vmem:[#allocation2 + $0x21] ss:$4 sm:$0xff]  ;;  %v582_v26 = vld [vmem:[#allocation2 + $0x20] ss:$4 sm:$0xff]  ;;  %v650_v27 = vld [vmem:[#allocation2 + $0x22] ss:$4 sm:$0xff] }
 0x32e   :  { %964 = vmatmul.msk.f32.gmra.mxu3 %vm112_vm1, %v587_v25  ;;  %966 = vmatmul.msk.f32.gmra.mxu0 %vm112_vm1, %v582_v26  ;;  %v686_v28 = vld [vmem:[#allocation2 + $0x23] ss:$4 sm:$0xff]  ;;  %v1001_v26 = vld [vmem:[%s1465_s5] ss:$0 sm:$0xff] }
 0x32f   :  { %968 = vmatmul.msk.f32.gmra.mxu1 %vm112_vm1, %v650_v27  ;;  %970 = vmatmul.msk.f32.gmra.mxu2 %vm112_vm1, %v686_v28  ;;  %vm732_vm1 = vweird.f32 %v1039_v6 }
 0x3a0   :  { %v641_v29 = vpop.f32.mrf.mxu0 }
 0x3a1   :  { %v675_v32 = vpop.f32.mrf.mxu1 }
 0x3a6   :  { %v612_v30 = vpop.f32.mrf.mxu3 }
 0x3a7   :  { %v642_v31 = vadd.f32 %v641_v29, %v612_v30  ;;  %v711_v34 = vpop.f32.mrf.mxu2 }
 0x3a9   :  { %v681_v33 = vadd.f32 %v675_v32, %v642_v31 }
 0x3ab   :  { %v717_v35 = vadd.f32 %v711_v34, %v681_v33  ;;  %v644_v38 = vpop.f32.mrf.mxu0 }
 0x3ac   :  { %v678_v41 = vpop.f32.mrf.mxu1 }
 0x3ad   :  { %v719_v36 = vadd.f32 %v717_v35, %v1229_v4  ;;  %v729_v4 = vsub.f32 1.0, %v728_v48 }
 0x3af   :  { %v721_v37 = vsel %vm79_vm0, %v719_v36, 0.0  ;;  %v730_v49 = vmul.f32 %v1039_v6, %v729_v4 }
 0x3b0   :  { %722 = vadd.xlane.f32.xlu1 %v721_v37  ;;  %v825_v37 = vld [vmem:[%s1468_s8 + $0x10] sm:$0xff] }
 0x3b1   :  { %v615_v39 = vpop.f32.mrf.mxu3  ;;  %v731_v50 = vadd.f32 %v1039_v6, %v730_v49  ;;  %855 = vmatpush.msra.mxu0 %v825_v37  ;;  %980 = vmatpush.msra.mxu1 %v825_v37 }
 0x3b2   :  { %v645_v40 = vadd.f32 %v644_v38, %v615_v39  ;;  %v714_v43 = vpop.f32.mrf.mxu2  ;;  %v824_v38 = vld [vmem:[%s1468_s8 + $0x8] sm:$0xff]  ;;  %v823_v39 = vld [vmem:[%s1468_s8] sm:$0xff] }
 0x3b3   :  { %v1380_v51 = vsel %vm732_vm1, %v1039_v6, %v731_v50  ;;  %856 = vmatpush.msra.mxu0 %v824_v38  ;;  %981 = vmatpush.msra.mxu1 %v824_v38 }
 0x3b4   :  { %v682_v42 = vadd.f32 %v678_v41, %v645_v40  ;;  %v1002_v40 = vld [vmem:[%s1467_s7] ss:$0 sm:$0xff] }
 0x3b5   :  { %857 = vmatpush.msra.mxu0 %v823_v39  ;;  %982 = vmatpush.msra.mxu1 %v823_v39 }
 0x3b6   :  { %v718_v44 = vadd.f32 %v714_v43, %v682_v42 }
 0x3b8   :  { %v720_v45 = vadd.f32 %v718_v44, %v1233_v5 }
 0x3ba   :  { %v724_v46 = vsel %vm79_vm0, %v720_v45, 0.0 }
 0x3bb   :  { %725 = vadd.xlane.f32.xlu0 %v724_v46 }
 0x423   :  { %v723_v52 = vpop.xlane.xlu1 %722 }
 0x424   :  { %v734_v53 = vmul.f32 %v1380_v51, %v723_v52 }
 0x426   :  { %v736_v54 = vsub.f32 %v719_v36, %v734_v53 }
 0x428   :  { %v738_v55 = vmul.f32 %v736_v54, %v736_v54 }
 0x42a   :  { %v740_v5 = vsel %vm79_vm0, %v738_v55, 0.0 }
 0x42b   :  { %741 = vadd.xlane.f32.xlu2 %v740_v5 }
 0x42e   :  { %v726_v56 = vpop.xlane.xlu0 %725 }
 0x42f   :  { %v735_v57 = vmul.f32 %v1380_v51, %v726_v56 }
 0x431   :  { %v737_v58 = vsub.f32 %v720_v45, %v735_v57 }
 0x433   :  { %v739_v59 = vmul.f32 %v737_v58, %v737_v58 }
 0x435   :  { %v743_v60 = vsel %vm79_vm0, %v739_v59, 0.0 }
 0x436   :  { %744 = vadd.xlane.f32.xlu1 %v743_v60 }
 0x49e   :  { %v742_v1 = vpop.xlane.xlu2 %741 }
 0x49f   :  { %v746_v2 = vmul.f32 %v742_v1, %v1380_v51 }
 0x4a1   :  { %v748_v3 = vadd.f32 1e-05, %v746_v2 }
 0x4a3   :  { %1040 = vrsqrt.f32 %v748_v3  ;;  %vm756_vm7 = vweird.f32 %v748_v3 }
 0x4a9   :  { %v745_v11 = vpop.xlane.xlu1 %744  ;;  %v1041_v12 = vpop.eup %1040 }
 0x4aa   :  { %v747_v13 = vmul.f32 %v745_v11, %v1380_v51  ;;  %v751_v14 = vmul.f32 %v1041_v12, %v748_v3  ;;  %vm757_vm6 = vweird.f32 %v1041_v12 }
 0x4ab   :  { %vm758_vm8 = vmor %vm756_vm7, %vm757_vm6 }
 0x4ac   :  { %v749_v15 = vadd.f32 1e-05, %v747_v13  ;;  %v752_v17 = vmul.f32 %v1041_v12, %v751_v14 }
 0x4ae   :  { %1042 = vrsqrt.f32 %v749_v15  ;;  %v753_v18 = vmul.f32 0.5, %v752_v17  ;;  %vm766_vm10 = vweird.f32 %v749_v15 }
 0x4b0   :  { %v754_v19 = vsub.f32 1.5, %v753_v18 }
 0x4b2   :  { %v755_v20 = vmul.f32 %v1041_v12, %v754_v19 }
 0x4b4   :  { %v1043_v21 = vpop.eup %1042  ;;  %v759_v23 = vsel %vm758_vm8, %v1041_v12, %v755_v20 }
 0x4b5   :  { %v761_v24 = vmul.f32 %v1043_v21, %v749_v15  ;;  %v770_v25 = vmul.f32 %v759_v23, %v736_v54  ;;  %vm767_vm9 = vweird.f32 %v1043_v21 }
 0x4b6   :  { %vm768_vm11 = vmor %vm766_vm10, %vm767_vm9 }
 0x4b7   :  { %v762_v27 = vmul.f32 %v1043_v21, %v761_v24  ;;  %v776_v28 = vmul.f32 %v1000_v22, %v770_v25 }
 0x4b9   :  { %v763_v29 = vmul.f32 0.5, %v762_v27  ;;  %v782_v30 = vadd.f32 %v1001_v26, %v776_v28 }
 0x4bb   :  { %v764_v31 = vsub.f32 1.5, %v763_v29  ;;  %971 = vmatmul.msk.f32.vlgmr.msrb.gmra.mxu3 %vm79_vm0, %v782_v30 }
 0x4bd   :  { %v765_v32 = vmul.f32 %v1043_v21, %v764_v31 }
 0x4bf   :  { %v769_v33 = vsel %vm768_vm11, %v1043_v21, %v765_v32 }
 0x4c0   :  { %v771_v34 = vmul.f32 %v769_v33, %v737_v58 }
 0x4c2   :  { %v777_v35 = vmul.f32 %v1000_v22, %v771_v34 }
 0x4c4   :  { %v783_v36 = vadd.f32 %v1001_v26, %v777_v35 }
 0x4c6   :  { %972 = vmatmul.msk.f32.gmra.mxu3 %vm79_vm0, %v783_v36 }
 0x53e   :  { %v815_v41 = vpop.f32.mrf.mxu3 }
 0x53f   :  { %v816_v42 = vadd.f32 %v1002_v40, %v815_v41 }
 0x541   :  { %v821_v43 = vmax.f32 %v816_v42, 0.0 }
 0x543   :  { %973 = vmatmul.msk.f32.vlgmr.msra.gmra.mxu0 %vm835_vm12, %v821_v43 }
 0x549   :  { %v818_v44 = vpop.f32.mrf.mxu3 }
 0x54a   :  { %v819_v45 = vadd.f32 %v1002_v40, %v818_v44 }
 0x54c   :  { %v822_v46 = vmax.f32 %v819_v45, 0.0 }
 0x54e   :  { %974 = vmatmul.msk.f32.vlgmr.msra.gmra.mxu1 %vm835_vm12, %v822_v46 }
 0x5c0   :  { %v859_v6 = vpop.f32.mrf.mxu0 }
 0x5c1   :  { %v860_v48 = vadd.f32 %v1003_v47, %v859_v6 }
 0x5c3   :  { %v865_v4 = vadd.f32 %v860_v48, %v782_v30 }
 0x5c5   :  { %v867_v49 = vsel %vm79_vm0, %v865_v4, 0.0 }
 0x5c6   :  { %868 = vadd.xlane.f32.xlu0 %v867_v49 }
 0x5cb   :  { %v862_v50 = vpop.f32.mrf.mxu1 }
 0x5cc   :  { %v863_v52 = vadd.f32 %v1003_v47, %v862_v50 }
 0x5ce   :  { %v866_v53 = vadd.f32 %v863_v52, %v783_v36 }
 0x5d0   :  { %v870_v54 = vsel %vm79_vm0, %v866_v53, 0.0 }
 0x5d1   :  { %871 = vadd.xlane.f32.xlu2 %v870_v54 }
 0x639   :  { %v869_v55 = vpop.xlane.xlu0 %868 }
 0x63a   :  { %v873_v5 = vmul.f32 %v869_v55, %v1380_v51 }
 0x63c   :  { %v875_v56 = vsub.f32 %v865_v4, %v873_v5 }
 0x63e   :  { %v877_v57 = vmul.f32 %v875_v56, %v875_v56 }
 0x640   :  { %v879_v58 = vsel %vm79_vm0, %v877_v57, 0.0 }
 0x641   :  { %880 = vadd.xlane.f32.xlu1 %v879_v58 }
 0x644   :  { %v872_v59 = vpop.xlane.xlu2 %871 }
 0x645   :  { %v874_v60 = vmul.f32 %v872_v59, %v1380_v51 }
 0x647   :  { %v876_v61 = vsub.f32 %v866_v53, %v874_v60 }
 0x649   :  { %v878_v62 = vmul.f32 %v876_v61, %v876_v61 }
 0x64b   :  { %v882_v63 = vsel %vm79_vm0, %v878_v62, 0.0 }
 0x64c   :  { %883 = vadd.xlane.f32.xlu0 %v882_v63 }
 0x6b4   :  { %v881_v0 = vpop.xlane.xlu1 %880 }
 0x6b5   :  { %v885_v1 = vmul.f32 %v881_v0, %v1380_v51 }
 0x6b7   :  { %v887_v2 = vadd.f32 1e-05, %v885_v1 }
 0x6b9   :  { %1044 = vrsqrt.f32 %v887_v2  ;;  %vm895_vm14 = vweird.f32 %v887_v2 }
 0x6bf   :  { %v884_v3 = vpop.xlane.xlu0 %883  ;;  %v1045_v8 = vpop.eup %1044 }
 0x6c0   :  { %v886_v9 = vmul.f32 %v884_v3, %v1380_v51  ;;  %v890_v10 = vmul.f32 %v1045_v8, %v887_v2  ;;  %vm896_vm13 = vweird.f32 %v1045_v8  ;;  %v1005_v51 = vld [vmem:[%s1471_s11] ss:$0 sm:$0xff] }
 0x6c1   :  { %vm897_vm15 = vmor %vm895_vm14, %vm896_vm13 }
 0x6c2   :  { %v888_v11 = vadd.f32 1e-05, %v886_v9  ;;  %v891_v12 = vmul.f32 %v1045_v8, %v890_v10 }
 0x6c4   :  { %1046 = vrsqrt.f32 %v888_v11  ;;  %v892_v13 = vmul.f32 0.5, %v891_v12  ;;  %vm905_vm3 = vweird.f32 %v888_v11 }
 0x6c6   :  { %v893_v7 = vsub.f32 1.5, %v892_v13 }
 0x6c8   :  { %v894_v14 = vmul.f32 %v1045_v8, %v893_v7 }
 0x6ca   :  { %v1047_v15 = vpop.eup %1046  ;;  %v898_v17 = vsel %vm897_vm15, %v1045_v8, %v894_v14 }
 0x6cb   :  { %v900_v18 = vmul.f32 %v1047_v15, %v888_v11  ;;  %v909_v19 = vmul.f32 %v898_v17, %v875_v56  ;;  %vm906_vm2 = vweird.f32 %v1047_v15 }
 0x6cc   :  { %vm907_vm4 = vmor %vm905_vm3, %vm906_vm2 }
 0x6cd   :  { %v901_v20 = vmul.f32 %v1047_v15, %v900_v18  ;;  %v915_v21 = vmul.f32 %v1004_v16, %v909_v19 }
 0x6cf   :  { %v902_v22 = vmul.f32 0.5, %v901_v20  ;;  %v921_v23 = vadd.f32 %v1005_v51, %v915_v21 }
 0x6d1   :  { %v903_v24 = vsub.f32 1.5, %v902_v22  ;;  %923 = vst.msk [vmem:[#allocation8] sm:$0xff] %vm79_vm0, %v921_v23 }
 0x6d3   :  { %v904_v25 = vmul.f32 %v1047_v15, %v903_v24 }
 0x6d5   :  { %v908_v26 = vsel %vm907_vm4, %v1047_v15, %v904_v25 }
 0x6d6   :  { %v910_v27 = vmul.f32 %v908_v26, %v876_v61 }
 0x6d8   :  { %v916_v28 = vmul.f32 %v1004_v16, %v910_v27 }
 0x6da   :  { %v922_v29 = vadd.f32 %v1005_v51, %v916_v28 }
 0x6dc   :  { %924 = vst.msk [vmem:[#allocation8 + $0x8] sm:$0xff] %vm79_vm0, %v922_v29 }
 0x6dd   :  { %937 = dma.vmem_to_hbm [thread:$0]  %s930_s13, 256, %s932_s15, [#allocation5], %s1127_s29, %s1127_s29, %s1128_s30  }
 0x6de   :  { %1124 = dma.done.wait [#allocation5], 256  }
 0x6df   :  { %1125 = vsyncadd [#allocation5], 4294967040 }
 0x6e0   :  { %942 = vsyncpa [#allocation4], 1 }
 0x6e1   :  { %943 = vsyncpa [#allocation7], 1 }
 0x6e2   :  { %944 = vsyncpa [#allocation5], 1 }

</bundles_post_ra>
